<compile_context>
chip_gen: v5e
topology: v5e:2x2
jax: 0.10.0
libtpu: 0.0.40
codegen_flags: <defaults>
</compile_context>

<pallas_src>
import functools

import numpy as np

import jax
import jax.numpy as jnp
from jax import lax
from jax.experimental import pallas as pl
from jax.experimental.pallas import tpu as pltpu


# ----------------------------------------------------------------------------
# Small helpers
# ----------------------------------------------------------------------------
def _round_up(x, m):
    return (x + m - 1) // m * m


def _pick_tile(size, unit, max_units):
    """Tile = unit * d where d divides size/unit (size must be unit-aligned)
    and d <= max_units, so tiles evenly divide the padded shape."""
    n = _round_up(size, unit) // unit
    for d in range(min(max_units, n), 0, -1):
        if n % d == 0:
            return unit * d
    return unit


# ----------------------------------------------------------------------------
# Pallas kernel: matmul (K fully resident) + per-channel bias + activation
# ----------------------------------------------------------------------------
def _matmul_bias_act_kernel(p_ref, w_ref, b_ref, o_ref, *, act):
    # bf16 x bf16 -> f32 on the MXU; no K grid axis, no accumulator scratch.
    y = jnp.dot(p_ref[...], w_ref[...], preferred_element_type=jnp.float32)
    y = y + b_ref[...]                      # f32 epilogue (v5e-safe)
    if act == "relu":
        y = jnp.maximum(y, 0.0)
    elif act == "sigmoid":
        y = jax.nn.sigmoid(y)
    o_ref[...] = y.astype(o_ref.dtype)


def fused_matmul_bias_act(patches, w_pad, b_pad, n_valid, act,
                          out_dtype=jnp.bfloat16):
    """patches: (M, K) activations (any float dtype).
    w_pad: (Kp, Np) bf16 weight matrix with BN scale pre-folded (prepared once).
    b_pad: (1, Np) f32 bias row (conv bias + folded BN), prepared once.
    n_valid: number of valid output columns (<= Np)."""
    M, K = patches.shape
    Kp, Np = w_pad.shape

    # 16-sublane alignment -> full packed bf16 vregs, unmasked stores.
    Mp = _round_up(M, 16)
    p = jnp.pad(patches.astype(jnp.bfloat16), ((0, Mp - M), (0, Kp - K)))

    tm = _pick_tile(Mp, 16, 8)      # <= 128 rows, evenly divides Mp
    tn = _pick_tile(Np, 128, 2)     # 128 or 256 lanes -> lane-dense stores
    grid = (Mp // tm, Np // tn)

    out_itemsize = jnp.dtype(out_dtype).itemsize
    cost = pl.CostEstimate(
        flops=int(2 * M * K * n_valid),
        transcendentals=int(M * n_valid) if act == "sigmoid" else 0,
        bytes_accessed=int(M * K * 2 + Kp * Np * 2 + Np * 4
                           + M * n_valid * out_itemsize),
    )

    out = pl.pallas_call(
        functools.partial(_matmul_bias_act_kernel, act=act),
        out_shape=jax.ShapeDtypeStruct((Mp, Np), out_dtype),
        grid=grid,
        in_specs=[
            pl.BlockSpec((tm, Kp), lambda i, j: (i, 0)),
            pl.BlockSpec((Kp, tn), lambda i, j: (0, j)),
            pl.BlockSpec((1, tn), lambda i, j: (0, j)),
        ],
        out_specs=pl.BlockSpec((tm, tn), lambda i, j: (i, j)),
        compiler_params=pltpu.CompilerParams(
            dimension_semantics=("parallel", "parallel"),
            vmem_limit_bytes=32 * 1024 * 1024,   # well under v7x's 64 MiB
        ),
        cost_estimate=cost,
    )(p, w_pad, b_pad)
    return out[:M, :n_valid]


# ----------------------------------------------------------------------------
# XLA glue: im2col for the stride-2 encoder convs, phase taps for the decoder
# ----------------------------------------------------------------------------
def _im2col(x, k, stride):
    """x: (N, H, W, C) already padded. Returns (N*Ho*Wo, k*k*C), (N, Ho, Wo)."""
    N, H, W, C = x.shape
    Ho = (H - k) // stride + 1
    Wo = (W - k) // stride + 1
    cols = []
    for i in range(k):
        for j in range(k):
            cols.append(
                x[:, i: i + stride * (Ho - 1) + 1: stride,
                     j: j + stride * (Wo - 1) + 1: stride, :]
            )
    patches = jnp.stack(cols, axis=3)               # (N, Ho, Wo, k*k, C)
    return patches.reshape(N * Ho * Wo, k * k * C), (N, Ho, Wo)


def conv2d_block(x, w_pad, b_pad, cout, act):
    """Conv2d(Cin, Cout, 3, stride=2, padding=1) + BN + activation.  x: NHWC."""
    xp = jnp.pad(x, ((0, 0), (1, 1), (1, 1), (0, 0)))
    patches, (N, Ho, Wo) = _im2col(xp, 3, 2)
    out = fused_matmul_bias_act(patches, w_pad, b_pad, cout, act,
                                out_dtype=jnp.bfloat16)
    return out.reshape(N, Ho, Wo, cout)


def deconv2d_block(x, w_pad, b_pad, cout, act, out_dtype):
    """ConvTranspose2d(Cin, Cout, 3, 2, 1, 1) + BN + activation via sub-pixel
    phase decomposition (4 output phases share one 4-tap patch matrix)."""
    N, H, W, Cin = x.shape
    xpad = jnp.pad(x, ((0, 0), (0, 1), (0, 1), (0, 0)))
    taps = [xpad[:, d:d + H, e:e + W, :] for d in range(2) for e in range(2)]
    patches = jnp.concatenate(taps, axis=-1).reshape(N * H * W, 4 * Cin)

    out = fused_matmul_bias_act(patches, w_pad, b_pad, 4 * cout, act,
                                out_dtype=out_dtype)

    # Pixel shuffle the 4 (row, col) phases back into (N, 2H, 2W, Cout).
    out = out.reshape(N, H, W, 2, 2, cout)
    out = jnp.transpose(out, (0, 1, 3, 2, 4, 5)).reshape(N, 2 * H, 2 * W, cout)
    return out


# ----------------------------------------------------------------------------
# One-time (outside jit) weight preparation: BN fold, phase combine, pad, bf16
# ----------------------------------------------------------------------------
_ENC = [(3, 32), (32, 64), (64, 128), (128, 256)]
_DEC = [(256, 128), (128, 64), (64, 32), (32, 3)]

# Tap map: output row phase r (0 = even, 1 = odd) uses flipped-kernel row a for
# input row-offset d:  _PHASE_TAP[r][d] = a  (-1 means that pair is unused).
_PHASE_TAP = ((1, -1), (0, 2))


def _fold_bn(bias, bn, cout):
    if bn is None:
        return np.ones((cout,), np.float32), np.asarray(bias, np.float32)
    gamma, beta, mean, var, eps = bn
    gamma = np.asarray(gamma, np.float32)
    beta = np.asarray(beta, np.float32)
    mean = np.asarray(mean, np.float32)
    var = np.asarray(var, np.float32)
    s = gamma / np.sqrt(var + float(eps))
    b_eff = (np.asarray(bias, np.float32) - mean) * s + beta
    return s, b_eff


def _pad_weight(w_mat, bias_row):
    """w_mat: (K, Ntot) f32, bias_row: (Ntot,) f32 -> padded bf16/f32 arrays."""
    K, Ntot = w_mat.shape
    Kp, Np = _round_up(K, 128), _round_up(Ntot, 128)
    w_pad = np.zeros((Kp, Np), np.float32)
    w_pad[:K, :Ntot] = w_mat
    b_pad = np.zeros((1, Np), np.float32)
    b_pad[0, :Ntot] = bias_row
    return jnp.asarray(w_pad).astype(jnp.bfloat16), jnp.asarray(b_pad)


def prepare_params(params):
    """Run ONCE per parameter set (outside jit). Returns matmul-ready padded
    bf16 weight matrices (BN scale folded in, in f32, before the bf16 cast)
    and f32 bias rows for every layer."""
    enc_prepared = []
    for (cin, cout), (w, b, bn) in zip(_ENC, params["enc"]):
        w = np.asarray(w, np.float32)                       # (Cout, Cin, 3, 3)
        s, b_eff = _fold_bn(b, bn, cout)
        w_mat = np.transpose(w, (2, 3, 1, 0)).reshape(9 * cin, cout)
        w_mat = w_mat * s[None, :]                          # fold BN scale (f32)
        enc_prepared.append(_pad_weight(w_mat, b_eff))

    dec_prepared = []
    for (cin, cout), (w, b, bn) in zip(_DEC, params["dec"]):
        w = np.asarray(w, np.float32)                       # (Cin, Cout, 3, 3)
        s, b_eff = _fold_bn(b, bn, cout)
        # Equivalent forward-conv weight: flip spatially, swap in/out channels.
        w_eq = np.transpose(w[:, :, ::-1, ::-1], (1, 0, 2, 3))   # (Cout,Cin,3,3)
        # Combined 4-phase weight: rows (d, e, cin), cols (r, s, cout).
        Wc = np.zeros((2, 2, cin, 2, 2, cout), np.float32)
        for r in range(2):
            for d in range(2):
                a = _PHASE_TAP[r][d]
                if a < 0:
                    continue
                for sph in range(2):
                    for e in range(2):
                        bb = _PHASE_TAP[sph][e]
                        if bb < 0:
                            continue
                        Wc[d, e, :, r, sph, :] = w_eq[:, :, a, bb].T
        Wc = Wc * s[None, None, None, None, None, :]        # fold BN scale (f32)
        w_mat = Wc.reshape(4 * cin, 4 * cout)
        bias4 = np.tile(b_eff, 4)                           # (r, s, cout) order
        dec_prepared.append(_pad_weight(w_mat, bias4))

    return enc_prepared, dec_prepared


# ----------------------------------------------------------------------------
# Raw (PyTorch-layout) parameters and the forward pass
# ----------------------------------------------------------------------------
def init_params(key):
    params = {"enc": [], "dec": []}
    k = key
    for cin, cout in _ENC:
        k, k1, k2, k3, k4, k5, k6 = jax.random.split(k, 7)
        w = jax.random.normal(k1, (cout, cin, 3, 3), jnp.float32) * 0.1
        b = jax.random.normal(k2, (cout,), jnp.float32) * 0.05
        bn = (jax.random.uniform(k3, (cout,), jnp.float32, 0.5, 1.5),
              jax.random.normal(k4, (cout,), jnp.float32) * 0.05,
              jax.random.normal(k5, (cout,), jnp.float32) * 0.05,
              jax.random.uniform(k6, (cout,), jnp.float32, 0.5, 1.5),
              1e-5)
        params["enc"].append((w, b, bn))
    for idx, (cin, cout) in enumerate(_DEC):
        k, k1, k2, k3, k4, k5, k6 = jax.random.split(k, 7)
        w = jax.random.normal(k1, (cin, cout, 3, 3), jnp.float32) * 0.1
        b = jax.random.normal(k2, (cout,), jnp.float32) * 0.05
        if idx == len(_DEC) - 1:
            bn = None                       # last layer: ConvTranspose + Sigmoid
        else:
            bn = (jax.random.uniform(k3, (cout,), jnp.float32, 0.5, 1.5),
                  jax.random.normal(k4, (cout,), jnp.float32) * 0.05,
                  jax.random.normal(k5, (cout,), jnp.float32) * 0.05,
                  jax.random.uniform(k6, (cout,), jnp.float32, 0.5, 1.5),
                  1e-5)
        params["dec"].append((w, b, bn))
    return params


@jax.jit
def autoencoder_forward(x_nchw, enc_prepared, dec_prepared):
    x = jnp.transpose(x_nchw, (0, 2, 3, 1)).astype(jnp.bfloat16)   # NCHW -> NHWC
    for (cin, cout), (w_pad, b_pad) in zip(_ENC, enc_prepared):
        x = conv2d_block(x, w_pad, b_pad, cout, act="relu")
    n_dec = len(_DEC)
    for i, ((cin, cout), (w_pad, b_pad)) in enumerate(zip(_DEC, dec_prepared)):
        last = i == n_dec - 1
        x = deconv2d_block(x, w_pad, b_pad, cout,
                           act="sigmoid" if last else "relu",
                           out_dtype=jnp.float32 if last else jnp.bfloat16)
    return jnp.transpose(x, (0, 3, 1, 2))                          # NHWC -> NCHW


# ----------------------------------------------------------------------------
# Pure-JAX f32 reference (lax conv) for correctness cross-check
# ----------------------------------------------------------------------------
def reference_forward(x_nchw, params):
    dn = ("NHWC", "HWIO", "NHWC")

    def bn_act(y, bn, act):
        if bn is not None:
            gamma, beta, mean, var, eps = bn
            y = (y - mean) / jnp.sqrt(var + eps) * gamma + beta
        return jnp.maximum(y, 0.0) if act == "relu" else jax.nn.sigmoid(y)

    x = jnp.transpose(x_nchw, (0, 2, 3, 1))
    for (w, b, bn) in params["enc"]:
        wh = jnp.transpose(w, (2, 3, 1, 0))
        y = lax.conv_general_dilated(x, wh, (2, 2), [(1, 1), (1, 1)],
                                     dimension_numbers=dn) + b
        x = bn_act(y, bn, "relu")
    ndec = len(params["dec"])
    for i, (w, b, bn) in enumerate(params["dec"]):
        w_eq = jnp.transpose(jnp.flip(w, axis=(2, 3)), (1, 0, 2, 3))
        wh = jnp.transpose(w_eq, (2, 3, 1, 0))
        y = lax.conv_general_dilated(x, wh, (1, 1), [(1, 2), (1, 2)],
                                     lhs_dilation=(2, 2),
                                     dimension_numbers=dn) + b
        x = bn_act(y, bn, "sigmoid" if i == ndec - 1 else "relu")
    return jnp.transpose(x, (0, 3, 1, 2))


if __name__ == "__main__":
    key = jax.random.PRNGKey(0)
    kp, kx = jax.random.split(key)
    params = init_params(kp)
    enc_prepared, dec_prepared = prepare_params(params)     # one-time, outside jit
    x = jax.random.normal(kx, (2, 3, 16, 16), jnp.float32)  # NCHW like PyTorch

    out = jax.block_until_ready(autoencoder_forward(x, enc_prepared, dec_prepared))
    assert out.shape == (2, 3, 16, 16), out.shape
    assert out.dtype == jnp.float32

    ref = reference_forward(x, params)
    # bf16 matmul operands + bf16 inter-layer activations => loosened tolerance
    # vs. the all-f32 reference (outputs are post-sigmoid, in (0, 1)).
    err = float(jnp.max(jnp.abs(out - ref)))
    assert err < 5e-2, err

    print("KERNEL_OK")
</pallas_src>

<mosaic_0001>
module attributes {stable_mosaic.version = 11 : i64} {
  func.func @_matmul_bias_act_kernel(%arg0: i32, %arg1: i32, %arg2: memref<128x128xbf16, #tpu.memory_space<vmem>>, %arg3: memref<128x128xbf16, #tpu.memory_space<vmem>>, %arg4: memref<1x128xf32, #tpu.memory_space<vmem>>, %arg5: memref<128x128xbf16, #tpu.memory_space<vmem>>) attributes {dimension_semantics = [#tpu.dimension_semantics<parallel>, #tpu.dimension_semantics<parallel>], iteration_bounds = array<i64: 1, 1>, scalar_prefetch = 0 : i64, scratch_operands = 0 : i64, tpu.core_type = #tpu.core_type<tc>, window_params = [{transform_indices = @transform_0, window_bounds = array<i64: 128, 128>}, {transform_indices = @transform_1, window_bounds = array<i64: 128, 128>}, {transform_indices = @transform_2, window_bounds = array<i64: 1, 128>}, {transform_indices = @transform_3, window_bounds = array<i64: 128, 128>}]} {
    %c0 = arith.constant 0 : index
    %c0_0 = arith.constant 0 : index
    %0 = vector.load %arg2[%c0, %c0_0] : memref<128x128xbf16, #tpu.memory_space<vmem>>, vector<128x128xbf16>
    %c0_1 = arith.constant 0 : index
    %c0_2 = arith.constant 0 : index
    %1 = vector.load %arg3[%c0_1, %c0_2] : memref<128x128xbf16, #tpu.memory_space<vmem>>, vector<128x128xbf16>
    %cst = arith.constant dense<0.000000e+00> : vector<128x128xf32>
    %2 = tpu.matmul %0, %1, %cst {dimension_numbers = #tpu.dot_dimension_numbers<[1], [0], [0], [1], [0, 0, 1, 1], [], []>} : vector<128x128xbf16>, vector<128x128xbf16>, vector<128x128xf32> -> vector<128x128xf32>
    %c0_3 = arith.constant 0 : index
    %c0_4 = arith.constant 0 : index
    %3 = vector.load %arg4[%c0_3, %c0_4] : memref<1x128xf32, #tpu.memory_space<vmem>>, vector<1x128xf32>
    %4 = vector.broadcast %3 : vector<1x128xf32> to vector<128x128xf32>
    %5 = arith.addf %2, %4 : vector<128x128xf32>
    %cst_5 = arith.constant 0.000000e+00 : f32
    %6 = vector.broadcast %cst_5 : f32 to vector<128x128xf32>
    %7 = arith.maximumf %5, %6 : vector<128x128xf32>
    %8 = arith.truncf %7 : vector<128x128xf32> to vector<128x128xbf16>
    %c0_6 = arith.constant 0 : index
    %c0_7 = arith.constant 0 : index
    %9 = vector.load %arg5[%c0_6, %c0_7] : memref<128x128xbf16, #tpu.memory_space<vmem>>, vector<128x128xbf16>
    tpu.vector_store %arg5[%c0_6, %c0_7], %8 {strides = array<i32>} : memref<128x128xbf16, #tpu.memory_space<vmem>>, vector<128x128xbf16>,
    return
  }
  func.func @transform_0(%arg0: i32, %arg1: i32) -> (i32, i32) {
    %c0_i32 = arith.constant 0 : i32
    %c0_i32_0 = arith.constant 0 : i32
    return %arg0, %c0_i32 : i32, i32
  }
  func.func @transform_1(%arg0: i32, %arg1: i32) -> (i32, i32) {
    %c0_i32 = arith.constant 0 : i32
    %c0_i32_0 = arith.constant 0 : i32
    return %c0_i32, %arg1 : i32, i32
  }
  func.func @transform_2(%arg0: i32, %arg1: i32) -> (i32, i32) {
    %c0_i32 = arith.constant 0 : i32
    %c0_i32_0 = arith.constant 0 : i32
    return %c0_i32, %arg1 : i32, i32
  }
  func.func @transform_3(%arg0: i32, %arg1: i32) -> (i32, i32) {
    %c0_i32 = arith.constant 0 : i32
    return %arg0, %arg1 : i32, i32
  }
}

module attributes {stable_mosaic.version = 11 : i64} {
  func.func @_matmul_bias_act_kernel(%arg0: i32, %arg1: i32, %arg2: memref<32x384xbf16, #tpu.memory_space<vmem>>, %arg3: memref<384x128xbf16, #tpu.memory_space<vmem>>, %arg4: memref<1x128xf32, #tpu.memory_space<vmem>>, %arg5: memref<32x128xbf16, #tpu.memory_space<vmem>>) attributes {dimension_semantics = [#tpu.dimension_semantics<parallel>, #tpu.dimension_semantics<parallel>], iteration_bounds = array<i64: 1, 1>, scalar_prefetch = 0 : i64, scratch_operands = 0 : i64, tpu.core_type = #tpu.core_type<tc>, window_params = [{transform_indices = @transform_0, window_bounds = array<i64: 32, 384>}, {transform_indices = @transform_1, window_bounds = array<i64: 384, 128>}, {transform_indices = @transform_2, window_bounds = array<i64: 1, 128>}, {transform_indices = @transform_3, window_bounds = array<i64: 32, 128>}]} {
    %c0 = arith.constant 0 : index
    %c0_0 = arith.constant 0 : index
    %0 = vector.load %arg2[%c0, %c0_0] : memref<32x384xbf16, #tpu.memory_space<vmem>>, vector<32x384xbf16>
    %c0_1 = arith.constant 0 : index
    %c0_2 = arith.constant 0 : index
    %1 = vector.load %arg3[%c0_1, %c0_2] : memref<384x128xbf16, #tpu.memory_space<vmem>>, vector<384x128xbf16>
    %cst = arith.constant dense<0.000000e+00> : vector<32x128xf32>
    %2 = tpu.matmul %0, %1, %cst {dimension_numbers = #tpu.dot_dimension_numbers<[1], [0], [0], [1], [0, 0, 1, 1], [], []>} : vector<32x384xbf16>, vector<384x128xbf16>, vector<32x128xf32> -> vector<32x128xf32>
    %c0_3 = arith.constant 0 : index
    %c0_4 = arith.constant 0 : index
    %3 = vector.load %arg4[%c0_3, %c0_4] : memref<1x128xf32, #tpu.memory_space<vmem>>, vector<1x128xf32>
    %4 = vector.broadcast %3 : vector<1x128xf32> to vector<32x128xf32>
    %5 = arith.addf %2, %4 : vector<32x128xf32>
    %cst_5 = arith.constant 0.000000e+00 : f32
    %6 = vector.broadcast %cst_5 : f32 to vector<32x128xf32>
    %7 = arith.maximumf %5, %6 : vector<32x128xf32>
    %8 = arith.truncf %7 : vector<32x128xf32> to vector<32x128xbf16>
    %c0_6 = arith.constant 0 : index
    %c0_7 = arith.constant 0 : index
    %9 = vector.load %arg5[%c0_6, %c0_7] : memref<32x128xbf16, #tpu.memory_space<vmem>>, vector<32x128xbf16>
    tpu.vector_store %arg5[%c0_6, %c0_7], %8 {strides = array<i32>} : memref<32x128xbf16, #tpu.memory_space<vmem>>, vector<32x128xbf16>,
    return
  }
  func.func @transform_0(%arg0: i32, %arg1: i32) -> (i32, i32) {
    %c0_i32 = arith.constant 0 : i32
    %c0_i32_0 = arith.constant 0 : i32
    return %arg0, %c0_i32 : i32, i32
  }
  func.func @transform_1(%arg0: i32, %arg1: i32) -> (i32, i32) {
    %c0_i32 = arith.constant 0 : i32
    %c0_i32_0 = arith.constant 0 : i32
    return %c0_i32, %arg1 : i32, i32
  }
  func.func @transform_2(%arg0: i32, %arg1: i32) -> (i32, i32) {
    %c0_i32 = arith.constant 0 : i32
    %c0_i32_0 = arith.constant 0 : i32
    return %c0_i32, %arg1 : i32, i32
  }
  func.func @transform_3(%arg0: i32, %arg1: i32) -> (i32, i32) {
    %c0_i32 = arith.constant 0 : i32
    return %arg0, %arg1 : i32, i32
  }
}

module attributes {stable_mosaic.version = 11 : i64} {
  func.func @_matmul_bias_act_kernel(%arg0: i32, %arg1: i32, %arg2: memref<16x640xbf16, #tpu.memory_space<vmem>>, %arg3: memref<640x128xbf16, #tpu.memory_space<vmem>>, %arg4: memref<1x128xf32, #tpu.memory_space<vmem>>, %arg5: memref<16x128xbf16, #tpu.memory_space<vmem>>) attributes {dimension_semantics = [#tpu.dimension_semantics<parallel>, #tpu.dimension_semantics<parallel>], iteration_bounds = array<i64: 1, 1>, scalar_prefetch = 0 : i64, scratch_operands = 0 : i64, tpu.core_type = #tpu.core_type<tc>, window_params = [{transform_indices = @transform_0, window_bounds = array<i64: 16, 640>}, {transform_indices = @transform_1, window_bounds = array<i64: 640, 128>}, {transform_indices = @transform_2, window_bounds = array<i64: 1, 128>}, {transform_indices = @transform_3, window_bounds = array<i64: 16, 128>}]} {
    %c0 = arith.constant 0 : index
    %c0_0 = arith.constant 0 : index
    %0 = vector.load %arg2[%c0, %c0_0] : memref<16x640xbf16, #tpu.memory_space<vmem>>, vector<16x640xbf16>
    %c0_1 = arith.constant 0 : index
    %c0_2 = arith.constant 0 : index
    %1 = vector.load %arg3[%c0_1, %c0_2] : memref<640x128xbf16, #tpu.memory_space<vmem>>, vector<640x128xbf16>
    %cst = arith.constant dense<0.000000e+00> : vector<16x128xf32>
    %2 = tpu.matmul %0, %1, %cst {dimension_numbers = #tpu.dot_dimension_numbers<[1], [0], [0], [1], [0, 0, 1, 1], [], []>} : vector<16x640xbf16>, vector<640x128xbf16>, vector<16x128xf32> -> vector<16x128xf32>
    %c0_3 = arith.constant 0 : index
    %c0_4 = arith.constant 0 : index
    %3 = vector.load %arg4[%c0_3, %c0_4] : memref<1x128xf32, #tpu.memory_space<vmem>>, vector<1x128xf32>
    %4 = vector.broadcast %3 : vector<1x128xf32> to vector<16x128xf32>
    %5 = arith.addf %2, %4 : vector<16x128xf32>
    %cst_5 = arith.constant 0.000000e+00 : f32
    %6 = vector.broadcast %cst_5 : f32 to vector<16x128xf32>
    %7 = arith.maximumf %5, %6 : vector<16x128xf32>
    %8 = arith.truncf %7 : vector<16x128xf32> to vector<16x128xbf16>
    %c0_6 = arith.constant 0 : index
    %c0_7 = arith.constant 0 : index
    %9 = vector.load %arg5[%c0_6, %c0_7] : memref<16x128xbf16, #tpu.memory_space<vmem>>, vector<16x128xbf16>
    tpu.vector_store %arg5[%c0_6, %c0_7], %8 {strides = array<i32>} : memref<16x128xbf16, #tpu.memory_space<vmem>>, vector<16x128xbf16>,
    return
  }
  func.func @transform_0(%arg0: i32, %arg1: i32) -> (i32, i32) {
    %c0_i32 = arith.constant 0 : i32
    %c0_i32_0 = arith.constant 0 : i32
    return %arg0, %c0_i32 : i32, i32
  }
  func.func @transform_1(%arg0: i32, %arg1: i32) -> (i32, i32) {
    %c0_i32 = arith.constant 0 : i32
    %c0_i32_0 = arith.constant 0 : i32
    return %c0_i32, %arg1 : i32, i32
  }
  func.func @transform_2(%arg0: i32, %arg1: i32) -> (i32, i32) {
    %c0_i32 = arith.constant 0 : i32
    %c0_i32_0 = arith.constant 0 : i32
    return %c0_i32, %arg1 : i32, i32
  }
  func.func @transform_3(%arg0: i32, %arg1: i32) -> (i32, i32) {
    %c0_i32 = arith.constant 0 : i32
    return %arg0, %arg1 : i32, i32
  }
}

module attributes {stable_mosaic.version = 11 : i64} {
  func.func @_matmul_bias_act_kernel(%arg0: i32, %arg1: i32, %arg2: memref<16x1152xbf16, #tpu.memory_space<vmem>>, %arg3: memref<1152x256xbf16, #tpu.memory_space<vmem>>, %arg4: memref<1x256xf32, #tpu.memory_space<vmem>>, %arg5: memref<16x256xbf16, #tpu.memory_space<vmem>>) attributes {dimension_semantics = [#tpu.dimension_semantics<parallel>, #tpu.dimension_semantics<parallel>], iteration_bounds = array<i64: 1, 1>, scalar_prefetch = 0 : i64, scratch_operands = 0 : i64, tpu.core_type = #tpu.core_type<tc>, window_params = [{transform_indices = @transform_0, window_bounds = array<i64: 16, 1152>}, {transform_indices = @transform_1, window_bounds = array<i64: 1152, 256>}, {transform_indices = @transform_2, window_bounds = array<i64: 1, 256>}, {transform_indices = @transform_3, window_bounds = array<i64: 16, 256>}]} {
    %c0 = arith.constant 0 : index
    %c0_0 = arith.constant 0 : index
    %0 = vector.load %arg2[%c0, %c0_0] : memref<16x1152xbf16, #tpu.memory_space<vmem>>, vector<16x1152xbf16>
    %c0_1 = arith.constant 0 : index
    %c0_2 = arith.constant 0 : index
    %1 = vector.load %arg3[%c0_1, %c0_2] : memref<1152x256xbf16, #tpu.memory_space<vmem>>, vector<1152x256xbf16>
    %cst = arith.constant dense<0.000000e+00> : vector<16x256xf32>
    %2 = tpu.matmul %0, %1, %cst {dimension_numbers = #tpu.dot_dimension_numbers<[1], [0], [0], [1], [0, 0, 1, 1], [], []>} : vector<16x1152xbf16>, vector<1152x256xbf16>, vector<16x256xf32> -> vector<16x256xf32>
    %c0_3 = arith.constant 0 : index
    %c0_4 = arith.constant 0 : index
    %3 = vector.load %arg4[%c0_3, %c0_4] : memref<1x256xf32, #tpu.memory_space<vmem>>, vector<1x256xf32>
    %4 = vector.broadcast %3 : vector<1x256xf32> to vector<16x256xf32>
    %5 = arith.addf %2, %4 : vector<16x256xf32>
    %cst_5 = arith.constant 0.000000e+00 : f32
    %6 = vector.broadcast %cst_5 : f32 to vector<16x256xf32>
    %7 = arith.maximumf %5, %6 : vector<16x256xf32>
    %8 = arith.truncf %7 : vector<16x256xf32> to vector<16x256xbf16>
    %c0_6 = arith.constant 0 : index
    %c0_7 = arith.constant 0 : index
    %9 = vector.load %arg5[%c0_6, %c0_7] : memref<16x256xbf16, #tpu.memory_space<vmem>>, vector<16x256xbf16>
    tpu.vector_store %arg5[%c0_6, %c0_7], %8 {strides = array<i32>} : memref<16x256xbf16, #tpu.memory_space<vmem>>, vector<16x256xbf16>,
    return
  }
  func.func @transform_0(%arg0: i32, %arg1: i32) -> (i32, i32) {
    %c0_i32 = arith.constant 0 : i32
    %c0_i32_0 = arith.constant 0 : i32
    return %arg0, %c0_i32 : i32, i32
  }
  func.func @transform_1(%arg0: i32, %arg1: i32) -> (i32, i32) {
    %c0_i32 = arith.constant 0 : i32
    %c0_i32_0 = arith.constant 0 : i32
    return %c0_i32, %arg1 : i32, i32
  }
  func.func @transform_2(%arg0: i32, %arg1: i32) -> (i32, i32) {
    %c0_i32 = arith.constant 0 : i32
    %c0_i32_0 = arith.constant 0 : i32
    return %c0_i32, %arg1 : i32, i32
  }
  func.func @transform_3(%arg0: i32, %arg1: i32) -> (i32, i32) {
    %c0_i32 = arith.constant 0 : i32
    return %arg0, %arg1 : i32, i32
  }
}

module attributes {stable_mosaic.version = 11 : i64} {
  func.func @_matmul_bias_act_kernel(%arg0: i32, %arg1: i32, %arg2: memref<16x1024xbf16, #tpu.memory_space<vmem>>, %arg3: memref<1024x256xbf16, #tpu.memory_space<vmem>>, %arg4: memref<1x256xf32, #tpu.memory_space<vmem>>, %arg5: memref<16x256xbf16, #tpu.memory_space<vmem>>) attributes {dimension_semantics = [#tpu.dimension_semantics<parallel>, #tpu.dimension_semantics<parallel>], iteration_bounds = array<i64: 1, 2>, scalar_prefetch = 0 : i64, scratch_operands = 0 : i64, tpu.core_type = #tpu.core_type<tc>, window_params = [{transform_indices = @transform_0, window_bounds = array<i64: 16, 1024>}, {transform_indices = @transform_1, window_bounds = array<i64: 1024, 256>}, {transform_indices = @transform_2, window_bounds = array<i64: 1, 256>}, {transform_indices = @transform_3, window_bounds = array<i64: 16, 256>}]} {
    %c0 = arith.constant 0 : index
    %c0_0 = arith.constant 0 : index
    %0 = vector.load %arg2[%c0, %c0_0] : memref<16x1024xbf16, #tpu.memory_space<vmem>>, vector<16x1024xbf16>
    %c0_1 = arith.constant 0 : index
    %c0_2 = arith.constant 0 : index
    %1 = vector.load %arg3[%c0_1, %c0_2] : memref<1024x256xbf16, #tpu.memory_space<vmem>>, vector<1024x256xbf16>
    %cst = arith.constant dense<0.000000e+00> : vector<16x256xf32>
    %2 = tpu.matmul %0, %1, %cst {dimension_numbers = #tpu.dot_dimension_numbers<[1], [0], [0], [1], [0, 0, 1, 1], [], []>} : vector<16x1024xbf16>, vector<1024x256xbf16>, vector<16x256xf32> -> vector<16x256xf32>
    %c0_3 = arith.constant 0 : index
    %c0_4 = arith.constant 0 : index
    %3 = vector.load %arg4[%c0_3, %c0_4] : memref<1x256xf32, #tpu.memory_space<vmem>>, vector<1x256xf32>
    %4 = vector.broadcast %3 : vector<1x256xf32> to vector<16x256xf32>
    %5 = arith.addf %2, %4 : vector<16x256xf32>
    %cst_5 = arith.constant 0.000000e+00 : f32
    %6 = vector.broadcast %cst_5 : f32 to vector<16x256xf32>
    %7 = arith.maximumf %5, %6 : vector<16x256xf32>
    %8 = arith.truncf %7 : vector<16x256xf32> to vector<16x256xbf16>
    %c0_6 = arith.constant 0 : index
    %c0_7 = arith.constant 0 : index
    %9 = vector.load %arg5[%c0_6, %c0_7] : memref<16x256xbf16, #tpu.memory_space<vmem>>, vector<16x256xbf16>
    tpu.vector_store %arg5[%c0_6, %c0_7], %8 {strides = array<i32>} : memref<16x256xbf16, #tpu.memory_space<vmem>>, vector<16x256xbf16>,
    return
  }
  func.func @transform_0(%arg0: i32, %arg1: i32) -> (i32, i32) {
    %c0_i32 = arith.constant 0 : i32
    %c0_i32_0 = arith.constant 0 : i32
    return %arg0, %c0_i32 : i32, i32
  }
  func.func @transform_1(%arg0: i32, %arg1: i32) -> (i32, i32) {
    %c0_i32 = arith.constant 0 : i32
    %c0_i32_0 = arith.constant 0 : i32
    return %c0_i32, %arg1 : i32, i32
  }
  func.func @transform_2(%arg0: i32, %arg1: i32) -> (i32, i32) {
    %c0_i32 = arith.constant 0 : i32
    %c0_i32_0 = arith.constant 0 : i32
    return %c0_i32, %arg1 : i32, i32
  }
  func.func @transform_3(%arg0: i32, %arg1: i32) -> (i32, i32) {
    %c0_i32 = arith.constant 0 : i32
    return %arg0, %arg1 : i32, i32
  }
}

module attributes {stable_mosaic.version = 11 : i64} {
  func.func @_matmul_bias_act_kernel(%arg0: i32, %arg1: i32, %arg2: memref<16x512xbf16, #tpu.memory_space<vmem>>, %arg3: memref<512x256xbf16, #tpu.memory_space<vmem>>, %arg4: memref<1x256xf32, #tpu.memory_space<vmem>>, %arg5: memref<16x256xbf16, #tpu.memory_space<vmem>>) attributes {dimension_semantics = [#tpu.dimension_semantics<parallel>, #tpu.dimension_semantics<parallel>], iteration_bounds = array<i64: 1, 1>, scalar_prefetch = 0 : i64, scratch_operands = 0 : i64, tpu.core_type = #tpu.core_type<tc>, window_params = [{transform_indices = @transform_0, window_bounds = array<i64: 16, 512>}, {transform_indices = @transform_1, window_bounds = array<i64: 512, 256>}, {transform_indices = @transform_2, window_bounds = array<i64: 1, 256>}, {transform_indices = @transform_3, window_bounds = array<i64: 16, 256>}]} {
    %c0 = arith.constant 0 : index
    %c0_0 = arith.constant 0 : index
    %0 = vector.load %arg2[%c0, %c0_0] : memref<16x512xbf16, #tpu.memory_space<vmem>>, vector<16x512xbf16>
    %c0_1 = arith.constant 0 : index
    %c0_2 = arith.constant 0 : index
    %1 = vector.load %arg3[%c0_1, %c0_2] : memref<512x256xbf16, #tpu.memory_space<vmem>>, vector<512x256xbf16>
    %cst = arith.constant dense<0.000000e+00> : vector<16x256xf32>
    %2 = tpu.matmul %0, %1, %cst {dimension_numbers = #tpu.dot_dimension_numbers<[1], [0], [0], [1], [0, 0, 1, 1], [], []>} : vector<16x512xbf16>, vector<512x256xbf16>, vector<16x256xf32> -> vector<16x256xf32>
    %c0_3 = arith.constant 0 : index
    %c0_4 = arith.constant 0 : index
    %3 = vector.load %arg4[%c0_3, %c0_4] : memref<1x256xf32, #tpu.memory_space<vmem>>, vector<1x256xf32>
    %4 = vector.broadcast %3 : vector<1x256xf32> to vector<16x256xf32>
    %5 = arith.addf %2, %4 : vector<16x256xf32>
    %cst_5 = arith.constant 0.000000e+00 : f32
    %6 = vector.broadcast %cst_5 : f32 to vector<16x256xf32>
    %7 = arith.maximumf %5, %6 : vector<16x256xf32>
    %8 = arith.truncf %7 : vector<16x256xf32> to vector<16x256xbf16>
    %c0_6 = arith.constant 0 : index
    %c0_7 = arith.constant 0 : index
    %9 = vector.load %arg5[%c0_6, %c0_7] : memref<16x256xbf16, #tpu.memory_space<vmem>>, vector<16x256xbf16>
    tpu.vector_store %arg5[%c0_6, %c0_7], %8 {strides = array<i32>} : memref<16x256xbf16, #tpu.memory_space<vmem>>, vector<16x256xbf16>,
    return
  }
  func.func @transform_0(%arg0: i32, %arg1: i32) -> (i32, i32) {
    %c0_i32 = arith.constant 0 : i32
    %c0_i32_0 = arith.constant 0 : i32
    return %arg0, %c0_i32 : i32, i32
  }
  func.func @transform_1(%arg0: i32, %arg1: i32) -> (i32, i32) {
    %c0_i32 = arith.constant 0 : i32
    %c0_i32_0 = arith.constant 0 : i32
    return %c0_i32, %arg1 : i32, i32
  }
  func.func @transform_2(%arg0: i32, %arg1: i32) -> (i32, i32) {
    %c0_i32 = arith.constant 0 : i32
    %c0_i32_0 = arith.constant 0 : i32
    return %c0_i32, %arg1 : i32, i32
  }
  func.func @transform_3(%arg0: i32, %arg1: i32) -> (i32, i32) {
    %c0_i32 = arith.constant 0 : i32
    return %arg0, %arg1 : i32, i32
  }
}

module attributes {stable_mosaic.version = 11 : i64} {
  func.func @_matmul_bias_act_kernel(%arg0: i32, %arg1: i32, %arg2: memref<32x256xbf16, #tpu.memory_space<vmem>>, %arg3: memref<256x128xbf16, #tpu.memory_space<vmem>>, %arg4: memref<1x128xf32, #tpu.memory_space<vmem>>, %arg5: memref<32x128xbf16, #tpu.memory_space<vmem>>) attributes {dimension_semantics = [#tpu.dimension_semantics<parallel>, #tpu.dimension_semantics<parallel>], iteration_bounds = array<i64: 1, 1>, scalar_prefetch = 0 : i64, scratch_operands = 0 : i64, tpu.core_type = #tpu.core_type<tc>, window_params = [{transform_indices = @transform_0, window_bounds = array<i64: 32, 256>}, {transform_indices = @transform_1, window_bounds = array<i64: 256, 128>}, {transform_indices = @transform_2, window_bounds = array<i64: 1, 128>}, {transform_indices = @transform_3, window_bounds = array<i64: 32, 128>}]} {
    %c0 = arith.constant 0 : index
    %c0_0 = arith.constant 0 : index
    %0 = vector.load %arg2[%c0, %c0_0] : memref<32x256xbf16, #tpu.memory_space<vmem>>, vector<32x256xbf16>
    %c0_1 = arith.constant 0 : index
    %c0_2 = arith.constant 0 : index
    %1 = vector.load %arg3[%c0_1, %c0_2] : memref<256x128xbf16, #tpu.memory_space<vmem>>, vector<256x128xbf16>
    %cst = arith.constant dense<0.000000e+00> : vector<32x128xf32>
    %2 = tpu.matmul %0, %1, %cst {dimension_numbers = #tpu.dot_dimension_numbers<[1], [0], [0], [1], [0, 0, 1, 1], [], []>} : vector<32x256xbf16>, vector<256x128xbf16>, vector<32x128xf32> -> vector<32x128xf32>
    %c0_3 = arith.constant 0 : index
    %c0_4 = arith.constant 0 : index
    %3 = vector.load %arg4[%c0_3, %c0_4] : memref<1x128xf32, #tpu.memory_space<vmem>>, vector<1x128xf32>
    %4 = vector.broadcast %3 : vector<1x128xf32> to vector<32x128xf32>
    %5 = arith.addf %2, %4 : vector<32x128xf32>
    %cst_5 = arith.constant 0.000000e+00 : f32
    %6 = vector.broadcast %cst_5 : f32 to vector<32x128xf32>
    %7 = arith.maximumf %5, %6 : vector<32x128xf32>
    %8 = arith.truncf %7 : vector<32x128xf32> to vector<32x128xbf16>
    %c0_6 = arith.constant 0 : index
    %c0_7 = arith.constant 0 : index
    %9 = vector.load %arg5[%c0_6, %c0_7] : memref<32x128xbf16, #tpu.memory_space<vmem>>, vector<32x128xbf16>
    tpu.vector_store %arg5[%c0_6, %c0_7], %8 {strides = array<i32>} : memref<32x128xbf16, #tpu.memory_space<vmem>>, vector<32x128xbf16>,
    return
  }
  func.func @transform_0(%arg0: i32, %arg1: i32) -> (i32, i32) {
    %c0_i32 = arith.constant 0 : i32
    %c0_i32_0 = arith.constant 0 : i32
    return %arg0, %c0_i32 : i32, i32
  }
  func.func @transform_1(%arg0: i32, %arg1: i32) -> (i32, i32) {
    %c0_i32 = arith.constant 0 : i32
    %c0_i32_0 = arith.constant 0 : i32
    return %c0_i32, %arg1 : i32, i32
  }
  func.func @transform_2(%arg0: i32, %arg1: i32) -> (i32, i32) {
    %c0_i32 = arith.constant 0 : i32
    %c0_i32_0 = arith.constant 0 : i32
    return %c0_i32, %arg1 : i32, i32
  }
  func.func @transform_3(%arg0: i32, %arg1: i32) -> (i32, i32) {
    %c0_i32 = arith.constant 0 : i32
    return %arg0, %arg1 : i32, i32
  }
}

module attributes {stable_mosaic.version = 11 : i64} {
  func.func @_matmul_bias_act_kernel(%arg0: i32, %arg1: i32, %arg2: memref<128x128xbf16, #tpu.memory_space<vmem>>, %arg3: memref<128x128xbf16, #tpu.memory_space<vmem>>, %arg4: memref<1x128xf32, #tpu.memory_space<vmem>>, %arg5: memref<128x128xf32, #tpu.memory_space<vmem>>) attributes {dimension_semantics = [#tpu.dimension_semantics<parallel>, #tpu.dimension_semantics<parallel>], iteration_bounds = array<i64: 1, 1>, scalar_prefetch = 0 : i64, scratch_operands = 0 : i64, tpu.core_type = #tpu.core_type<tc>, window_params = [{transform_indices = @transform_0, window_bounds = array<i64: 128, 128>}, {transform_indices = @transform_1, window_bounds = array<i64: 128, 128>}, {transform_indices = @transform_2, window_bounds = array<i64: 1, 128>}, {transform_indices = @transform_3, window_bounds = array<i64: 128, 128>}]} {
    %c0 = arith.constant 0 : index
    %c0_0 = arith.constant 0 : index
    %0 = vector.load %arg2[%c0, %c0_0] : memref<128x128xbf16, #tpu.memory_space<vmem>>, vector<128x128xbf16>
    %c0_1 = arith.constant 0 : index
    %c0_2 = arith.constant 0 : index
    %1 = vector.load %arg3[%c0_1, %c0_2] : memref<128x128xbf16, #tpu.memory_space<vmem>>, vector<128x128xbf16>
    %cst = arith.constant dense<0.000000e+00> : vector<128x128xf32>
    %2 = tpu.matmul %0, %1, %cst {dimension_numbers = #tpu.dot_dimension_numbers<[1], [0], [0], [1], [0, 0, 1, 1], [], []>} : vector<128x128xbf16>, vector<128x128xbf16>, vector<128x128xf32> -> vector<128x128xf32>
    %c0_3 = arith.constant 0 : index
    %c0_4 = arith.constant 0 : index
    %3 = vector.load %arg4[%c0_3, %c0_4] : memref<1x128xf32, #tpu.memory_space<vmem>>, vector<1x128xf32>
    %4 = vector.broadcast %3 : vector<1x128xf32> to vector<128x128xf32>
    %5 = arith.addf %2, %4 : vector<128x128xf32>
    %6 = arith.negf %5 : vector<128x128xf32>
    %7 = math.exp %6 : vector<128x128xf32>
    %cst_5 = arith.constant 1.000000e+00 : f32
    %8 = vector.broadcast %cst_5 : f32 to vector<128x128xf32>
    %9 = arith.addf %8, %7 : vector<128x128xf32>
    %10 = arith.divf %8, %9 : vector<128x128xf32>
    %c0_6 = arith.constant 0 : index
    %c0_7 = arith.constant 0 : index
    %11 = vector.load %arg5[%c0_6, %c0_7] : memref<128x128xf32, #tpu.memory_space<vmem>>, vector<128x128xf32>
    tpu.vector_store %arg5[%c0_6, %c0_7], %10 {strides = array<i32>} : memref<128x128xf32, #tpu.memory_space<vmem>>, vector<128x128xf32>,
    return
  }
  func.func @transform_0(%arg0: i32, %arg1: i32) -> (i32, i32) {
    %c0_i32 = arith.constant 0 : i32
    %c0_i32_0 = arith.constant 0 : i32
    return %arg0, %c0_i32 : i32, i32
  }
  func.func @transform_1(%arg0: i32, %arg1: i32) -> (i32, i32) {
    %c0_i32 = arith.constant 0 : i32
    %c0_i32_0 = arith.constant 0 : i32
    return %c0_i32, %arg1 : i32, i32
  }
  func.func @transform_2(%arg0: i32, %arg1: i32) -> (i32, i32) {
    %c0_i32 = arith.constant 0 : i32
    %c0_i32_0 = arith.constant 0 : i32
    return %c0_i32, %arg1 : i32, i32
  }
  func.func @transform_3(%arg0: i32, %arg1: i32) -> (i32, i32) {
    %c0_i32 = arith.constant 0 : i32
    return %arg0, %arg1 : i32, i32
  }
}

</mosaic_0001>

<bundles_post_ra>
// kernel: autoencoder_forward.8
= control target key start
LH: loop header
LB: loop body
LE: loop exit
PB: predicated region body
PF: predicated region fallthrough
CT: control target
= control target key end

     0   :  { %s494_s1 = inlined_call_operand.vmem [shape: bf16[128,128], index: 1, kind: input, shape index: {}]   ;;  %s495_s2 = inlined_call_operand.vmem [shape: f32[1,128], index: 2, kind: input, shape index: {}]   ;;  %s496_s0 = inlined_call_operand.vmem [shape: bf16[128,128], index: 0, kind: input, shape index: {}]   ;;  %s497_s3 = inlined_call_operand.vmem [shape: bf16[128,128], index: 3, kind: output, shape index: {}]  }
   0x1   :  { %v326_v0 = vld [vmem:[%s494_s1 + $0x38] sm:$0xff]  ;;  %v325_v1 = vld [vmem:[%s494_s1 + $0x30] sm:$0xff]  ;;  %v324_v2 = vld [vmem:[%s494_s1 + $0x28] sm:$0xff] }
   0x2   :  { %146 = vmatpush.bf16.msra.mxu0 %v326_v0  ;;  %374 = vmatpush.bf16.msra.mxu1 %v326_v0  ;;  %v323_v3 = vld [vmem:[%s494_s1 + $0x20] sm:$0xff]  ;;  %v322_v4 = vld [vmem:[%s494_s1 + $0x18] sm:$0xff]  ;;  %v321_v5 = vld [vmem:[%s494_s1 + $0x10] sm:$0xff] }
   0x3   :  { %375 = vmatpush.bf16.msra.mxu2 %v326_v0  ;;  %376 = vmatpush.bf16.msra.mxu3 %v326_v0  ;;  %v320_v6 = vld [vmem:[%s494_s1 + $0x8] sm:$0xff]  ;;  %v319_v7 = vld [vmem:[%s494_s1] sm:$0xff]  ;;  %v313_v9 = vld [vmem:[%s496_s0 + $0x10] sm:$0xff] }
   0x4   :  { %v311_v8 = vld [vmem:[%s496_s0] sm:$0xff]  ;;  %v317_v11 = vld [vmem:[%s496_s0 + $0x30] sm:$0xff]  ;;  %v312_v12 = vld [vmem:[%s496_s0 + $0x8] sm:$0xff] }
   0x5   :  { %v315_v10 = vld [vmem:[%s496_s0 + $0x20] sm:$0xff]  ;;  %v314_v13 = vld [vmem:[%s496_s0 + $0x18] sm:$0xff]  ;;  %v316_v14 = vld [vmem:[%s496_s0 + $0x28] sm:$0xff] }
   0x6   :  { %147 = vmatpush.bf16.msra.mxu0 %v325_v1  ;;  %377 = vmatpush.bf16.msra.mxu1 %v325_v1  ;;  %v318_v15 = vld [vmem:[%s496_s0 + $0x38] sm:$0xff]  ;;  %v398_v18 = vld [vmem:[%s495_s2] ss:$0 sm:$0xff] }
   0x7   :  { %378 = vmatpush.bf16.msra.mxu2 %v325_v1  ;;  %379 = vmatpush.bf16.msra.mxu3 %v325_v1 }
   0xa   :  { %148 = vmatpush.bf16.msra.mxu0 %v324_v2  ;;  %380 = vmatpush.bf16.msra.mxu1 %v324_v2 }
   0xb   :  { %381 = vmatpush.bf16.msra.mxu2 %v324_v2  ;;  %382 = vmatpush.bf16.msra.mxu3 %v324_v2 }
   0xe   :  { %149 = vmatpush.bf16.msra.mxu0 %v323_v3  ;;  %383 = vmatpush.bf16.msra.mxu1 %v323_v3 }
   0xf   :  { %384 = vmatpush.bf16.msra.mxu2 %v323_v3  ;;  %385 = vmatpush.bf16.msra.mxu3 %v323_v3 }
  0x12   :  { %150 = vmatpush.bf16.msra.mxu0 %v322_v4  ;;  %386 = vmatpush.bf16.msra.mxu1 %v322_v4 }
  0x13   :  { %387 = vmatpush.bf16.msra.mxu2 %v322_v4  ;;  %388 = vmatpush.bf16.msra.mxu3 %v322_v4 }
  0x16   :  { %151 = vmatpush.bf16.msra.mxu0 %v321_v5  ;;  %389 = vmatpush.bf16.msra.mxu1 %v321_v5 }
  0x17   :  { %390 = vmatpush.bf16.msra.mxu2 %v321_v5  ;;  %391 = vmatpush.bf16.msra.mxu3 %v321_v5 }
  0x1a   :  { %152 = vmatpush.bf16.msra.mxu0 %v320_v6  ;;  %392 = vmatpush.bf16.msra.mxu1 %v320_v6 }
  0x1b   :  { %393 = vmatpush.bf16.msra.mxu2 %v320_v6  ;;  %394 = vmatpush.bf16.msra.mxu3 %v320_v6 }
  0x1e   :  { %153 = vmatpush.bf16.msra.mxu0 %v319_v7  ;;  %395 = vmatpush.bf16.msra.mxu1 %v319_v7 }
  0x1f   :  { %396 = vmatpush.bf16.msra.mxu2 %v319_v7  ;;  %397 = vmatpush.bf16.msra.mxu3 %v319_v7 }
  0x21   :  { %154 = vmatmul.bf16.vlgmr.msra.gmra.mxu0 %v311_v8  ;;  %164 = vmatmul.bf16.vlgmr.msra.gmra.mxu1 %v313_v9 }
  0x22   :  { %174 = vmatmul.bf16.vlgmr.msra.gmra.mxu2 %v315_v10  ;;  %184 = vmatmul.bf16.vlgmr.msra.gmra.mxu3 %v317_v11 }
  0x31   :  { %159 = vmatmul.bf16.gmra.mxu0 %v312_v12  ;;  %169 = vmatmul.bf16.gmra.mxu1 %v314_v13 }
  0x32   :  { %179 = vmatmul.bf16.gmra.mxu2 %v316_v14  ;;  %189 = vmatmul.bf16.gmra.mxu3 %v318_v15 }
  0x9e   :  { %v155_v16 = vpop.f32.mrf.mxu0  ;;  %v165_v17 = vpop.f32.mrf.mxu1 }
  0x9f   :  { %v156_v19 = vadd.f32 %v398_v18, %v155_v16  ;;  %v166_v20 = vadd.f32 %v398_v18, %v165_v17 }
  0xa1   :  { %v195_v27 = vmax.f32 %v156_v19, 0.0  ;;  %v199_v28 = vmax.f32 %v166_v20, 0.0 }
  0xa5   :  { %v175_v21 = vpop.f32.mrf.mxu2  ;;  %v185_v22 = vpop.f32.mrf.mxu3 }
  0xa6   :  { %v157_v23 = vpop.f32.mrf.mxu0  ;;  %v167_v24 = vpop.f32.mrf.mxu1  ;;  %v176_v33 = vadd.f32 %v398_v18, %v175_v21  ;;  %v186_v34 = vadd.f32 %v398_v18, %v185_v22 }
  0xa7   :  { %v158_v25 = vadd.f32 %v398_v18, %v157_v23  ;;  %v168_v26 = vadd.f32 %v398_v18, %v167_v24 }
  0xa8   :  { %v203_v41 = vmax.f32 %v176_v33, 0.0  ;;  %v207_v42 = vmax.f32 %v186_v34, 0.0 }
  0xa9   :  { %v196_v29 = vmax.f32 %v158_v25, 0.0  ;;  %v200_v30 = vmax.f32 %v168_v26, 0.0 }
  0xab   :  { %v330_v31 = vpack.c.bf16 %v196_v29, %v195_v27  ;;  %v340_v32 = vpack.c.bf16 %v200_v30, %v199_v28 }
  0xad   :  { %331 = vst [vmem:[%s497_s3] sm:$0xff] %v330_v31   ;;  %v177_v35 = vpop.f32.mrf.mxu2  ;;  %v187_v36 = vpop.f32.mrf.mxu3 }
  0xae   :  { %368 = vst [vmem:[%s497_s3 + $0x10] sm:$0xff] %v340_v32   ;;  %v178_v37 = vadd.f32 %v398_v18, %v177_v35  ;;  %v188_v38 = vadd.f32 %v398_v18, %v187_v36  ;;  %v160_v39 = vpop.f32.mrf.mxu0  ;;  %v170_v40 = vpop.f32.mrf.mxu1 }
  0xaf   :  { %v161_v47 = vadd.f32 %v398_v18, %v160_v39  ;;  %v171_v48 = vadd.f32 %v398_v18, %v170_v40 }
  0xb0   :  { %v204_v43 = vmax.f32 %v178_v37, 0.0  ;;  %v208_v44 = vmax.f32 %v188_v38, 0.0 }
  0xb1   :  { %v197_v55 = vmax.f32 %v161_v47, 0.0  ;;  %v201_v56 = vmax.f32 %v171_v48, 0.0 }
  0xb2   :  { %v350_v45 = vpack.c.bf16 %v204_v43, %v203_v41  ;;  %v360_v46 = vpack.c.bf16 %v208_v44, %v207_v42 }
  0xb4   :  { %370 = vst [vmem:[%s497_s3 + $0x20] sm:$0xff] %v350_v45  }
  0xb5   :  { %372 = vst [vmem:[%s497_s3 + $0x30] sm:$0xff] %v360_v46   ;;  %v180_v49 = vpop.f32.mrf.mxu2  ;;  %v190_v50 = vpop.f32.mrf.mxu3 }
  0xb6   :  { %v162_v51 = vpop.f32.mrf.mxu0  ;;  %v172_v52 = vpop.f32.mrf.mxu1  ;;  %v181_v61 = vadd.f32 %v398_v18, %v180_v49  ;;  %v191_v62 = vadd.f32 %v398_v18, %v190_v50 }
  0xb7   :  { %v163_v53 = vadd.f32 %v398_v18, %v162_v51  ;;  %v173_v54 = vadd.f32 %v398_v18, %v172_v52 }
  0xb8   :  { %v205_v3 = vmax.f32 %v181_v61, 0.0  ;;  %v209_v4 = vmax.f32 %v191_v62, 0.0 }
  0xb9   :  { %v198_v57 = vmax.f32 %v163_v53, 0.0  ;;  %v202_v58 = vmax.f32 %v173_v54, 0.0 }
  0xbb   :  { %v335_v59 = vpack.c.bf16 %v198_v57, %v197_v55  ;;  %v345_v60 = vpack.c.bf16 %v202_v58, %v201_v56 }
  0xbd   :  { %367 = vst [vmem:[%s497_s3 + $0x8] sm:$0xff] %v335_v59   ;;  %v182_v63 = vpop.f32.mrf.mxu2  ;;  %v192_v0 = vpop.f32.mrf.mxu3 }
  0xbe   :  { %369 = vst [vmem:[%s497_s3 + $0x18] sm:$0xff] %v345_v60   ;;  %v183_v1 = vadd.f32 %v398_v18, %v182_v63  ;;  %v193_v2 = vadd.f32 %v398_v18, %v192_v0 }
  0xc0   :  { %v206_v5 = vmax.f32 %v183_v1, 0.0  ;;  %v210_v6 = vmax.f32 %v193_v2, 0.0 }
  0xc2   :  { %v355_v7 = vpack.c.bf16 %v206_v5, %v205_v3  ;;  %v365_v8 = vpack.c.bf16 %v210_v6, %v209_v4 }
  0xc4   :  { %371 = vst [vmem:[%s497_s3 + $0x28] sm:$0xff] %v355_v7  }
  0xc5   :  { %373 = vst [vmem:[%s497_s3 + $0x38] sm:$0xff] %v365_v8  }

// kernel: autoencoder_forward.9
= control target key start
LH: loop header
LB: loop body
LE: loop exit
PB: predicated region body
PF: predicated region fallthrough
CT: control target
= control target key end

     0   :  { %s630_s1 = inlined_call_operand.vmem [shape: bf16[384,128], index: 1, kind: input, shape index: {}]   ;;  %s631_s2 = inlined_call_operand.vmem [shape: f32[1,128], index: 2, kind: input, shape index: {}]   ;;  %s632_s0 = inlined_call_operand.vmem [shape: bf16[32,384], index: 0, kind: input, shape index: {}]   ;;  %s633_s3 = inlined_call_operand.vmem [shape: bf16[32,128], index: 3, kind: output, shape index: {}]  }
   0x1   :  { %v456_v0 = vld [vmem:[%s630_s1 + $0x38] sm:$0xff]  ;;  %v455_v3 = vld [vmem:[%s630_s1 + $0x30] sm:$0xff]  ;;  %v454_v6 = vld [vmem:[%s630_s1 + $0x28] sm:$0xff] }
   0x2   :  { %v464_v1 = vld [vmem:[%s630_s1 + $0x78] sm:$0xff]  ;;  %250 = vmatpush.bf16.msra.mxu0 %v456_v0  ;;  %v463_v4 = vld [vmem:[%s630_s1 + $0x70] sm:$0xff]  ;;  %484 = vmatpush.bf16.msra.mxu3 %v456_v0  ;;  %v462_v7 = vld [vmem:[%s630_s1 + $0x68] sm:$0xff] }
   0x3   :  { %v472_v2 = vld [vmem:[%s630_s1 + $0xb8] sm:$0xff]  ;;  %269 = vmatpush.bf16.msra.mxu1 %v464_v1  ;;  %v471_v5 = vld [vmem:[%s630_s1 + $0xb0] sm:$0xff]  ;;  %v470_v8 = vld [vmem:[%s630_s1 + $0xa8] sm:$0xff] }
   0x4   :  { %288 = vmatpush.bf16.msra.mxu2 %v472_v2  ;;  %v453_v9 = vld [vmem:[%s630_s1 + $0x20] sm:$0xff]  ;;  %v452_v12 = vld [vmem:[%s630_s1 + $0x18] sm:$0xff]  ;;  %v451_v15 = vld [vmem:[%s630_s1 + $0x10] sm:$0xff] }
   0x5   :  { %v461_v10 = vld [vmem:[%s630_s1 + $0x60] sm:$0xff]  ;;  %v460_v13 = vld [vmem:[%s630_s1 + $0x58] sm:$0xff]  ;;  %v459_v16 = vld [vmem:[%s630_s1 + $0x50] sm:$0xff] }
   0x6   :  { %251 = vmatpush.bf16.msra.mxu0 %v455_v3  ;;  %485 = vmatpush.bf16.msra.mxu3 %v455_v3  ;;  %v469_v11 = vld [vmem:[%s630_s1 + $0xa0] sm:$0xff]  ;;  %v468_v14 = vld [vmem:[%s630_s1 + $0x98] sm:$0xff]  ;;  %v467_v17 = vld [vmem:[%s630_s1 + $0x90] sm:$0xff] }
   0x7   :  { %270 = vmatpush.bf16.msra.mxu1 %v463_v4  ;;  %v450_v18 = vld [vmem:[%s630_s1 + $0x8] sm:$0xff]  ;;  %v449_v21 = vld [vmem:[%s630_s1] sm:$0xff]  ;;  %v327_v27 = vld [vmem:[%s632_s0 + $0xc] sm:$0xf0] }
   0x8   :  { %289 = vmatpush.bf16.msra.mxu2 %v471_v5  ;;  %v458_v19 = vld [vmem:[%s630_s1 + $0x48] sm:$0xff]  ;;  %v457_v22 = vld [vmem:[%s630_s1 + $0x40] sm:$0xff]  ;;  %v445_v29 = vld [vmem:[%s632_s0 + $0x10] sm:$0xf0] }
   0x9   :  { %v466_v20 = vld [vmem:[%s630_s1 + $0x88] sm:$0xff]  ;;  %v465_v23 = vld [vmem:[%s630_s1 + $0x80] sm:$0xff]  ;;  %v337_v30 = vld [vmem:[%s632_s0 + $0x18] sm:$0xf] }
   0xa   :  { %252 = vmatpush.bf16.msra.mxu0 %v454_v6  ;;  %486 = vmatpush.bf16.msra.mxu3 %v454_v6  ;;  %v325_v24 = vld [vmem:[%s632_s0] sm:$0xf]  ;;  %v444_v25 = vld [vmem:[%s632_s0 + $0x8] sm:$0xf0]  ;;  %v443_v26 = vld [vmem:[%s632_s0 + $0x4] sm:$0xf] }
   0xb   :  { %271 = vmatpush.bf16.msra.mxu1 %v462_v7  ;;  %v333_v28 = vld [vmem:[%s632_s0 + $0x8] sm:$0xf]  ;;  %v447_v31 = vld [vmem:[%s632_s0 + $0x20] sm:$0xf0]  ;;  %v326_v32 = vor.u32 %v444_v25, %v325_v24  ;;  %v330_v33 = vor.u32 %v443_v26, %v327_v27  ;;  %v446_v36 = vld [vmem:[%s632_s0 + $0x1c] sm:$0xf] }
   0xc   :  { %290 = vmatpush.bf16.msra.mxu2 %v470_v8  ;;  %v334_v34 = vor.u32 %v445_v29, %v333_v28  ;;  %v338_v35 = vor.u32 %v447_v31, %v337_v30  ;;  %v339_v37 = vld [vmem:[%s632_s0 + $0x24] sm:$0xf0]  ;;  %v345_v38 = vld [vmem:[%s632_s0 + $0x20] sm:$0xf]  ;;  %v448_v39 = vld [vmem:[%s632_s0 + $0x28] sm:$0xf0] }
   0xd   :  { %v342_v40 = vor.u32 %v446_v36, %v339_v37  ;;  %v346_v41 = vor.u32 %v448_v39, %v345_v38  ;;  %v492_v44 = vld [vmem:[%s631_s2] ss:$0 sm:$0xff] }
   0xe   :  { %253 = vmatpush.bf16.msra.mxu0 %v453_v9  ;;  %487 = vmatpush.bf16.msra.mxu3 %v453_v9 }
   0xf   :  { %272 = vmatpush.bf16.msra.mxu1 %v461_v10 }
  0x10   :  { %291 = vmatpush.bf16.msra.mxu2 %v469_v11 }
  0x12   :  { %254 = vmatpush.bf16.msra.mxu0 %v452_v12  ;;  %488 = vmatpush.bf16.msra.mxu3 %v452_v12 }
  0x13   :  { %273 = vmatpush.bf16.msra.mxu1 %v460_v13 }
  0x14   :  { %292 = vmatpush.bf16.msra.mxu2 %v468_v14 }
  0x16   :  { %255 = vmatpush.bf16.msra.mxu0 %v451_v15  ;;  %489 = vmatpush.bf16.msra.mxu3 %v451_v15 }
  0x17   :  { %274 = vmatpush.bf16.msra.mxu1 %v459_v16 }
  0x18   :  { %293 = vmatpush.bf16.msra.mxu2 %v467_v17 }
  0x1a   :  { %256 = vmatpush.bf16.msra.mxu0 %v450_v18  ;;  %490 = vmatpush.bf16.msra.mxu3 %v450_v18 }
  0x1b   :  { %275 = vmatpush.bf16.msra.mxu1 %v458_v19 }
  0x1c   :  { %294 = vmatpush.bf16.msra.mxu2 %v466_v20 }
  0x1e   :  { %257 = vmatpush.bf16.msra.mxu0 %v449_v21  ;;  %491 = vmatpush.bf16.msra.mxu3 %v449_v21 }
  0x1f   :  { %276 = vmatpush.bf16.msra.mxu1 %v457_v22 }
  0x20   :  { %295 = vmatpush.bf16.msra.mxu2 %v465_v23 }
  0x21   :  { %258 = vmatmul.bf16.vlgmr.msra.gmra.mxu0 %v326_v32  ;;  %263 = vmatmul.bf16.vlgmr.msra.gmra.mxu3 %v338_v35 }
  0x22   :  { %277 = vmatmul.bf16.vlgmr.msra.gmra.mxu1 %v330_v33 }
  0x23   :  { %296 = vmatmul.bf16.vlgmr.msra.gmra.mxu2 %v334_v34 }
  0x32   :  { %282 = vmatmul.bf16.gmra.mxu1 %v342_v40 }
  0x33   :  { %301 = vmatmul.bf16.gmra.mxu2 %v346_v41 }
  0x9e   :  { %v259_v42 = vpop.f32.mrf.mxu0 }
  0x9f   :  { %v278_v43 = vpop.f32.mrf.mxu1  ;;  %v260_v45 = vadd.f32 %v492_v44, %v259_v42 }
  0xa1   :  { %v279_v49 = vadd.f32 %v278_v43, %v260_v45 }
  0xa4   :  { %v264_v53 = vpop.f32.mrf.mxu3 }
  0xa5   :  { %v265_v60 = vadd.f32 %v492_v44, %v264_v53 }
  0xa6   :  { %v297_v46 = vpop.f32.mrf.mxu2  ;;  %v261_v47 = vpop.f32.mrf.mxu0 }
  0xa7   :  { %v280_v48 = vpop.f32.mrf.mxu1  ;;  %v262_v50 = vadd.f32 %v492_v44, %v261_v47  ;;  %v298_v51 = vadd.f32 %v297_v46, %v279_v49 }
  0xa9   :  { %v281_v52 = vadd.f32 %v280_v48, %v262_v50  ;;  %v307_v57 = vmax.f32 %v298_v51, 0.0 }
  0xac   :  { %v266_v62 = vpop.f32.mrf.mxu3 }
  0xad   :  { %v267_v1 = vadd.f32 %v492_v44, %v266_v62 }
  0xae   :  { %v299_v54 = vpop.f32.mrf.mxu2 }
  0xaf   :  { %v300_v55 = vadd.f32 %v299_v54, %v281_v52  ;;  %v283_v56 = vpop.f32.mrf.mxu1 }
  0xb0   :  { %v284_v63 = vadd.f32 %v283_v56, %v265_v60 }
  0xb1   :  { %v308_v58 = vmax.f32 %v300_v55, 0.0 }
  0xb3   :  { %v476_v59 = vpack.c.bf16 %v308_v58, %v307_v57 }
  0xb5   :  { %477 = vst [vmem:[%s633_s3] sm:$0xff] %v476_v59  }
  0xb6   :  { %v302_v61 = vpop.f32.mrf.mxu2 }
  0xb7   :  { %v285_v0 = vpop.f32.mrf.mxu1  ;;  %v303_v2 = vadd.f32 %v302_v61, %v284_v63 }
  0xb8   :  { %v286_v3 = vadd.f32 %v285_v0, %v267_v1 }
  0xb9   :  { %v309_v6 = vmax.f32 %v303_v2, 0.0 }
  0xbe   :  { %v304_v4 = vpop.f32.mrf.mxu2 }
  0xbf   :  { %v305_v5 = vadd.f32 %v304_v4, %v286_v3 }
  0xc1   :  { %v310_v7 = vmax.f32 %v305_v5, 0.0 }
  0xc3   :  { %v481_v8 = vpack.c.bf16 %v310_v7, %v309_v6 }
  0xc5   :  { %483 = vst [vmem:[%s633_s3 + $0x8] sm:$0xff] %v481_v8  }

// kernel: autoencoder_forward.10
= control target key start
LH: loop header
LB: loop body
LE: loop exit
PB: predicated region body
PF: predicated region fallthrough
CT: control target
= control target key end

     0   :  { %s857_s1 = inlined_call_operand.vmem [shape: bf16[640,128], index: 1, kind: input, shape index: {}]   ;;  %s858_s2 = inlined_call_operand.vmem [shape: f32[1,128], index: 2, kind: input, shape index: {}]   ;;  %s859_s0 = inlined_call_operand.vmem [shape: bf16[16,640], index: 0, kind: input, shape index: {}]   ;;  %s860_s3 = inlined_call_operand.vmem [shape: bf16[16,128], index: 3, kind: output, shape index: {}]  }
   0x1   :  { %v642_v0 = vld [vmem:[%s857_s1 + $0x38] sm:$0xff]  ;;  %v641_v4 = vld [vmem:[%s857_s1 + $0x30] sm:$0xff]  ;;  %v640_v8 = vld [vmem:[%s857_s1 + $0x28] sm:$0xff] }
   0x2   :  { %v658_v1 = vld [vmem:[%s857_s1 + $0xb8] sm:$0xff]  ;;  %370 = vmatpush.bf16.msra.mxu0 %v642_v0  ;;  %v657_v5 = vld [vmem:[%s857_s1 + $0xb0] sm:$0xff]  ;;  %v656_v9 = vld [vmem:[%s857_s1 + $0xa8] sm:$0xff] }
   0x3   :  { %v666_v2 = vld [vmem:[%s857_s1 + $0xf8] sm:$0xff]  ;;  %398 = vmatpush.bf16.msra.mxu2 %v658_v1  ;;  %v665_v6 = vld [vmem:[%s857_s1 + $0xf0] sm:$0xff]  ;;  %v664_v10 = vld [vmem:[%s857_s1 + $0xe8] sm:$0xff] }
   0x4   :  { %v650_v3 = vld [vmem:[%s857_s1 + $0x78] sm:$0xff]  ;;  %412 = vmatpush.bf16.msra.mxu3 %v666_v2  ;;  %v649_v7 = vld [vmem:[%s857_s1 + $0x70] sm:$0xff]  ;;  %v648_v11 = vld [vmem:[%s857_s1 + $0x68] sm:$0xff] }
   0x5   :  { %384 = vmatpush.bf16.msra.mxu1 %v650_v3  ;;  %v639_v12 = vld [vmem:[%s857_s1 + $0x20] sm:$0xff]  ;;  %v638_v16 = vld [vmem:[%s857_s1 + $0x18] sm:$0xff]  ;;  %v637_v20 = vld [vmem:[%s857_s1 + $0x10] sm:$0xff] }
   0x6   :  { %371 = vmatpush.bf16.msra.mxu0 %v641_v4  ;;  %v655_v13 = vld [vmem:[%s857_s1 + $0xa0] sm:$0xff]  ;;  %v654_v17 = vld [vmem:[%s857_s1 + $0x98] sm:$0xff]  ;;  %v653_v21 = vld [vmem:[%s857_s1 + $0x90] sm:$0xff] }
   0x7   :  { %399 = vmatpush.bf16.msra.mxu2 %v657_v5  ;;  %v663_v14 = vld [vmem:[%s857_s1 + $0xe0] sm:$0xff]  ;;  %v662_v18 = vld [vmem:[%s857_s1 + $0xd8] sm:$0xff]  ;;  %v661_v22 = vld [vmem:[%s857_s1 + $0xd0] sm:$0xff] }
   0x8   :  { %413 = vmatpush.bf16.msra.mxu3 %v665_v6  ;;  %v647_v15 = vld [vmem:[%s857_s1 + $0x60] sm:$0xff]  ;;  %v646_v19 = vld [vmem:[%s857_s1 + $0x58] sm:$0xff]  ;;  %v645_v23 = vld [vmem:[%s857_s1 + $0x50] sm:$0xff] }
   0x9   :  { %385 = vmatpush.bf16.msra.mxu1 %v649_v7  ;;  %v636_v24 = vld [vmem:[%s857_s1 + $0x8] sm:$0xff]  ;;  %v635_v28 = vld [vmem:[%s857_s1] sm:$0xff]  ;;  %v674_v29 = vld [vmem:[%s857_s1 + $0x138] sm:$0xff] }
   0xa   :  { %372 = vmatpush.bf16.msra.mxu0 %v640_v8  ;;  %v652_v25 = vld [vmem:[%s857_s1 + $0x88] sm:$0xff]  ;;  %v651_v30 = vld [vmem:[%s857_s1 + $0x80] sm:$0xff]  ;;  %v633_v32 = vld [vmem:[%s859_s0 + $0x18] sm:$0xf0] }
   0xb   :  { %400 = vmatpush.bf16.msra.mxu2 %v656_v9  ;;  %v660_v26 = vld [vmem:[%s857_s1 + $0xc8] sm:$0xff]  ;;  %v452_v33 = vld [vmem:[%s859_s0] sm:$0xf]  ;;  %v632_v34 = vld [vmem:[%s859_s0 + $0x10] sm:$0xf0] }
   0xc   :  { %414 = vmatpush.bf16.msra.mxu3 %v664_v10  ;;  %v644_v27 = vld [vmem:[%s857_s1 + $0x48] sm:$0xff]  ;;  %v659_v35 = vld [vmem:[%s857_s1 + $0xc0] sm:$0xff]  ;;  %v454_v40 = vld [vmem:[%s859_s0 + $0x14] sm:$0xf0]  ;;  %v453_v42 = vor.u32 %v632_v34, %v452_v33 }
   0xd   :  { %386 = vmatpush.bf16.msra.mxu1 %v648_v11  ;;  %v460_v31 = vld [vmem:[%s859_s0 + $0x8] sm:$0xf]  ;;  %v631_v36 = vld [vmem:[%s859_s0 + $0xc] sm:$0xf]  ;;  %v462_v37 = vld [vmem:[%s859_s0 + $0x1c] sm:$0xf0] }
   0xe   :  { %373 = vmatpush.bf16.msra.mxu0 %v639_v12  ;;  %v643_v38 = vld [vmem:[%s857_s1 + $0x40] sm:$0xff]  ;;  %v461_v41 = vor.u32 %v633_v32, %v460_v31  ;;  %v465_v43 = vor.u32 %v631_v36, %v462_v37  ;;  %v673_v44 = vld [vmem:[%s857_s1 + $0x130] sm:$0xff]  ;;  %v672_v46 = vld [vmem:[%s857_s1 + $0x128] sm:$0xff] }
   0xf   :  { %401 = vmatpush.bf16.msra.mxu2 %v655_v13  ;;  %v630_v39 = vld [vmem:[%s859_s0 + $0x4] sm:$0xf]  ;;  %v670_v48 = vld [vmem:[%s857_s1 + $0x118] sm:$0xff]  ;;  %v669_v49 = vld [vmem:[%s857_s1 + $0x110] sm:$0xff] }
  0x10   :  { %415 = vmatpush.bf16.msra.mxu3 %v663_v14  ;;  %v457_v45 = vor.u32 %v630_v39, %v454_v40  ;;  %v671_v47 = vld [vmem:[%s857_s1 + $0x120] sm:$0xff]  ;;  %v668_v50 = vld [vmem:[%s857_s1 + $0x108] sm:$0xff]  ;;  %v468_v52 = vld [vmem:[%s859_s0 + $0x10] sm:$0xf] }
  0x11   :  { %387 = vmatpush.bf16.msra.mxu1 %v647_v15  ;;  %v667_v51 = vld [vmem:[%s857_s1 + $0x100] sm:$0xff] }
  0x12   :  { %374 = vmatpush.bf16.msra.mxu0 %v638_v16  ;;  %v634_v53 = vld [vmem:[%s859_s0 + $0x20] sm:$0xf0]  ;;  %v680_v57 = vld [vmem:[%s858_s2] ss:$0 sm:$0xff] }
  0x13   :  { %402 = vmatpush.bf16.msra.mxu2 %v654_v17  ;;  %v469_v54 = vor.u32 %v634_v53, %v468_v52 }
  0x14   :  { %416 = vmatpush.bf16.msra.mxu3 %v662_v18 }
  0x15   :  { %388 = vmatpush.bf16.msra.mxu1 %v646_v19 }
  0x16   :  { %375 = vmatpush.bf16.msra.mxu0 %v637_v20 }
  0x17   :  { %403 = vmatpush.bf16.msra.mxu2 %v653_v21 }
  0x18   :  { %417 = vmatpush.bf16.msra.mxu3 %v661_v22 }
  0x19   :  { %389 = vmatpush.bf16.msra.mxu1 %v645_v23 }
  0x1a   :  { %376 = vmatpush.bf16.msra.mxu0 %v636_v24 }
  0x1b   :  { %404 = vmatpush.bf16.msra.mxu2 %v652_v25 }
  0x1c   :  { %418 = vmatpush.bf16.msra.mxu3 %v660_v26 }
  0x1d   :  { %390 = vmatpush.bf16.msra.mxu1 %v644_v27 }
  0x1e   :  { %377 = vmatpush.bf16.msra.mxu0 %v635_v28 }
  0x1f   :  { %405 = vmatpush.bf16.msra.mxu2 %v651_v30 }
  0x20   :  { %419 = vmatpush.bf16.msra.mxu3 %v659_v35 }
  0x21   :  { %391 = vmatpush.bf16.msra.mxu1 %v643_v38  ;;  %378 = vmatmul.bf16.vlgmr.msra.gmra.mxu0 %v453_v42 }
  0x22   :  { %426 = vmatpush.bf16.msrb.mxu0 %v674_v29  ;;  %406 = vmatmul.bf16.vlgmr.msra.gmra.mxu2 %v461_v41 }
  0x23   :  { %420 = vmatmul.bf16.vlgmr.msra.gmra.mxu3 %v465_v43 }
  0x24   :  { %392 = vmatmul.bf16.vlgmr.msra.gmra.mxu1 %v457_v45 }
  0x26   :  { %427 = vmatpush.bf16.msrb.mxu0 %v673_v44 }
  0x2a   :  { %428 = vmatpush.bf16.msrb.mxu0 %v672_v46 }
  0x2e   :  { %429 = vmatpush.bf16.msrb.mxu0 %v671_v47 }
  0x32   :  { %430 = vmatpush.bf16.msrb.mxu0 %v670_v48 }
  0x36   :  { %431 = vmatpush.bf16.msrb.mxu0 %v669_v49 }
  0x3a   :  { %432 = vmatpush.bf16.msrb.mxu0 %v668_v50 }
  0x3e   :  { %433 = vmatpush.bf16.msrb.mxu0 %v667_v51 }
  0x41   :  { %434 = vmatmul.bf16.vlgmr.msrb.gmra.mxu0 %v469_v54 }
  0x9e   :  { %v379_v55 = vpop.f32.mrf.mxu0 }
  0x9f   :  { %v380_v60 = vadd.f32 %v680_v57, %v379_v55 }
  0xa1   :  { %v393_v56 = vpop.f32.mrf.mxu1 }
  0xa2   :  { %v394_v0 = vadd.f32 %v393_v56, %v380_v60 }
  0xa5   :  { %v407_v58 = vpop.f32.mrf.mxu2 }
  0xa6   :  { %v381_v59 = vpop.f32.mrf.mxu0  ;;  %v421_v61 = vpop.f32.mrf.mxu3  ;;  %v408_v4 = vadd.f32 %v407_v58, %v394_v0 }
  0xa7   :  { %v382_v62 = vadd.f32 %v680_v57, %v381_v59 }
  0xa8   :  { %v422_v7 = vadd.f32 %v421_v61, %v408_v4 }
  0xa9   :  { %v395_v63 = vpop.f32.mrf.mxu1 }
  0xaa   :  { %v396_v1 = vadd.f32 %v395_v63, %v382_v62 }
  0xad   :  { %v409_v2 = vpop.f32.mrf.mxu2 }
  0xae   :  { %v410_v5 = vadd.f32 %v409_v2, %v396_v1  ;;  %v423_v6 = vpop.f32.mrf.mxu3 }
  0xb0   :  { %v424_v8 = vadd.f32 %v423_v6, %v410_v5 }
  0xbe   :  { %v435_v3 = vpop.f32.mrf.mxu0 }
  0xbf   :  { %v436_v9 = vadd.f32 %v435_v3, %v422_v7 }
  0xc1   :  { %v440_v12 = vmax.f32 %v436_v9, 0.0 }
  0xc6   :  { %v437_v10 = vpop.f32.mrf.mxu0 }
  0xc7   :  { %v438_v11 = vadd.f32 %v437_v10, %v424_v8 }
  0xc9   :  { %v441_v13 = vmax.f32 %v438_v11, 0.0 }
  0xcb   :  { %v678_v14 = vpack.c.bf16 %v441_v13, %v440_v12 }
  0xcd   :  { %679 = vst [vmem:[%s860_s3] sm:$0xff] %v678_v14  }

// kernel: autoencoder_forward.13
= control target key start
LH: loop header
LB: loop body
LE: loop exit
PB: predicated region body
PF: predicated region fallthrough
CT: control target
= control target key end

     0   :  { %s1345_s1 = inlined_call_operand.vmem [shape: bf16[512,256], index: 1, kind: input, shape index: {}]   ;;  %s1346_s0 = inlined_call_operand.vmem [shape: bf16[16,512], index: 0, kind: input, shape index: {}]   ;;  %s1347_s2 = inlined_call_operand.vmem [shape: f32[1,256], index: 2, kind: input, shape index: {}]   ;;  %s1348_s3 = inlined_call_operand.vmem [shape: bf16[16,256], index: 3, kind: output, shape index: {}]  }
   0x1   :  { %v626_v0 = vld [vmem:[%s1345_s1 + $0x70] sm:$0xf]  ;;  %v843_v1 = vld [vmem:[%s1345_s1 + $0x74] sm:$0xf0]  ;;  %v618_v11 = vld [vmem:[%s1345_s1 + $0x60] sm:$0xf] }
   0x2   :  { %v690_v2 = vld [vmem:[%s1345_s1 + $0xf0] sm:$0xf]  ;;  %v627_v3 = vor.u32 %v843_v1, %v626_v0  ;;  %v859_v4 = vld [vmem:[%s1345_s1 + $0xf4] sm:$0xf0]  ;;  %v841_v13 = vld [vmem:[%s1345_s1 + $0x64] sm:$0xf0] }
   0x3   :  { %v754_v5 = vld [vmem:[%s1345_s1 + $0x170] sm:$0xf]  ;;  %v875_v6 = vld [vmem:[%s1345_s1 + $0x174] sm:$0xf0]  ;;  %v691_v7 = vor.u32 %v859_v4, %v690_v2  ;;  %v682_v14 = vld [vmem:[%s1345_s1 + $0xe0] sm:$0xf]  ;;  %v619_v16 = vor.u32 %v841_v13, %v618_v11 }
   0x4   :  { %v755_v8 = vor.u32 %v875_v6, %v754_v5  ;;  %v818_v9 = vld [vmem:[%s1345_s1 + $0x1f0] sm:$0xf]  ;;  %v891_v10 = vld [vmem:[%s1345_s1 + $0x1f4] sm:$0xf0]  ;;  %428 = vmatpush.bf16.msra.mxu0 %v627_v3  ;;  %v857_v15 = vld [vmem:[%s1345_s1 + $0xe4] sm:$0xf0] }
   0x5   :  { %v819_v12 = vor.u32 %v891_v10, %v818_v9  ;;  %442 = vmatpush.bf16.msra.mxu1 %v691_v7  ;;  %v683_v17 = vor.u32 %v857_v15, %v682_v14  ;;  %v746_v18 = vld [vmem:[%s1345_s1 + $0x160] sm:$0xf]  ;;  %v873_v19 = vld [vmem:[%s1345_s1 + $0x164] sm:$0xf0]  ;;  %v610_v23 = vld [vmem:[%s1345_s1 + $0x50] sm:$0xf] }
   0x6   :  { %456 = vmatpush.bf16.msra.mxu2 %v755_v8  ;;  %v810_v20 = vld [vmem:[%s1345_s1 + $0x1e0] sm:$0xf]  ;;  %v747_v21 = vor.u32 %v873_v19, %v746_v18  ;;  %v889_v22 = vld [vmem:[%s1345_s1 + $0x1e4] sm:$0xf0]  ;;  %v839_v24 = vld [vmem:[%s1345_s1 + $0x54] sm:$0xf0] }
   0x7   :  { %470 = vmatpush.bf16.msra.mxu3 %v819_v12  ;;  %v811_v25 = vor.u32 %v889_v22, %v810_v20  ;;  %v674_v26 = vld [vmem:[%s1345_s1 + $0xd0] sm:$0xf]  ;;  %v855_v27 = vld [vmem:[%s1345_s1 + $0xd4] sm:$0xf0]  ;;  %v611_v29 = vor.u32 %v839_v24, %v610_v23  ;;  %v602_v35 = vld [vmem:[%s1345_s1 + $0x40] sm:$0xf] }
   0x8   :  { %v738_v28 = vld [vmem:[%s1345_s1 + $0x150] sm:$0xf]  ;;  %429 = vmatpush.bf16.msra.mxu0 %v619_v16  ;;  %v871_v30 = vld [vmem:[%s1345_s1 + $0x154] sm:$0xf0]  ;;  %v675_v33 = vor.u32 %v855_v27, %v674_v26  ;;  %v837_v36 = vld [vmem:[%s1345_s1 + $0x44] sm:$0xf0] }
   0x9   :  { %v802_v31 = vld [vmem:[%s1345_s1 + $0x1d0] sm:$0xf]  ;;  %v887_v32 = vld [vmem:[%s1345_s1 + $0x1d4] sm:$0xf0]  ;;  %443 = vmatpush.bf16.msra.mxu1 %v683_v17  ;;  %v739_v34 = vor.u32 %v871_v30, %v738_v28  ;;  %v666_v37 = vld [vmem:[%s1345_s1 + $0xc0] sm:$0xf]  ;;  %v603_v44 = vor.u32 %v837_v36, %v602_v35 }
   0xa   :  { %457 = vmatpush.bf16.msra.mxu2 %v747_v21  ;;  %v803_v38 = vor.u32 %v887_v32, %v802_v31  ;;  %v853_v39 = vld [vmem:[%s1345_s1 + $0xc4] sm:$0xf0]  ;;  %v730_v40 = vld [vmem:[%s1345_s1 + $0x140] sm:$0xf]  ;;  %v594_v47 = vld [vmem:[%s1345_s1 + $0x30] sm:$0xf] }
   0xb   :  { %471 = vmatpush.bf16.msra.mxu3 %v811_v25  ;;  %v869_v41 = vld [vmem:[%s1345_s1 + $0x144] sm:$0xf0]  ;;  %v794_v42 = vld [vmem:[%s1345_s1 + $0x1c0] sm:$0xf]  ;;  %v667_v45 = vor.u32 %v853_v39, %v666_v37  ;;  %v835_v48 = vld [vmem:[%s1345_s1 + $0x34] sm:$0xf0] }
   0xc   :  { %v885_v43 = vld [vmem:[%s1345_s1 + $0x1c4] sm:$0xf0]  ;;  %430 = vmatpush.bf16.msra.mxu0 %v611_v29  ;;  %v731_v46 = vor.u32 %v869_v41, %v730_v40  ;;  %v658_v49 = vld [vmem:[%s1345_s1 + $0xb0] sm:$0xf]  ;;  %v851_v51 = vld [vmem:[%s1345_s1 + $0xb4] sm:$0xf0]  ;;  %v595_v56 = vor.u32 %v835_v48, %v594_v47 }
   0xd   :  { %444 = vmatpush.bf16.msra.mxu1 %v675_v33  ;;  %v795_v50 = vor.u32 %v885_v43, %v794_v42  ;;  %v722_v52 = vld [vmem:[%s1345_s1 + $0x130] sm:$0xf]  ;;  %v867_v53 = vld [vmem:[%s1345_s1 + $0x134] sm:$0xf0]  ;;  %v659_v57 = vor.u32 %v851_v51, %v658_v49  ;;  %v586_v59 = vld [vmem:[%s1345_s1 + $0x20] sm:$0xf] }
   0xe   :  { %458 = vmatpush.bf16.msra.mxu2 %v739_v34  ;;  %v786_v54 = vld [vmem:[%s1345_s1 + $0x1b0] sm:$0xf]  ;;  %v883_v55 = vld [vmem:[%s1345_s1 + $0x1b4] sm:$0xf0]  ;;  %v723_v58 = vor.u32 %v867_v53, %v722_v52  ;;  %v833_v60 = vld [vmem:[%s1345_s1 + $0x24] sm:$0xf0] }
   0xf   :  { %472 = vmatpush.bf16.msra.mxu3 %v803_v38  ;;  %v650_v61 = vld [vmem:[%s1345_s1 + $0xa0] sm:$0xf]  ;;  %v787_v62 = vor.u32 %v883_v55, %v786_v54  ;;  %v849_v63 = vld [vmem:[%s1345_s1 + $0xa4] sm:$0xf0]  ;;  %v587_v4 = vor.u32 %v833_v60, %v586_v59  ;;  %v578_v7 = vld [vmem:[%s1345_s1 + $0x10] sm:$0xf] }
  0x10   :  { %431 = vmatpush.bf16.msra.mxu0 %v603_v44  ;;  %v714_v0 = vld [vmem:[%s1345_s1 + $0x120] sm:$0xf]  ;;  %v865_v1 = vld [vmem:[%s1345_s1 + $0x124] sm:$0xf0]  ;;  %v651_v5 = vor.u32 %v849_v63, %v650_v61  ;;  %v831_v8 = vld [vmem:[%s1345_s1 + $0x14] sm:$0xf0] }
  0x11   :  { %445 = vmatpush.bf16.msra.mxu1 %v667_v45  ;;  %v778_v2 = vld [vmem:[%s1345_s1 + $0x1a0] sm:$0xf]  ;;  %v881_v3 = vld [vmem:[%s1345_s1 + $0x1a4] sm:$0xf0]  ;;  %v715_v6 = vor.u32 %v865_v1, %v714_v0  ;;  %v642_v9 = vld [vmem:[%s1345_s1 + $0x90] sm:$0xf]  ;;  %v579_v17 = vor.u32 %v831_v8, %v578_v7 }
  0x12   :  { %459 = vmatpush.bf16.msra.mxu2 %v731_v46  ;;  %v779_v10 = vor.u32 %v881_v3, %v778_v2  ;;  %v847_v11 = vld [vmem:[%s1345_s1 + $0x94] sm:$0xf0]  ;;  %v706_v12 = vld [vmem:[%s1345_s1 + $0x110] sm:$0xf]  ;;  %v570_v16 = vld [vmem:[%s1345_s1] sm:$0xf] }
  0x13   :  { %473 = vmatpush.bf16.msra.mxu3 %v795_v50  ;;  %v863_v13 = vld [vmem:[%s1345_s1 + $0x114] sm:$0xf0]  ;;  %v770_v14 = vld [vmem:[%s1345_s1 + $0x190] sm:$0xf]  ;;  %v829_v18 = vld [vmem:[%s1345_s1 + $0x4] sm:$0xf0]  ;;  %v643_v21 = vor.u32 %v847_v11, %v642_v9 }
  0x14   :  { %432 = vmatpush.bf16.msra.mxu0 %v595_v56  ;;  %v879_v15 = vld [vmem:[%s1345_s1 + $0x194] sm:$0xf0]  ;;  %v634_v19 = vld [vmem:[%s1345_s1 + $0x80] sm:$0xf]  ;;  %v845_v20 = vld [vmem:[%s1345_s1 + $0x84] sm:$0xf0]  ;;  %v707_v22 = vor.u32 %v863_v13, %v706_v12  ;;  %v571_v33 = vor.u32 %v829_v18, %v570_v16 }
  0x15   :  { %446 = vmatpush.bf16.msra.mxu1 %v659_v57  ;;  %v698_v23 = vld [vmem:[%s1345_s1 + $0x100] sm:$0xf]  ;;  %v861_v24 = vld [vmem:[%s1345_s1 + $0x104] sm:$0xf0]  ;;  %v771_v26 = vor.u32 %v879_v15, %v770_v14  ;;  %v842_v28 = vld [vmem:[%s1345_s1 + $0x74] sm:$0xf]  ;;  %v635_v37 = vor.u32 %v845_v20, %v634_v19 }
  0x16   :  { %460 = vmatpush.bf16.msra.mxu2 %v723_v58  ;;  %v762_v25 = vld [vmem:[%s1345_s1 + $0x180] sm:$0xf]  ;;  %v877_v27 = vld [vmem:[%s1345_s1 + $0x184] sm:$0xf0]  ;;  %v628_v29 = vld [vmem:[%s1345_s1 + $0x78] sm:$0xf0]  ;;  %v699_v38 = vor.u32 %v861_v24, %v698_v23 }
  0x17   :  { %474 = vmatpush.bf16.msra.mxu3 %v787_v62  ;;  %v858_v30 = vld [vmem:[%s1345_s1 + $0xf4] sm:$0xf]  ;;  %v692_v31 = vld [vmem:[%s1345_s1 + $0xf8] sm:$0xf0]  ;;  %v840_v39 = vld [vmem:[%s1345_s1 + $0x64] sm:$0xf]  ;;  %v763_v43 = vor.u32 %v877_v27, %v762_v25  ;;  %v631_v44 = vor.u32 %v842_v28, %v628_v29 }
  0x18   :  { %433 = vmatpush.bf16.msra.mxu0 %v587_v4  ;;  %v874_v32 = vld [vmem:[%s1345_s1 + $0x174] sm:$0xf]  ;;  %v756_v34 = vld [vmem:[%s1345_s1 + $0x178] sm:$0xf0]  ;;  %v620_v40 = vld [vmem:[%s1345_s1 + $0x68] sm:$0xf0]  ;;  %v695_v49 = vor.u32 %v858_v30, %v692_v31 }
  0x19   :  { %447 = vmatpush.bf16.msra.mxu1 %v651_v5  ;;  %v890_v35 = vld [vmem:[%s1345_s1 + $0x1f4] sm:$0xf]  ;;  %v820_v36 = vld [vmem:[%s1345_s1 + $0x1f8] sm:$0xf0]  ;;  %v562_v41 = vld [vmem:[%s1346_s0 + $0x8] sm:$0xf]  ;;  %v759_v50 = vor.u32 %v874_v32, %v756_v34  ;;  %v623_v63 = vor.u32 %v840_v39, %v620_v40 }
  0x1a   :  { %461 = vmatpush.bf16.msra.mxu2 %v715_v6  ;;  %v827_v42 = vld [vmem:[%s1346_s0 + $0x14] sm:$0xf0]  ;;  %v856_v45 = vld [vmem:[%s1345_s1 + $0xe4] sm:$0xf]  ;;  %v684_v46 = vld [vmem:[%s1345_s1 + $0xe8] sm:$0xf0]  ;;  %v823_v54 = vor.u32 %v890_v35, %v820_v36 }
  0x1b   :  { %475 = vmatpush.bf16.msra.mxu3 %v779_v10  ;;  %v872_v47 = vld [vmem:[%s1345_s1 + $0x164] sm:$0xf]  ;;  %v748_v48 = vld [vmem:[%s1345_s1 + $0x168] sm:$0xf0]  ;;  %v554_v51 = vld [vmem:[%s1346_s0] sm:$0xf]  ;;  %v1161_v55 = vor.u32 %v827_v42, %v562_v41  ;;  %v687_v1 = vor.u32 %v856_v45, %v684_v46 }
  0x1c   :  { %434 = vmatpush.bf16.msra.mxu0 %v579_v17  ;;  %v826_v52 = vld [vmem:[%s1346_s0 + $0xc] sm:$0xf0]  ;;  %v825_v53 = vld [vmem:[%s1346_s0 + $0xc] sm:$0xf]  ;;  %v564_v56 = vld [vmem:[%s1346_s0 + $0x18] sm:$0xf0]  ;;  %v751_v2 = vor.u32 %v872_v47, %v748_v48 }
  0x1d   :  { %448 = vmatpush.bf16.msra.mxu1 %v643_v21  ;;  %v824_v57 = vld [vmem:[%s1346_s0 + $0x4] sm:$0xf]  ;;  %v556_v58 = vld [vmem:[%s1346_s0 + $0x10] sm:$0xf0]  ;;  %v812_v60 = vld [vmem:[%s1345_s1 + $0x1e8] sm:$0xf0]  ;;  %v1178_v61 = vor.u32 %v826_v52, %v554_v51  ;;  %v1180_v62 = vor.u32 %v825_v53, %v564_v56 }
  0x1e   :  { %462 = vmatpush.bf16.msra.mxu2 %v707_v22  ;;  %v888_v59 = vld [vmem:[%s1345_s1 + $0x1e4] sm:$0xf]  ;;  %v1182_v0 = vor.u32 %v824_v57, %v556_v58  ;;  %v838_v3 = vld [vmem:[%s1345_s1 + $0x54] sm:$0xf]  ;;  %v612_v4 = vld [vmem:[%s1345_s1 + $0x58] sm:$0xf0] }
  0x1f   :  { %476 = vmatpush.bf16.msra.mxu3 %v771_v26  ;;  %v854_v5 = vld [vmem:[%s1345_s1 + $0xd4] sm:$0xf]  ;;  %v815_v6 = vor.u32 %v888_v59, %v812_v60  ;;  %v676_v7 = vld [vmem:[%s1345_s1 + $0xd8] sm:$0xf0]  ;;  %v615_v12 = vor.u32 %v838_v3, %v612_v4  ;;  %v836_v15 = vld [vmem:[%s1345_s1 + $0x44] sm:$0xf] }
  0x20   :  { %435 = vmatpush.bf16.msra.mxu0 %v571_v33  ;;  %v870_v8 = vld [vmem:[%s1345_s1 + $0x154] sm:$0xf]  ;;  %v740_v9 = vld [vmem:[%s1345_s1 + $0x158] sm:$0xf0]  ;;  %v679_v13 = vor.u32 %v854_v5, %v676_v7  ;;  %v604_v16 = vld [vmem:[%s1345_s1 + $0x48] sm:$0xf0] }
  0x21   :  { %449 = vmatpush.bf16.msra.mxu1 %v635_v37  ;;  %v886_v10 = vld [vmem:[%s1345_s1 + $0x1d4] sm:$0xf]  ;;  %v804_v11 = vld [vmem:[%s1345_s1 + $0x1d8] sm:$0xf0]  ;;  %v743_v14 = vor.u32 %v870_v8, %v740_v9  ;;  %v852_v17 = vld [vmem:[%s1345_s1 + $0xc4] sm:$0xf]  ;;  %v607_v24 = vor.u32 %v836_v15, %v604_v16 }
  0x22   :  { %463 = vmatpush.bf16.msra.mxu2 %v699_v38  ;;  %v807_v18 = vor.u32 %v886_v10, %v804_v11  ;;  %v668_v19 = vld [vmem:[%s1345_s1 + $0xc8] sm:$0xf0]  ;;  %v868_v20 = vld [vmem:[%s1345_s1 + $0x144] sm:$0xf]  ;;  %v834_v27 = vld [vmem:[%s1345_s1 + $0x34] sm:$0xf] }
  0x23   :  { %477 = vmatpush.bf16.msra.mxu3 %v763_v43  ;;  %436 = vmatmul.bf16.vlgmr.msra.gmra.mxu0 %v1178_v61  ;;  %v732_v21 = vld [vmem:[%s1345_s1 + $0x148] sm:$0xf0]  ;;  %v884_v22 = vld [vmem:[%s1345_s1 + $0x1c4] sm:$0xf]  ;;  %v671_v25 = vor.u32 %v852_v17, %v668_v19  ;;  %v596_v28 = vld [vmem:[%s1345_s1 + $0x38] sm:$0xf0] }
  0x24   :  { %484 = vmatpush.bf16.msrb.mxu0 %v631_v44  ;;  %450 = vmatmul.bf16.vlgmr.msra.gmra.mxu1 %v1182_v0  ;;  %v796_v23 = vld [vmem:[%s1345_s1 + $0x1c8] sm:$0xf0]  ;;  %v735_v26 = vor.u32 %v868_v20, %v732_v21  ;;  %v850_v29 = vld [vmem:[%s1345_s1 + $0xb4] sm:$0xf]  ;;  %v660_v31 = vld [vmem:[%s1345_s1 + $0xb8] sm:$0xf0]  ;;  %v599_v36 = vor.u32 %v834_v27, %v596_v28 }
  0x25   :  { %498 = vmatpush.bf16.msrb.mxu1 %v695_v49  ;;  %464 = vmatmul.bf16.vlgmr.msra.gmra.mxu2 %v1161_v55  ;;  %v799_v30 = vor.u32 %v884_v22, %v796_v23  ;;  %v866_v32 = vld [vmem:[%s1345_s1 + $0x134] sm:$0xf]  ;;  %v724_v33 = vld [vmem:[%s1345_s1 + $0x138] sm:$0xf0]  ;;  %v663_v37 = vor.u32 %v850_v29, %v660_v31  ;;  %v832_v39 = vld [vmem:[%s1345_s1 + $0x24] sm:$0xf] }
  0x26   :  { %512 = vmatpush.bf16.msrb.mxu2 %v759_v50  ;;  %478 = vmatmul.bf16.vlgmr.msra.gmra.mxu3 %v1180_v62  ;;  %v882_v34 = vld [vmem:[%s1345_s1 + $0x1b4] sm:$0xf]  ;;  %v788_v35 = vld [vmem:[%s1345_s1 + $0x1b8] sm:$0xf0]  ;;  %v727_v38 = vor.u32 %v866_v32, %v724_v33  ;;  %v588_v40 = vld [vmem:[%s1345_s1 + $0x28] sm:$0xf0] }
  0x27   :  { %526 = vmatpush.bf16.msrb.mxu3 %v823_v54  ;;  %v848_v41 = vld [vmem:[%s1345_s1 + $0xa4] sm:$0xf]  ;;  %v791_v42 = vor.u32 %v882_v34, %v788_v35  ;;  %v652_v43 = vld [vmem:[%s1345_s1 + $0xa8] sm:$0xf0]  ;;  %v591_v48 = vor.u32 %v832_v39, %v588_v40  ;;  %v830_v51 = vld [vmem:[%s1345_s1 + $0x14] sm:$0xf] }
  0x28   :  { %485 = vmatpush.bf16.msrb.mxu0 %v623_v63  ;;  %v864_v44 = vld [vmem:[%s1345_s1 + $0x124] sm:$0xf]  ;;  %v716_v45 = vld [vmem:[%s1345_s1 + $0x128] sm:$0xf0]  ;;  %v655_v49 = vor.u32 %v848_v41, %v652_v43  ;;  %v580_v52 = vld [vmem:[%s1345_s1 + $0x18] sm:$0xf0] }
  0x29   :  { %499 = vmatpush.bf16.msrb.mxu1 %v687_v1  ;;  %v880_v46 = vld [vmem:[%s1345_s1 + $0x1a4] sm:$0xf]  ;;  %v780_v47 = vld [vmem:[%s1345_s1 + $0x1a8] sm:$0xf0]  ;;  %v719_v50 = vor.u32 %v864_v44, %v716_v45  ;;  %v846_v53 = vld [vmem:[%s1345_s1 + $0x94] sm:$0xf]  ;;  %v583_v63 = vor.u32 %v830_v51, %v580_v52 }
  0x2a   :  { %513 = vmatpush.bf16.msrb.mxu2 %v751_v2  ;;  %v783_v54 = vor.u32 %v880_v46, %v780_v47  ;;  %v644_v56 = vld [vmem:[%s1345_s1 + $0x98] sm:$0xf0]  ;;  %v862_v57 = vld [vmem:[%s1345_s1 + $0x114] sm:$0xf]  ;;  %v828_v3 = vld [vmem:[%s1345_s1 + $0x4] sm:$0xf] }
  0x2b   :  { %527 = vmatpush.bf16.msrb.mxu3 %v815_v6  ;;  %v708_v58 = vld [vmem:[%s1345_s1 + $0x118] sm:$0xf0]  ;;  %v878_v59 = vld [vmem:[%s1345_s1 + $0x194] sm:$0xf]  ;;  %v647_v1 = vor.u32 %v846_v53, %v644_v56  ;;  %v572_v4 = vld [vmem:[%s1345_s1 + $0x8] sm:$0xf0] }
  0x2c   :  { %486 = vmatpush.bf16.msrb.mxu0 %v615_v12  ;;  %v772_v60 = vld [vmem:[%s1345_s1 + $0x198] sm:$0xf0]  ;;  %v711_v2 = vor.u32 %v862_v57, %v708_v58  ;;  %v844_v5 = vld [vmem:[%s1345_s1 + $0x84] sm:$0xf]  ;;  %v636_v7 = vld [vmem:[%s1345_s1 + $0x88] sm:$0xf0]  ;;  %v575_v12 = vor.u32 %v828_v3, %v572_v4 }
  0x2d   :  { %500 = vmatpush.bf16.msrb.mxu1 %v679_v13  ;;  %v775_v6 = vor.u32 %v878_v59, %v772_v60  ;;  %v860_v8 = vld [vmem:[%s1345_s1 + $0x104] sm:$0xf]  ;;  %v700_v9 = vld [vmem:[%s1345_s1 + $0x108] sm:$0xf0]  ;;  %v639_v13 = vor.u32 %v844_v5, %v636_v7 }
  0x2e   :  { %514 = vmatpush.bf16.msrb.mxu2 %v743_v14  ;;  %v876_v10 = vld [vmem:[%s1345_s1 + $0x184] sm:$0xf]  ;;  %v764_v11 = vld [vmem:[%s1345_s1 + $0x188] sm:$0xf0]  ;;  %v703_v14 = vor.u32 %v860_v8, %v700_v9 }
  0x2f   :  { %528 = vmatpush.bf16.msrb.mxu3 %v807_v18  ;;  %v767_v15 = vor.u32 %v876_v10, %v764_v11  ;;  %v82_v18 = vld [vmem:[%s1347_s2] sm:$0x3] }
  0x30   :  { %487 = vmatpush.bf16.msrb.mxu0 %v607_v24  ;;  %v84_v21 = vperm.slane %v82_v18, 0 }
  0x31   :  { %501 = vmatpush.bf16.msrb.mxu1 %v671_v25  ;;  %v85_v25 = vperm.slane %v82_v18, 1 }
  0x32   :  { %515 = vmatpush.bf16.msrb.mxu2 %v735_v26 }
  0x33   :  { %529 = vmatpush.bf16.msrb.mxu3 %v799_v30 }
  0x34   :  { %488 = vmatpush.bf16.msrb.mxu0 %v599_v36 }
  0x35   :  { %502 = vmatpush.bf16.msrb.mxu1 %v663_v37 }
  0x36   :  { %516 = vmatpush.bf16.msrb.mxu2 %v727_v38 }
  0x37   :  { %530 = vmatpush.bf16.msrb.mxu3 %v791_v42 }
  0x38   :  { %489 = vmatpush.bf16.msrb.mxu0 %v591_v48 }
  0x39   :  { %503 = vmatpush.bf16.msrb.mxu1 %v655_v49 }
  0x3a   :  { %517 = vmatpush.bf16.msrb.mxu2 %v719_v50 }
  0x3b   :  { %531 = vmatpush.bf16.msrb.mxu3 %v783_v54 }
  0x3c   :  { %490 = vmatpush.bf16.msrb.mxu0 %v583_v63 }
  0x3d   :  { %504 = vmatpush.bf16.msrb.mxu1 %v647_v1 }
  0x3e   :  { %518 = vmatpush.bf16.msrb.mxu2 %v711_v2 }
  0x3f   :  { %532 = vmatpush.bf16.msrb.mxu3 %v775_v6 }
  0x40   :  { %491 = vmatpush.bf16.msrb.mxu0 %v575_v12 }
  0x41   :  { %505 = vmatpush.bf16.msrb.mxu1 %v639_v13 }
  0x42   :  { %519 = vmatpush.bf16.msrb.mxu2 %v703_v14 }
  0x43   :  { %533 = vmatpush.bf16.msrb.mxu3 %v767_v15  ;;  %492 = vmatmul.bf16.vlgmr.msrb.gmra.mxu0 %v1178_v61 }
  0x44   :  { %506 = vmatmul.bf16.vlgmr.msrb.gmra.mxu1 %v1182_v0 }
  0x45   :  { %520 = vmatmul.bf16.vlgmr.msrb.gmra.mxu2 %v1161_v55 }
  0x46   :  { %534 = vmatmul.bf16.vlgmr.msrb.gmra.mxu3 %v1180_v62 }
  0xa0   :  { %v437_v16 = vpop.f32.mrf.mxu0 }
  0xa1   :  { %v451_v17 = vpop.f32.mrf.mxu1  ;;  %v438_v24 = vadd.f32 %v437_v16, %v84_v21 }
  0xa3   :  { %v452_v26 = vadd.f32 %v451_v17, %v438_v24 }
  0xa8   :  { %v465_v19 = vpop.f32.mrf.mxu2  ;;  %v439_v22 = vpop.f32.mrf.mxu0 }
  0xa9   :  { %v479_v20 = vpop.f32.mrf.mxu3  ;;  %v453_v23 = vpop.f32.mrf.mxu1  ;;  %v466_v62 = vadd.f32 %v465_v19, %v452_v26  ;;  %v440_v29 = vadd.f32 %v439_v22, %v84_v21 }
  0xab   :  { %v480_v32 = vadd.f32 %v479_v20, %v466_v62  ;;  %v454_v33 = vadd.f32 %v453_v23, %v440_v29 }
  0xad   :  { %v540_v39 = vmax.f32 %v480_v32, 0.0 }
  0xb0   :  { %v467_v61 = vpop.f32.mrf.mxu2 }
  0xb1   :  { %v481_v0 = vpop.f32.mrf.mxu3  ;;  %v468_v40 = vadd.f32 %v467_v61, %v454_v33 }
  0xb3   :  { %v482_v46 = vadd.f32 %v481_v0, %v468_v40 }
  0xb5   :  { %v542_v50 = vmax.f32 %v482_v46, 0.0 }
  0xc0   :  { %v493_v27 = vpop.f32.mrf.mxu0 }
  0xc1   :  { %v494_v55 = vadd.f32 %v493_v27, %v85_v25  ;;  %v507_v28 = vpop.f32.mrf.mxu1 }
  0xc3   :  { %v508_v30 = vadd.f32 %v507_v28, %v494_v55 }
  0xc8   :  { %v521_v31 = vpop.f32.mrf.mxu2  ;;  %v495_v36 = vpop.f32.mrf.mxu0 }
  0xc9   :  { %v522_v34 = vadd.f32 %v521_v31, %v508_v30  ;;  %v535_v35 = vpop.f32.mrf.mxu3  ;;  %v496_v38 = vadd.f32 %v495_v36, %v85_v25  ;;  %v509_v42 = vpop.f32.mrf.mxu1 }
  0xcb   :  { %v536_v37 = vadd.f32 %v535_v35, %v522_v34  ;;  %v510_v44 = vadd.f32 %v509_v42, %v496_v38 }
  0xcd   :  { %v541_v41 = vmax.f32 %v536_v37, 0.0 }
  0xcf   :  { %v544_v43 = vpack.c.bf16 %v541_v41, %v540_v39 }
  0xd0   :  { %v523_v45 = vpop.f32.mrf.mxu2 }
  0xd1   :  { %546 = vst [vmem:[%s1348_s3] sm:$0xff] %v544_v43  ;;  %v524_v47 = vadd.f32 %v523_v45, %v510_v44  ;;  %v537_v48 = vpop.f32.mrf.mxu3 }
  0xd3   :  { %v538_v49 = vadd.f32 %v537_v48, %v524_v47 }
  0xd5   :  { %v543_v51 = vmax.f32 %v538_v49, 0.0 }
  0xd7   :  { %v545_v52 = vpack.c.bf16 %v543_v51, %v542_v50 }
  0xd9   :  { %547 = vst [vmem:[%s1348_s3 + $0x8] sm:$0xff] %v545_v52 }

// kernel: autoencoder_forward.11
= control target key start
LH: loop header
LB: loop body
LE: loop exit
PB: predicated region body
PF: predicated region fallthrough
CT: control target
= control target key end

     0   :  { %s2952_s1 = inlined_call_operand.vmem [shape: bf16[1152,256], index: 1, kind: input, shape index: {}]   ;;  %s2953_s0 = inlined_call_operand.vmem [shape: bf16[16,1152], index: 0, kind: input, shape index: {}]   ;;  %s2954_s2 = inlined_call_operand.vmem [shape: f32[1,256], index: 2, kind: input, shape index: {}]   ;;  %s2955_s3 = inlined_call_operand.vmem [shape: bf16[16,256], index: 3, kind: output, shape index: {}]  }
   0x1   :  { %v1298_v0 = vld [vmem:[%s2952_s1 + $0x70] sm:$0xf]  ;;  %v1840_v1 = vld [vmem:[%s2952_s1 + $0x74] sm:$0xf0]  ;;  %v1290_v11 = vld [vmem:[%s2952_s1 + $0x60] sm:$0xf] }
   0x2   :  { %v1362_v2 = vld [vmem:[%s2952_s1 + $0xf0] sm:$0xf]  ;;  %v1299_v3 = vor.u32 %v1840_v1, %v1298_v0  ;;  %v1856_v4 = vld [vmem:[%s2952_s1 + $0xf4] sm:$0xf0]  ;;  %v1838_v13 = vld [vmem:[%s2952_s1 + $0x64] sm:$0xf0] }
   0x3   :  { %v1426_v5 = vld [vmem:[%s2952_s1 + $0x170] sm:$0xf]  ;;  %v1872_v6 = vld [vmem:[%s2952_s1 + $0x174] sm:$0xf0]  ;;  %v1363_v7 = vor.u32 %v1856_v4, %v1362_v2  ;;  %v1354_v14 = vld [vmem:[%s2952_s1 + $0xe0] sm:$0xf]  ;;  %v1291_v16 = vor.u32 %v1838_v13, %v1290_v11 }
   0x4   :  { %v1427_v8 = vor.u32 %v1872_v6, %v1426_v5  ;;  %v1490_v9 = vld [vmem:[%s2952_s1 + $0x1f0] sm:$0xf]  ;;  %v1888_v10 = vld [vmem:[%s2952_s1 + $0x1f4] sm:$0xf0]  ;;  %940 = vmatpush.bf16.msra.mxu0 %v1299_v3  ;;  %v1854_v15 = vld [vmem:[%s2952_s1 + $0xe4] sm:$0xf0] }
   0x5   :  { %v1491_v12 = vor.u32 %v1888_v10, %v1490_v9  ;;  %954 = vmatpush.bf16.msra.mxu1 %v1363_v7  ;;  %v1355_v17 = vor.u32 %v1854_v15, %v1354_v14  ;;  %v1418_v18 = vld [vmem:[%s2952_s1 + $0x160] sm:$0xf]  ;;  %v1870_v19 = vld [vmem:[%s2952_s1 + $0x164] sm:$0xf0]  ;;  %v1282_v23 = vld [vmem:[%s2952_s1 + $0x50] sm:$0xf] }
   0x6   :  { %968 = vmatpush.bf16.msra.mxu2 %v1427_v8  ;;  %v1482_v20 = vld [vmem:[%s2952_s1 + $0x1e0] sm:$0xf]  ;;  %v1419_v21 = vor.u32 %v1870_v19, %v1418_v18  ;;  %v1886_v22 = vld [vmem:[%s2952_s1 + $0x1e4] sm:$0xf0]  ;;  %v1836_v24 = vld [vmem:[%s2952_s1 + $0x54] sm:$0xf0] }
   0x7   :  { %982 = vmatpush.bf16.msra.mxu3 %v1491_v12  ;;  %v1483_v25 = vor.u32 %v1886_v22, %v1482_v20  ;;  %v1346_v26 = vld [vmem:[%s2952_s1 + $0xd0] sm:$0xf]  ;;  %v1852_v27 = vld [vmem:[%s2952_s1 + $0xd4] sm:$0xf0]  ;;  %v1283_v29 = vor.u32 %v1836_v24, %v1282_v23  ;;  %v1274_v35 = vld [vmem:[%s2952_s1 + $0x40] sm:$0xf] }
   0x8   :  { %v1410_v28 = vld [vmem:[%s2952_s1 + $0x150] sm:$0xf]  ;;  %941 = vmatpush.bf16.msra.mxu0 %v1291_v16  ;;  %v1868_v30 = vld [vmem:[%s2952_s1 + $0x154] sm:$0xf0]  ;;  %v1347_v33 = vor.u32 %v1852_v27, %v1346_v26  ;;  %v1834_v36 = vld [vmem:[%s2952_s1 + $0x44] sm:$0xf0] }
   0x9   :  { %v1474_v31 = vld [vmem:[%s2952_s1 + $0x1d0] sm:$0xf]  ;;  %v1884_v32 = vld [vmem:[%s2952_s1 + $0x1d4] sm:$0xf0]  ;;  %955 = vmatpush.bf16.msra.mxu1 %v1355_v17  ;;  %v1411_v34 = vor.u32 %v1868_v30, %v1410_v28  ;;  %v1338_v37 = vld [vmem:[%s2952_s1 + $0xc0] sm:$0xf]  ;;  %v1275_v44 = vor.u32 %v1834_v36, %v1274_v35 }
   0xa   :  { %969 = vmatpush.bf16.msra.mxu2 %v1419_v21  ;;  %v1475_v38 = vor.u32 %v1884_v32, %v1474_v31  ;;  %v1850_v39 = vld [vmem:[%s2952_s1 + $0xc4] sm:$0xf0]  ;;  %v1402_v40 = vld [vmem:[%s2952_s1 + $0x140] sm:$0xf]  ;;  %v1266_v47 = vld [vmem:[%s2952_s1 + $0x30] sm:$0xf] }
   0xb   :  { %983 = vmatpush.bf16.msra.mxu3 %v1483_v25  ;;  %v1866_v41 = vld [vmem:[%s2952_s1 + $0x144] sm:$0xf0]  ;;  %v1466_v42 = vld [vmem:[%s2952_s1 + $0x1c0] sm:$0xf]  ;;  %v1339_v45 = vor.u32 %v1850_v39, %v1338_v37  ;;  %v1832_v48 = vld [vmem:[%s2952_s1 + $0x34] sm:$0xf0] }
   0xc   :  { %v1882_v43 = vld [vmem:[%s2952_s1 + $0x1c4] sm:$0xf0]  ;;  %942 = vmatpush.bf16.msra.mxu0 %v1283_v29  ;;  %v1403_v46 = vor.u32 %v1866_v41, %v1402_v40  ;;  %v1330_v49 = vld [vmem:[%s2952_s1 + $0xb0] sm:$0xf]  ;;  %v1848_v51 = vld [vmem:[%s2952_s1 + $0xb4] sm:$0xf0]  ;;  %v1267_v56 = vor.u32 %v1832_v48, %v1266_v47 }
   0xd   :  { %956 = vmatpush.bf16.msra.mxu1 %v1347_v33  ;;  %v1467_v50 = vor.u32 %v1882_v43, %v1466_v42  ;;  %v1394_v52 = vld [vmem:[%s2952_s1 + $0x130] sm:$0xf]  ;;  %v1864_v53 = vld [vmem:[%s2952_s1 + $0x134] sm:$0xf0]  ;;  %v1331_v57 = vor.u32 %v1848_v51, %v1330_v49  ;;  %v1258_v59 = vld [vmem:[%s2952_s1 + $0x20] sm:$0xf] }
   0xe   :  { %970 = vmatpush.bf16.msra.mxu2 %v1411_v34  ;;  %v1458_v54 = vld [vmem:[%s2952_s1 + $0x1b0] sm:$0xf]  ;;  %v1880_v55 = vld [vmem:[%s2952_s1 + $0x1b4] sm:$0xf0]  ;;  %v1395_v58 = vor.u32 %v1864_v53, %v1394_v52  ;;  %v1830_v60 = vld [vmem:[%s2952_s1 + $0x24] sm:$0xf0] }
   0xf   :  { %984 = vmatpush.bf16.msra.mxu3 %v1475_v38  ;;  %v1322_v61 = vld [vmem:[%s2952_s1 + $0xa0] sm:$0xf]  ;;  %v1459_v62 = vor.u32 %v1880_v55, %v1458_v54  ;;  %v1846_v63 = vld [vmem:[%s2952_s1 + $0xa4] sm:$0xf0]  ;;  %v1259_v4 = vor.u32 %v1830_v60, %v1258_v59  ;;  %v1250_v7 = vld [vmem:[%s2952_s1 + $0x10] sm:$0xf] }
  0x10   :  { %943 = vmatpush.bf16.msra.mxu0 %v1275_v44  ;;  %v1386_v0 = vld [vmem:[%s2952_s1 + $0x120] sm:$0xf]  ;;  %v1862_v1 = vld [vmem:[%s2952_s1 + $0x124] sm:$0xf0]  ;;  %v1323_v5 = vor.u32 %v1846_v63, %v1322_v61  ;;  %v1828_v8 = vld [vmem:[%s2952_s1 + $0x14] sm:$0xf0] }
  0x11   :  { %957 = vmatpush.bf16.msra.mxu1 %v1339_v45  ;;  %v1450_v2 = vld [vmem:[%s2952_s1 + $0x1a0] sm:$0xf]  ;;  %v1878_v3 = vld [vmem:[%s2952_s1 + $0x1a4] sm:$0xf0]  ;;  %v1387_v6 = vor.u32 %v1862_v1, %v1386_v0  ;;  %v1314_v9 = vld [vmem:[%s2952_s1 + $0x90] sm:$0xf]  ;;  %v1251_v16 = vor.u32 %v1828_v8, %v1250_v7 }
  0x12   :  { %971 = vmatpush.bf16.msra.mxu2 %v1403_v46  ;;  %v1451_v10 = vor.u32 %v1878_v3, %v1450_v2  ;;  %v1844_v11 = vld [vmem:[%s2952_s1 + $0x94] sm:$0xf0]  ;;  %v1378_v12 = vld [vmem:[%s2952_s1 + $0x110] sm:$0xf]  ;;  %v1242_v17 = vld [vmem:[%s2952_s1] sm:$0xf] }
  0x13   :  { %985 = vmatpush.bf16.msra.mxu3 %v1467_v50  ;;  %v1860_v13 = vld [vmem:[%s2952_s1 + $0x114] sm:$0xf0]  ;;  %v1442_v14 = vld [vmem:[%s2952_s1 + $0x190] sm:$0xf]  ;;  %v1826_v18 = vld [vmem:[%s2952_s1 + $0x4] sm:$0xf0]  ;;  %v1315_v19 = vor.u32 %v1844_v11, %v1314_v9 }
  0x14   :  { %944 = vmatpush.bf16.msra.mxu0 %v1267_v56  ;;  %v1876_v15 = vld [vmem:[%s2952_s1 + $0x194] sm:$0xf0]  ;;  %v1379_v20 = vor.u32 %v1860_v13, %v1378_v12  ;;  %v1306_v21 = vld [vmem:[%s2952_s1 + $0x80] sm:$0xf]  ;;  %v1842_v22 = vld [vmem:[%s2952_s1 + $0x84] sm:$0xf0]  ;;  %v1243_v31 = vor.u32 %v1826_v18, %v1242_v17 }
  0x15   :  { %958 = vmatpush.bf16.msra.mxu1 %v1331_v57  ;;  %v1370_v23 = vld [vmem:[%s2952_s1 + $0x100] sm:$0xf]  ;;  %v1443_v24 = vor.u32 %v1876_v15, %v1442_v14  ;;  %v1858_v25 = vld [vmem:[%s2952_s1 + $0x104] sm:$0xf0]  ;;  %v1554_v26 = vld [vmem:[%s2952_s1 + $0x270] sm:$0xf]  ;;  %v1307_v35 = vor.u32 %v1842_v22, %v1306_v21 }
  0x16   :  { %972 = vmatpush.bf16.msra.mxu2 %v1395_v58  ;;  %v1904_v27 = vld [vmem:[%s2952_s1 + $0x274] sm:$0xf0]  ;;  %v1618_v28 = vld [vmem:[%s2952_s1 + $0x2f0] sm:$0xf]  ;;  %v1434_v33 = vld [vmem:[%s2952_s1 + $0x180] sm:$0xf]  ;;  %v1371_v36 = vor.u32 %v1858_v25, %v1370_v23 }
  0x17   :  { %986 = vmatpush.bf16.msra.mxu3 %v1459_v62  ;;  %v1920_v29 = vld [vmem:[%s2952_s1 + $0x2f4] sm:$0xf0]  ;;  %v1682_v30 = vld [vmem:[%s2952_s1 + $0x370] sm:$0xf]  ;;  %v1874_v34 = vld [vmem:[%s2952_s1 + $0x184] sm:$0xf0]  ;;  %v1555_v39 = vor.u32 %v1904_v27, %v1554_v26 }
  0x18   :  { %945 = vmatpush.bf16.msra.mxu0 %v1259_v4  ;;  %v1936_v32 = vld [vmem:[%s2952_s1 + $0x374] sm:$0xf0]  ;;  %v1746_v37 = vld [vmem:[%s2952_s1 + $0x3f0] sm:$0xf]  ;;  %v1619_v40 = vor.u32 %v1920_v29, %v1618_v28  ;;  %v1546_v41 = vld [vmem:[%s2952_s1 + $0x260] sm:$0xf]  ;;  %v1435_v44 = vor.u32 %v1874_v34, %v1434_v33 }
  0x19   :  { %959 = vmatpush.bf16.msra.mxu1 %v1323_v5  ;;  %v1952_v38 = vld [vmem:[%s2952_s1 + $0x3f4] sm:$0xf0]  ;;  %v1902_v42 = vld [vmem:[%s2952_s1 + $0x264] sm:$0xf0]  ;;  %v1683_v43 = vor.u32 %v1936_v32, %v1682_v30  ;;  %v1610_v45 = vld [vmem:[%s2952_s1 + $0x2e0] sm:$0xf] }
  0x1a   :  { %973 = vmatpush.bf16.msra.mxu2 %v1387_v6  ;;  %v1918_v46 = vld [vmem:[%s2952_s1 + $0x2e4] sm:$0xf0]  ;;  %v1674_v47 = vld [vmem:[%s2952_s1 + $0x360] sm:$0xf]  ;;  %v1747_v48 = vor.u32 %v1952_v38, %v1746_v37  ;;  %v1538_v52 = vld [vmem:[%s2952_s1 + $0x250] sm:$0xf]  ;;  %v1547_v56 = vor.u32 %v1902_v42, %v1546_v41 }
  0x1b   :  { %987 = vmatpush.bf16.msra.mxu3 %v1451_v10  ;;  %v1934_v49 = vld [vmem:[%s2952_s1 + $0x364] sm:$0xf0]  ;;  %v1738_v50 = vld [vmem:[%s2952_s1 + $0x3e0] sm:$0xf]  ;;  %v1820_v54 = vld [vmem:[%s2953_s0 + $0x20] sm:$0xf0]  ;;  %v1611_v57 = vor.u32 %v1918_v46, %v1610_v45 }
  0x1c   :  { %946 = vmatpush.bf16.msra.mxu0 %v1251_v16  ;;  %v1950_v51 = vld [vmem:[%s2952_s1 + $0x3e4] sm:$0xf0]  ;;  %v1206_v53 = vld [vmem:[%s2953_s0] sm:$0xf]  ;;  %v1900_v58 = vld [vmem:[%s2952_s1 + $0x254] sm:$0xf0]  ;;  %v1675_v62 = vor.u32 %v1934_v49, %v1674_v47 }
  0x1d   :  { %960 = vmatpush.bf16.msra.mxu1 %v1315_v19  ;;  %v1214_v55 = vld [vmem:[%s2953_s0 + $0x8] sm:$0xf]  ;;  %v1602_v59 = vld [vmem:[%s2952_s1 + $0x2d0] sm:$0xf]  ;;  %v2247_v60 = vor.u32 %v1820_v54, %v1206_v53  ;;  %v1821_v61 = vld [vmem:[%s2953_s0 + $0x28] sm:$0xf0]  ;;  %v1739_v3 = vor.u32 %v1950_v51, %v1738_v50  ;;  %v1539_v11 = vor.u32 %v1900_v58, %v1538_v52 }
  0x1e   :  { %974 = vmatpush.bf16.msra.mxu2 %v1379_v20  ;;  %v1916_v63 = vld [vmem:[%s2952_s1 + $0x2d4] sm:$0xf0]  ;;  %v1666_v0 = vld [vmem:[%s2952_s1 + $0x350] sm:$0xf]  ;;  %v2261_v2 = vor.u32 %v1821_v61, %v1214_v55  ;;  %v1816_v5 = vld [vmem:[%s2953_s0 + $0x4] sm:$0xf] }
  0x1f   :  { %988 = vmatpush.bf16.msra.mxu3 %v1443_v24  ;;  %v1932_v1 = vld [vmem:[%s2952_s1 + $0x354] sm:$0xf0]  ;;  %v1730_v4 = vld [vmem:[%s2952_s1 + $0x3d0] sm:$0xf]  ;;  %v1208_v6 = vld [vmem:[%s2953_s0 + $0x24] sm:$0xf0]  ;;  %v1603_v12 = vor.u32 %v1916_v63, %v1602_v59 }
  0x20   :  { %947 = vmatpush.bf16.msra.mxu0 %v1243_v31  ;;  %v1948_v7 = vld [vmem:[%s2952_s1 + $0x3d4] sm:$0xf0]  ;;  %v2277_v8 = vor.u32 %v1816_v5, %v1208_v6  ;;  %v1817_v9 = vld [vmem:[%s2953_s0 + $0xc] sm:$0xf]  ;;  %v1216_v10 = vld [vmem:[%s2953_s0 + $0x2c] sm:$0xf0]  ;;  %v1667_v15 = vor.u32 %v1932_v1, %v1666_v0 }
  0x21   :  { %961 = vmatpush.bf16.msra.mxu1 %v1307_v35  ;;  %v1530_v13 = vld [vmem:[%s2952_s1 + $0x240] sm:$0xf]  ;;  %v2288_v14 = vor.u32 %v1817_v9, %v1216_v10  ;;  %v1898_v16 = vld [vmem:[%s2952_s1 + $0x244] sm:$0xf0]  ;;  %v1731_v19 = vor.u32 %v1948_v7, %v1730_v4  ;;  %v1522_v26 = vld [vmem:[%s2952_s1 + $0x230] sm:$0xf] }
  0x22   :  { %975 = vmatpush.bf16.msra.mxu2 %v1371_v36  ;;  %v1594_v17 = vld [vmem:[%s2952_s1 + $0x2c0] sm:$0xf]  ;;  %v1914_v18 = vld [vmem:[%s2952_s1 + $0x2c4] sm:$0xf0]  ;;  %v1531_v24 = vor.u32 %v1898_v16, %v1530_v13  ;;  %v1896_v28 = vld [vmem:[%s2952_s1 + $0x234] sm:$0xf0] }
  0x23   :  { %989 = vmatpush.bf16.msra.mxu3 %v1435_v44  ;;  %948 = vmatmul.bf16.vlgmr.msra.gmra.mxu0 %v2247_v60  ;;  %v1658_v20 = vld [vmem:[%s2952_s1 + $0x340] sm:$0xf]  ;;  %v1930_v21 = vld [vmem:[%s2952_s1 + $0x344] sm:$0xf0]  ;;  %v1595_v25 = vor.u32 %v1914_v18, %v1594_v17  ;;  %v1586_v29 = vld [vmem:[%s2952_s1 + $0x2b0] sm:$0xf]  ;;  %v1523_v36 = vor.u32 %v1896_v28, %v1522_v26 }
  0x24   :  { %996 = vmatpush.bf16.msrb.mxu0 %v1555_v39  ;;  %962 = vmatmul.bf16.vlgmr.msra.gmra.mxu1 %v2277_v8  ;;  %v1722_v22 = vld [vmem:[%s2952_s1 + $0x3c0] sm:$0xf]  ;;  %v1946_v23 = vld [vmem:[%s2952_s1 + $0x3c4] sm:$0xf0]  ;;  %v1659_v27 = vor.u32 %v1930_v21, %v1658_v20  ;;  %v1912_v30 = vld [vmem:[%s2952_s1 + $0x2b4] sm:$0xf0] }
  0x25   :  { %1010 = vmatpush.bf16.msrb.mxu1 %v1619_v40  ;;  %976 = vmatmul.bf16.vlgmr.msra.gmra.mxu2 %v2261_v2  ;;  %v1723_v31 = vor.u32 %v1946_v23, %v1722_v22  ;;  %v1650_v32 = vld [vmem:[%s2952_s1 + $0x330] sm:$0xf]  ;;  %v1928_v33 = vld [vmem:[%s2952_s1 + $0x334] sm:$0xf0]  ;;  %v1587_v37 = vor.u32 %v1912_v30, %v1586_v29  ;;  %v1514_v38 = vld [vmem:[%s2952_s1 + $0x220] sm:$0xf] }
  0x26   :  { %1024 = vmatpush.bf16.msrb.mxu2 %v1683_v43  ;;  %990 = vmatmul.bf16.vlgmr.msra.gmra.mxu3 %v2288_v14  ;;  %v1714_v34 = vld [vmem:[%s2952_s1 + $0x3b0] sm:$0xf]  ;;  %v1944_v35 = vld [vmem:[%s2952_s1 + $0x3b4] sm:$0xf0]  ;;  %v1651_v39 = vor.u32 %v1928_v33, %v1650_v32  ;;  %v1894_v40 = vld [vmem:[%s2952_s1 + $0x224] sm:$0xf0] }
  0x27   :  { %1038 = vmatpush.bf16.msrb.mxu3 %v1747_v48  ;;  %v1578_v41 = vld [vmem:[%s2952_s1 + $0x2a0] sm:$0xf]  ;;  %v1910_v42 = vld [vmem:[%s2952_s1 + $0x2a4] sm:$0xf0]  ;;  %v1715_v43 = vor.u32 %v1944_v35, %v1714_v34  ;;  %v1515_v48 = vor.u32 %v1894_v40, %v1514_v38  ;;  %v1506_v50 = vld [vmem:[%s2952_s1 + $0x210] sm:$0xf] }
  0x28   :  { %997 = vmatpush.bf16.msrb.mxu0 %v1547_v56  ;;  %v1642_v44 = vld [vmem:[%s2952_s1 + $0x320] sm:$0xf]  ;;  %v1926_v45 = vld [vmem:[%s2952_s1 + $0x324] sm:$0xf0]  ;;  %v1579_v49 = vor.u32 %v1910_v42, %v1578_v41  ;;  %v1892_v51 = vld [vmem:[%s2952_s1 + $0x214] sm:$0xf0] }
  0x29   :  { %1011 = vmatpush.bf16.msrb.mxu1 %v1611_v57  ;;  %v1706_v46 = vld [vmem:[%s2952_s1 + $0x3a0] sm:$0xf]  ;;  %v1942_v47 = vld [vmem:[%s2952_s1 + $0x3a4] sm:$0xf0]  ;;  %v1643_v52 = vor.u32 %v1926_v45, %v1642_v44  ;;  %v1570_v53 = vld [vmem:[%s2952_s1 + $0x290] sm:$0xf]  ;;  %v1507_v1 = vor.u32 %v1892_v51, %v1506_v50 }
  0x2a   :  { %1025 = vmatpush.bf16.msrb.mxu2 %v1675_v62  ;;  %v1908_v54 = vld [vmem:[%s2952_s1 + $0x294] sm:$0xf0]  ;;  %v1634_v55 = vld [vmem:[%s2952_s1 + $0x310] sm:$0xf]  ;;  %v1707_v56 = vor.u32 %v1942_v47, %v1706_v46  ;;  %v1498_v61 = vld [vmem:[%s2952_s1 + $0x200] sm:$0xf] }
  0x2b   :  { %1039 = vmatpush.bf16.msrb.mxu3 %v1739_v3  ;;  %v1924_v57 = vld [vmem:[%s2952_s1 + $0x314] sm:$0xf0]  ;;  %v1698_v58 = vld [vmem:[%s2952_s1 + $0x390] sm:$0xf]  ;;  %v1890_v62 = vld [vmem:[%s2952_s1 + $0x204] sm:$0xf0]  ;;  %v1571_v3 = vor.u32 %v1908_v54, %v1570_v53 }
  0x2c   :  { %998 = vmatpush.bf16.msrb.mxu0 %v1539_v11  ;;  %v1940_v59 = vld [vmem:[%s2952_s1 + $0x394] sm:$0xf0]  ;;  %v1562_v63 = vld [vmem:[%s2952_s1 + $0x280] sm:$0xf]  ;;  %v1906_v0 = vld [vmem:[%s2952_s1 + $0x284] sm:$0xf0]  ;;  %v1635_v7 = vor.u32 %v1924_v57, %v1634_v55  ;;  %v1499_v20 = vor.u32 %v1890_v62, %v1498_v61 }
  0x2d   :  { %1012 = vmatpush.bf16.msrb.mxu1 %v1603_v12  ;;  %v1626_v4 = vld [vmem:[%s2952_s1 + $0x300] sm:$0xf]  ;;  %v1922_v5 = vld [vmem:[%s2952_s1 + $0x304] sm:$0xf0]  ;;  %v1810_v6 = vld [vmem:[%s2952_s1 + $0x470] sm:$0xf]  ;;  %v1699_v12 = vor.u32 %v1940_v59, %v1698_v58  ;;  %v1563_v21 = vor.u32 %v1906_v0, %v1562_v63 }
  0x2e   :  { %1026 = vmatpush.bf16.msrb.mxu2 %v1667_v15  ;;  %v1968_v9 = vld [vmem:[%s2952_s1 + $0x474] sm:$0xf0]  ;;  %v1839_v10 = vld [vmem:[%s2952_s1 + $0x74] sm:$0xf]  ;;  %v1300_v11 = vld [vmem:[%s2952_s1 + $0x78] sm:$0xf0] }
  0x2f   :  { %1040 = vmatpush.bf16.msrb.mxu3 %v1731_v19  ;;  %v1855_v13 = vld [vmem:[%s2952_s1 + $0xf4] sm:$0xf]  ;;  %v1364_v15 = vld [vmem:[%s2952_s1 + $0xf8] sm:$0xf0]  ;;  %v1690_v16 = vld [vmem:[%s2952_s1 + $0x380] sm:$0xf]  ;;  %v1811_v26 = vor.u32 %v1968_v9, %v1810_v6  ;;  %v1303_v30 = vor.u32 %v1839_v10, %v1300_v11 }
  0x30   :  { %999 = vmatpush.bf16.msrb.mxu0 %v1531_v24  ;;  %v1938_v17 = vld [vmem:[%s2952_s1 + $0x384] sm:$0xf0]  ;;  %v1222_v18 = vld [vmem:[%s2953_s0 + $0x10] sm:$0xf]  ;;  %v1822_v19 = vld [vmem:[%s2953_s0 + $0x30] sm:$0xf0] }
  0x31   :  { %1013 = vmatpush.bf16.msrb.mxu1 %v1595_v25  ;;  %v1230_v22 = vld [vmem:[%s2953_s0 + $0x18] sm:$0xf]  ;;  %v1823_v23 = vld [vmem:[%s2953_s0 + $0x38] sm:$0xf0]  ;;  %v1871_v24 = vld [vmem:[%s2952_s1 + $0x174] sm:$0xf]  ;;  %v1627_v25 = vor.u32 %v1922_v5, %v1626_v4  ;;  %v1691_v35 = vor.u32 %v1938_v17, %v1690_v16 }
  0x32   :  { %1027 = vmatpush.bf16.msrb.mxu2 %v1659_v27  ;;  %v1428_v27 = vld [vmem:[%s2952_s1 + $0x178] sm:$0xf0]  ;;  %v1818_v28 = vld [vmem:[%s2953_s0 + $0x14] sm:$0xf]  ;;  %v1224_v29 = vld [vmem:[%s2953_s0 + $0x34] sm:$0xf0]  ;;  %v2471_v40 = vor.u32 %v1823_v23, %v1230_v22 }
  0x33   :  { %1041 = vmatpush.bf16.msrb.mxu3 %v1723_v31  ;;  %v1367_v31 = vor.u32 %v1855_v13, %v1364_v15  ;;  %v1819_v32 = vld [vmem:[%s2953_s0 + $0x1c] sm:$0xf]  ;;  %v1802_v33 = vld [vmem:[%s2952_s1 + $0x460] sm:$0xf]  ;;  %v1966_v34 = vld [vmem:[%s2952_s1 + $0x464] sm:$0xf0]  ;;  %v1431_v41 = vor.u32 %v1871_v24, %v1428_v27  ;;  %v2479_v44 = vor.u32 %v1818_v28, %v1224_v29 }
  0x34   :  { %1000 = vmatpush.bf16.msrb.mxu0 %v1523_v36  ;;  %v2460_v36 = vor.u32 %v1822_v19, %v1222_v18  ;;  %v1837_v38 = vld [vmem:[%s2952_s1 + $0x64] sm:$0xf]  ;;  %v1803_v45 = vor.u32 %v1966_v34, %v1802_v33  ;;  %v1420_v47 = vld [vmem:[%s2952_s1 + $0x168] sm:$0xf0]  ;;  %v1794_v50 = vld [vmem:[%s2952_s1 + $0x450] sm:$0xf] }
  0x35   :  { %1014 = vmatpush.bf16.msrb.mxu1 %v1587_v37  ;;  %v1232_v37 = vld [vmem:[%s2953_s0 + $0x3c] sm:$0xf0]  ;;  %v1853_v42 = vld [vmem:[%s2952_s1 + $0xe4] sm:$0xf]  ;;  %v1964_v51 = vld [vmem:[%s2952_s1 + $0x454] sm:$0xf0] }
  0x36   :  { %1028 = vmatpush.bf16.msrb.mxu2 %v1651_v39  ;;  %v1292_v39 = vld [vmem:[%s2952_s1 + $0x68] sm:$0xf0]  ;;  %v1869_v46 = vld [vmem:[%s2952_s1 + $0x164] sm:$0xf]  ;;  %v1835_v53 = vld [vmem:[%s2952_s1 + $0x54] sm:$0xf]  ;;  %v1795_v58 = vor.u32 %v1964_v51, %v1794_v50 }
  0x37   :  { %1042 = vmatpush.bf16.msrb.mxu3 %v1715_v43  ;;  %v1356_v43 = vld [vmem:[%s2952_s1 + $0xe8] sm:$0xf0]  ;;  %v1284_v54 = vld [vmem:[%s2952_s1 + $0x58] sm:$0xf0]  ;;  %v1423_v55 = vor.u32 %v1869_v46, %v1420_v47  ;;  %v1867_v59 = vld [vmem:[%s2952_s1 + $0x154] sm:$0xf] }
  0x38   :  { %1001 = vmatpush.bf16.msrb.mxu0 %v1515_v48  ;;  %v2487_v48 = vor.u32 %v1819_v32, %v1232_v37  ;;  %v1348_v57 = vld [vmem:[%s2952_s1 + $0xd8] sm:$0xf0]  ;;  %v1287_v62 = vor.u32 %v1835_v53, %v1284_v54  ;;  %v1786_v63 = vld [vmem:[%s2952_s1 + $0x440] sm:$0xf]  ;;  %v1962_v0 = vld [vmem:[%s2952_s1 + $0x444] sm:$0xf0] }
  0x39   :  { %1015 = vmatpush.bf16.msrb.mxu1 %v1579_v49  ;;  %v1295_v49 = vor.u32 %v1837_v38, %v1292_v39  ;;  %v1412_v61 = vld [vmem:[%s2952_s1 + $0x158] sm:$0xf0]  ;;  %v1276_v4 = vld [vmem:[%s2952_s1 + $0x48] sm:$0xf0]  ;;  %v1849_v6 = vld [vmem:[%s2952_s1 + $0xc4] sm:$0xf]  ;;  %v1787_v9 = vor.u32 %v1962_v0, %v1786_v63 }
  0x3a   :  { %1029 = vmatpush.bf16.msrb.mxu2 %v1643_v52  ;;  %v1359_v52 = vor.u32 %v1853_v42, %v1356_v43  ;;  %v1415_v5 = vor.u32 %v1867_v59, %v1412_v61  ;;  %v1865_v10 = vld [vmem:[%s2952_s1 + $0x144] sm:$0xf]  ;;  %v1404_v11 = vld [vmem:[%s2952_s1 + $0x148] sm:$0xf0]  ;;  %v1778_v13 = vld [vmem:[%s2952_s1 + $0x430] sm:$0xf] }
  0x3b   :  { %1043 = vmatpush.bf16.msrb.mxu3 %v1707_v56  ;;  %v1851_v56 = vld [vmem:[%s2952_s1 + $0xd4] sm:$0xf]  ;;  %v1960_v15 = vld [vmem:[%s2952_s1 + $0x434] sm:$0xf0]  ;;  %v1268_v18 = vld [vmem:[%s2952_s1 + $0x38] sm:$0xf0]  ;;  %v1407_v19 = vor.u32 %v1865_v10, %v1404_v11 }
  0x3c   :  { %1002 = vmatpush.bf16.msrb.mxu0 %v1507_v1  ;;  %v1351_v1 = vor.u32 %v1851_v56, %v1348_v57  ;;  %v1831_v17 = vld [vmem:[%s2952_s1 + $0x34] sm:$0xf]  ;;  %v1779_v22 = vor.u32 %v1960_v15, %v1778_v13  ;;  %v1396_v24 = vld [vmem:[%s2952_s1 + $0x138] sm:$0xf0]  ;;  %v1958_v27 = vld [vmem:[%s2952_s1 + $0x424] sm:$0xf0] }
  0x3d   :  { %1016 = vmatpush.bf16.msrb.mxu1 %v1571_v3  ;;  %v1833_v3 = vld [vmem:[%s2952_s1 + $0x44] sm:$0xf]  ;;  %v1863_v23 = vld [vmem:[%s2952_s1 + $0x134] sm:$0xf]  ;;  %v1324_v33 = vld [vmem:[%s2952_s1 + $0xa8] sm:$0xf0] }
  0x3e   :  { %1030 = vmatpush.bf16.msrb.mxu2 %v1635_v7  ;;  %v1340_v7 = vld [vmem:[%s2952_s1 + $0xc8] sm:$0xf0]  ;;  %v1829_v29 = vld [vmem:[%s2952_s1 + $0x24] sm:$0xf]  ;;  %v1762_v39 = vld [vmem:[%s2952_s1 + $0x410] sm:$0xf] }
  0x3f   :  { %1044 = vmatpush.bf16.msrb.mxu3 %v1699_v12  ;;  %v1279_v12 = vor.u32 %v1833_v3, %v1276_v4  ;;  %v1343_v16 = vor.u32 %v1849_v6, %v1340_v7  ;;  %v1845_v32 = vld [vmem:[%s2952_s1 + $0xa4] sm:$0xf]  ;;  %v1388_v37 = vld [vmem:[%s2952_s1 + $0x128] sm:$0xf0]  ;;  %v1827_v43 = vld [vmem:[%s2952_s1 + $0x14] sm:$0xf] }
  0x40   :  { %1003 = vmatpush.bf16.msrb.mxu0 %v1499_v20  ;;  %v1847_v20 = vld [vmem:[%s2952_s1 + $0xb4] sm:$0xf]  ;;  %v1327_v42 = vor.u32 %v1845_v32, %v1324_v33  ;;  %v1380_v51 = vld [vmem:[%s2952_s1 + $0x118] sm:$0xf0]  ;;  %v1754_v53 = vld [vmem:[%s2952_s1 + $0x400] sm:$0xf] }
  0x41   :  { %1017 = vmatpush.bf16.msrb.mxu1 %v1563_v21  ;;  %v1332_v21 = vld [vmem:[%s2952_s1 + $0xb8] sm:$0xf0]  ;;  %v1843_v46 = vld [vmem:[%s2952_s1 + $0x94] sm:$0xf]  ;;  %v1954_v54 = vld [vmem:[%s2952_s1 + $0x404] sm:$0xf0] }
  0x42   :  { %1031 = vmatpush.bf16.msrb.mxu2 %v1627_v25  ;;  %v1271_v25 = vor.u32 %v1831_v17, %v1268_v18  ;;  %v1335_v28 = vor.u32 %v1847_v20, %v1332_v21  ;;  %v1859_v50 = vld [vmem:[%s2952_s1 + $0x114] sm:$0xf]  ;;  %v1244_v57 = vld [vmem:[%s2952_s1 + $0x8] sm:$0xf0]  ;;  %v1492_v63 = vld [vmem:[%s2952_s1 + $0x1f8] sm:$0xf0]  ;;  %v1755_v6 = vor.u32 %v1954_v54, %v1754_v53 }
  0x43   :  { %1045 = vmatpush.bf16.msrb.mxu3 %v1691_v35  ;;  %1004 = vmatmul.bf16.vlgmr.msrb.gmra.mxu0 %v2460_v36  ;;  %v1861_v35 = vld [vmem:[%s2952_s1 + $0x124] sm:$0xf]  ;;  %v1308_v59 = vld [vmem:[%s2952_s1 + $0x88] sm:$0xf0]  ;;  %v1903_v0 = vld [vmem:[%s2952_s1 + $0x274] sm:$0xf] }
  0x44   :  { %1052 = vmatpush.bf16.msra.mxu0 %v1811_v26  ;;  %1018 = vmatmul.bf16.vlgmr.msrb.gmra.mxu1 %v2479_v44  ;;  %v1770_v26 = vld [vmem:[%s2952_s1 + $0x420] sm:$0xf]  ;;  %v1391_v47 = vor.u32 %v1861_v35, %v1388_v37  ;;  %v1556_v3 = vld [vmem:[%s2952_s1 + $0x278] sm:$0xf0]  ;;  %v1919_v4 = vld [vmem:[%s2952_s1 + $0x2f4] sm:$0xf] }
  0x45   :  { %1066 = vmatpush.bf16.msra.mxu1 %v1303_v30  ;;  %1032 = vmatmul.bf16.vlgmr.msrb.gmra.mxu2 %v2471_v40  ;;  %v1260_v30 = vld [vmem:[%s2952_s1 + $0x28] sm:$0xf0]  ;;  %v1771_v34 = vor.u32 %v1958_v27, %v1770_v26  ;;  %v1857_v7 = vld [vmem:[%s2952_s1 + $0x104] sm:$0xf]  ;;  %v1238_v10 = vld [vmem:[%s2953_s0 + $0x20] sm:$0xf]  ;;  %v1559_v18 = vor.u32 %v1903_v0, %v1556_v3 }
  0x46   :  { %1080 = vmatpush.bf16.msra.mxu2 %v1367_v31  ;;  %1046 = vmatmul.bf16.vlgmr.msrb.gmra.mxu3 %v2487_v48  ;;  %v1399_v31 = vor.u32 %v1863_v23, %v1396_v24  ;;  %v1263_v38 = vor.u32 %v1829_v29, %v1260_v30  ;;  %v1824_v13 = vld [vmem:[%s2953_s0 + $0x40] sm:$0xf0]  ;;  %v1935_v15 = vld [vmem:[%s2952_s1 + $0x374] sm:$0xf]  ;;  %v1484_v20 = vld [vmem:[%s2952_s1 + $0x1e8] sm:$0xf0] }
  0x47   :  { %1094 = vmatpush.bf16.msra.mxu3 %v1431_v41  ;;  %v1956_v41 = vld [vmem:[%s2952_s1 + $0x414] sm:$0xf0]  ;;  %v1901_v23 = vld [vmem:[%s2952_s1 + $0x264] sm:$0xf]  ;;  %v1548_v24 = vld [vmem:[%s2952_s1 + $0x268] sm:$0xf0] }
  0x48   :  { %1053 = vmatpush.bf16.msra.mxu0 %v1803_v45  ;;  %v1252_v45 = vld [vmem:[%s2952_s1 + $0x18] sm:$0xf0]  ;;  %v1917_v27 = vld [vmem:[%s2952_s1 + $0x2e4] sm:$0xf]  ;;  %v1551_v32 = vor.u32 %v1901_v23, %v1548_v24  ;;  %v1883_v33 = vld [vmem:[%s2952_s1 + $0x1d4] sm:$0xf] }
  0x49   :  { %1067 = vmatpush.bf16.msra.mxu1 %v1295_v49  ;;  %v1316_v49 = vld [vmem:[%s2952_s1 + $0x98] sm:$0xf0]  ;;  %v1255_v56 = vor.u32 %v1827_v43, %v1252_v45  ;;  %v1933_v30 = vld [vmem:[%s2952_s1 + $0x364] sm:$0xf]  ;;  %v1899_v37 = vld [vmem:[%s2952_s1 + $0x254] sm:$0xf] }
  0x4a   :  { %1081 = vmatpush.bf16.msra.mxu2 %v1359_v52  ;;  %v1763_v52 = vor.u32 %v1956_v41, %v1762_v39  ;;  %v1319_v61 = vor.u32 %v1843_v46, %v1316_v49  ;;  %v1915_v41 = vld [vmem:[%s2952_s1 + $0x2d4] sm:$0xf]  ;;  %v1668_v46 = vld [vmem:[%s2952_s1 + $0x358] sm:$0xf0]  ;;  %v1881_v49 = vld [vmem:[%s2952_s1 + $0x1c4] sm:$0xf] }
  0x4b   :  { %1095 = vmatpush.bf16.msra.mxu3 %v1423_v55  ;;  %v1825_v55 = vld [vmem:[%s2952_s1 + $0x4] sm:$0xf]  ;;  %v1931_v45 = vld [vmem:[%s2952_s1 + $0x354] sm:$0xf]  ;;  %v1588_v3 = vld [vmem:[%s2952_s1 + $0x2b8] sm:$0xf0] }
  0x4c   :  { %1054 = vmatpush.bf16.msra.mxu0 %v1795_v58  ;;  %v1841_v58 = vld [vmem:[%s2952_s1 + $0x84] sm:$0xf]  ;;  %v1247_v11 = vor.u32 %v1825_v55, %v1244_v57  ;;  %v1671_v53 = vor.u32 %v1931_v45, %v1668_v46  ;;  %v1444_v23 = vld [vmem:[%s2952_s1 + $0x198] sm:$0xf0] }
  0x4d   :  { %1068 = vmatpush.bf16.msra.mxu1 %v1287_v62  ;;  %v1887_v62 = vld [vmem:[%s2952_s1 + $0x1f4] sm:$0xf]  ;;  %v1311_v17 = vor.u32 %v1841_v58, %v1308_v59  ;;  %v1913_v54 = vld [vmem:[%s2952_s1 + $0x2c4] sm:$0xf]  ;;  %v1460_v59 = vld [vmem:[%s2952_s1 + $0x1b8] sm:$0xf0] }
  0x4e   :  { %1082 = vmatpush.bf16.msra.mxu2 %v1351_v1  ;;  %v1383_v1 = vor.u32 %v1859_v50, %v1380_v51  ;;  %v1468_v50 = vld [vmem:[%s2952_s1 + $0x1c8] sm:$0xf0]  ;;  %v1879_v58 = vld [vmem:[%s2952_s1 + $0x1b4] sm:$0xf]  ;;  %v1748_v45 = vld [vmem:[%s2952_s1 + $0x3f8] sm:$0xf0] }
  0x4f   :  { %1096 = vmatpush.bf16.msra.mxu3 %v1415_v5  ;;  %v1620_v5 = vld [vmem:[%s2952_s1 + $0x2f8] sm:$0xf0]  ;;  %v1471_v55 = vor.u32 %v1881_v49, %v1468_v50  ;;  %v1967_v49 = vld [vmem:[%s2952_s1 + $0x474] sm:$0xf] }
  0x50   :  { %1055 = vmatpush.bf16.msra.mxu0 %v1787_v9  ;;  %v1372_v9 = vld [vmem:[%s2952_s1 + $0x108] sm:$0xf0]  ;;  %v1623_v21 = vor.u32 %v1919_v4, %v1620_v5  ;;  %v1463_v4 = vor.u32 %v1879_v58, %v1460_v59  ;;  %v1927_v5 = vld [vmem:[%s2952_s1 + $0x334] sm:$0xf]  ;;  %v1812_v50 = vld [vmem:[%s2952_s1 + $0x478] sm:$0xf0] }
  0x51   :  { %1069 = vmatpush.bf16.msra.mxu1 %v1279_v12  ;;  %v1495_v12 = vor.u32 %v1887_v62, %v1492_v63  ;;  %v1895_v62 = vld [vmem:[%s2952_s1 + $0x234] sm:$0xf]  ;;  %v1524_v63 = vld [vmem:[%s2952_s1 + $0x238] sm:$0xf0]  ;;  %v1965_v58 = vld [vmem:[%s2952_s1 + $0x464] sm:$0xf] }
  0x52   :  { %1083 = vmatpush.bf16.msra.mxu2 %v1343_v16  ;;  %v1684_v16 = vld [vmem:[%s2952_s1 + $0x378] sm:$0xf0]  ;;  %v1804_v59 = vld [vmem:[%s2952_s1 + $0x468] sm:$0xf0] }
  0x53   :  { %1097 = vmatpush.bf16.msra.mxu3 %v1407_v19  ;;  %v1885_v19 = vld [vmem:[%s2952_s1 + $0x1e4] sm:$0xf]  ;;  %v1687_v26 = vor.u32 %v1935_v15, %v1684_v16 }
  0x54   :  { %1056 = vmatpush.bf16.msra.mxu0 %v1779_v22  ;;  %v1375_v22 = vor.u32 %v1857_v7, %v1372_v9  ;;  %v1487_v29 = vor.u32 %v1885_v19, %v1484_v20  ;;  %v1527_v7 = vor.u32 %v1895_v62, %v1524_v63  ;;  %v1877_v9 = vld [vmem:[%s2952_s1 + $0x1a4] sm:$0xf]  ;;  %v1644_v20 = vld [vmem:[%s2952_s1 + $0x328] sm:$0xf0]  ;;  %v1807_v62 = vor.u32 %v1965_v58, %v1804_v59  ;;  %v1947_v63 = vld [vmem:[%s2952_s1 + $0x3d4] sm:$0xf] }
  0x55   :  { %1070 = vmatpush.bf16.msra.mxu1 %v1271_v25  ;;  %v2679_v25 = vor.u32 %v1824_v13, %v1238_v10  ;;  %v1452_v10 = vld [vmem:[%s2952_s1 + $0x1a8] sm:$0xf0]  ;;  %v1909_v16 = vld [vmem:[%s2952_s1 + $0x2a4] sm:$0xf] }
  0x56   :  { %1084 = vmatpush.bf16.msra.mxu2 %v1335_v28  ;;  %v1612_v28 = vld [vmem:[%s2952_s1 + $0x2e8] sm:$0xf0]  ;;  %v1925_v19 = vld [vmem:[%s2952_s1 + $0x324] sm:$0xf] }
  0x57   :  { %1098 = vmatpush.bf16.msra.mxu3 %v1399_v31  ;;  %v1676_v31 = vld [vmem:[%s2952_s1 + $0x368] sm:$0xf0]  ;;  %v1615_v35 = vor.u32 %v1917_v27, %v1612_v28  ;;  %v1508_v27 = vld [vmem:[%s2952_s1 + $0x218] sm:$0xf0]  ;;  %v1647_v28 = vor.u32 %v1925_v19, %v1644_v20 }
  0x58   :  { %1057 = vmatpush.bf16.msra.mxu0 %v1771_v34  ;;  %v1476_v34 = vld [vmem:[%s2952_s1 + $0x1d8] sm:$0xf0]  ;;  %v1679_v39 = vor.u32 %v1933_v30, %v1676_v31  ;;  %v1516_v13 = vld [vmem:[%s2952_s1 + $0x228] sm:$0xf0] }
  0x59   :  { %1071 = vmatpush.bf16.msra.mxu1 %v1263_v38  ;;  %v1540_v38 = vld [vmem:[%s2952_s1 + $0x258] sm:$0xf0]  ;;  %v1479_v43 = vor.u32 %v1883_v33, %v1476_v34  ;;  %v1873_v34 = vld [vmem:[%s2952_s1 + $0x184] sm:$0xf]  ;;  %v1772_v19 = vld [vmem:[%s2952_s1 + $0x428] sm:$0xf0] }
  0x5a   :  { %1085 = vmatpush.bf16.msra.mxu2 %v1327_v42  ;;  %v1604_v42 = vld [vmem:[%s2952_s1 + $0x2d8] sm:$0xf0] }
  0x5b   :  { %1099 = vmatpush.bf16.msra.mxu3 %v1391_v47  ;;  %v1543_v47 = vor.u32 %v1899_v37, %v1540_v38  ;;  %v1607_v51 = vor.u32 %v1915_v41, %v1604_v42  ;;  %v1572_v30 = vld [vmem:[%s2952_s1 + $0x298] sm:$0xf0]  ;;  %v1436_v37 = vld [vmem:[%s2952_s1 + $0x188] sm:$0xf0]  ;;  %v1889_v38 = vld [vmem:[%s2952_s1 + $0x204] sm:$0xf] }
  0x5c   :  { %1058 = vmatpush.bf16.msra.mxu0 %v1763_v52  ;;  %v1897_v52 = vld [vmem:[%s2952_s1 + $0x244] sm:$0xf]  ;;  %v1636_v33 = vld [vmem:[%s2952_s1 + $0x318] sm:$0xf0] }
  0x5d   :  { %1072 = vmatpush.bf16.msra.mxu1 %v1255_v56  ;;  %v1929_v56 = vld [vmem:[%s2952_s1 + $0x344] sm:$0xf] }
  0x5e   :  { %1086 = vmatpush.bf16.msra.mxu2 %v1319_v61  ;;  %v1905_v42 = vld [vmem:[%s2952_s1 + $0x284] sm:$0xf] }
  0x5f   :  { %1100 = vmatpush.bf16.msra.mxu3 %v1383_v1  ;;  %v1911_v1 = vld [vmem:[%s2952_s1 + $0x2b4] sm:$0xf] }
  0x60   :  { %1059 = vmatpush.bf16.msra.mxu0 %v1755_v6  ;;  %v1652_v6 = vld [vmem:[%s2952_s1 + $0x338] sm:$0xf0] }
  0x61   :  { %1073 = vmatpush.bf16.msra.mxu1 %v1247_v11  ;;  %v1591_v11 = vor.u32 %v1911_v1, %v1588_v3  ;;  %v1655_v15 = vor.u32 %v1927_v5, %v1652_v6  ;;  %v1963_v1 = vld [vmem:[%s2952_s1 + $0x454] sm:$0xf]  ;;  %v1796_v3 = vld [vmem:[%s2952_s1 + $0x458] sm:$0xf0]  ;;  %v1724_v6 = vld [vmem:[%s2952_s1 + $0x3c8] sm:$0xf0] }
  0x62   :  { %1087 = vmatpush.bf16.msra.mxu2 %v1311_v17  ;;  %v1580_v17 = vld [vmem:[%s2952_s1 + $0x2a8] sm:$0xf0]  ;;  %v1799_v5 = vor.u32 %v1963_v1, %v1796_v3 }
  0x63   :  { %1101 = vmatpush.bf16.msra.mxu3 %v1375_v22  ;;  %1060 = vmatmul.bf16.vlgmr.msra.gmra.mxu0 %v2679_v25  ;;  %v1875_v22 = vld [vmem:[%s2952_s1 + $0x194] sm:$0xf]  ;;  %v1583_v24 = vor.u32 %v1909_v16, %v1580_v17  ;;  %v1941_v16 = vld [vmem:[%s2952_s1 + $0x3a4] sm:$0xf]  ;;  %v1708_v17 = vld [vmem:[%s2952_s1 + $0x3a8] sm:$0xf0] }
  0x64   :  { %1108 = vmatpush.bf16.msrb.mxu0 %v1495_v12  ;;  %1074 = vmatmul.bf16.vlgmr.msra.gmra.mxu1 %v2247_v60  ;;  %v1660_v60 = vld [vmem:[%s2952_s1 + $0x348] sm:$0xf0]  ;;  %v1893_v12 = vld [vmem:[%s2952_s1 + $0x224] sm:$0xf]  ;;  %v1447_v31 = vor.u32 %v1875_v22, %v1444_v23  ;;  %v1711_v20 = vor.u32 %v1941_v16, %v1708_v17  ;;  %v1939_v22 = vld [vmem:[%s2952_s1 + $0x394] sm:$0xf] }
  0x65   :  { %1122 = vmatpush.bf16.msrb.mxu1 %v1559_v18  ;;  %1088 = vmatmul.bf16.vlgmr.msra.gmra.mxu2 %v2277_v8  ;;  %v1532_v8 = vld [vmem:[%s2952_s1 + $0x248] sm:$0xf0]  ;;  %v1663_v0 = vor.u32 %v1929_v56, %v1660_v60  ;;  %v1455_v18 = vor.u32 %v1877_v9, %v1452_v10  ;;  %v1949_v56 = vld [vmem:[%s2952_s1 + $0x3e4] sm:$0xf]  ;;  %v1943_v9 = vld [vmem:[%s2952_s1 + $0x3b4] sm:$0xf] }
  0x66   :  { %1136 = vmatpush.bf16.msrb.mxu2 %v1623_v21  ;;  %1102 = vmatmul.bf16.vlgmr.msra.gmra.mxu3 %v2261_v2  ;;  %v1596_v2 = vld [vmem:[%s2952_s1 + $0x2c8] sm:$0xf0]  ;;  %v1535_v57 = vor.u32 %v1897_v52, %v1532_v8  ;;  %v1519_v21 = vor.u32 %v1893_v12, %v1516_v13  ;;  %v1921_v52 = vld [vmem:[%s2952_s1 + $0x304] sm:$0xf]  ;;  %v1716_v10 = vld [vmem:[%s2952_s1 + $0x3b8] sm:$0xf0] }
  0x67   :  { %1150 = vmatpush.bf16.msrb.mxu3 %v1687_v26  ;;  %v1599_v61 = vor.u32 %v1913_v54, %v1596_v2  ;;  %v1891_v26 = vld [vmem:[%s2952_s1 + $0x214] sm:$0xf]  ;;  %v1628_v8 = vld [vmem:[%s2952_s1 + $0x308] sm:$0xf0]  ;;  %v1780_v12 = vld [vmem:[%s2952_s1 + $0x438] sm:$0xf0]  ;;  %v1719_v13 = vor.u32 %v1943_v9, %v1716_v10 }
  0x68   :  { %1109 = vmatpush.bf16.msrb.mxu0 %v1487_v29  ;;  %v1907_v29 = vld [vmem:[%s2952_s1 + $0x294] sm:$0xf]  ;;  %v1740_v60 = vld [vmem:[%s2952_s1 + $0x3e8] sm:$0xf0]  ;;  %v1700_v23 = vld [vmem:[%s2952_s1 + $0x398] sm:$0xf0] }
  0x69   :  { %1123 = vmatpush.bf16.msrb.mxu1 %v1551_v32  ;;  %v1923_v32 = vld [vmem:[%s2952_s1 + $0x314] sm:$0xf]  ;;  %v1575_v41 = vor.u32 %v1907_v29, %v1572_v30  ;;  %v1937_v29 = vld [vmem:[%s2952_s1 + $0x384] sm:$0xf]  ;;  %v1692_v30 = vld [vmem:[%s2952_s1 + $0x388] sm:$0xf0] }
  0x6a   :  { %1137 = vmatpush.bf16.msrb.mxu2 %v1615_v35  ;;  %v1511_v35 = vor.u32 %v1891_v26, %v1508_v27  ;;  %v1639_v46 = vor.u32 %v1923_v32, %v1636_v33  ;;  %v1764_v26 = vld [vmem:[%s2952_s1 + $0x418] sm:$0xf0]  ;;  %v1703_v27 = vor.u32 %v1939_v22, %v1700_v23  ;;  %v1756_v32 = vld [vmem:[%s2952_s1 + $0x408] sm:$0xf0]  ;;  %v1695_v33 = vor.u32 %v1937_v29, %v1692_v30 }
  0x6b   :  { %1151 = vmatpush.bf16.msrb.mxu3 %v1679_v39  ;;  %v1500_v39 = vld [vmem:[%s2952_s1 + $0x208] sm:$0xf0] }
  0x6c   :  { %1110 = vmatpush.bf16.msrb.mxu0 %v1479_v43  ;;  %v1951_v43 = vld [vmem:[%s2952_s1 + $0x3f4] sm:$0xf] }
  0x6d   :  { %1124 = vmatpush.bf16.msrb.mxu1 %v1543_v47  ;;  %v1564_v47 = vld [vmem:[%s2952_s1 + $0x288] sm:$0xf0]  ;;  %v1751_v54 = vor.u32 %v1951_v43, %v1748_v45 }
  0x6e   :  { %1138 = vmatpush.bf16.msrb.mxu2 %v1607_v51  ;;  %v1439_v51 = vor.u32 %v1873_v34, %v1436_v37  ;;  %v1567_v2 = vor.u32 %v1905_v42, %v1564_v47 }
  0x6f   :  { %1152 = vmatpush.bf16.msrb.mxu3 %v1671_v53  ;;  %v1503_v53 = vor.u32 %v1889_v38, %v1500_v39 }
  0x70   :  { %1111 = vmatpush.bf16.msrb.mxu0 %v1471_v55  ;;  %v1815_v55 = vor.u32 %v1967_v49, %v1812_v50 }
  0x71   :  { %1125 = vmatpush.bf16.msrb.mxu1 %v1535_v57  ;;  %v1631_v57 = vor.u32 %v1921_v52, %v1628_v8 }
  0x72   :  { %1139 = vmatpush.bf16.msrb.mxu2 %v1599_v61  ;;  %v1743_v61 = vor.u32 %v1949_v56, %v1740_v60 }
  0x73   :  { %1153 = vmatpush.bf16.msrb.mxu3 %v1663_v0  ;;  %v1732_v0 = vld [vmem:[%s2952_s1 + $0x3d8] sm:$0xf0] }
  0x74   :  { %1112 = vmatpush.bf16.msrb.mxu0 %v1463_v4  ;;  %v1735_v4 = vor.u32 %v1947_v63, %v1732_v0 }
  0x75   :  { %1126 = vmatpush.bf16.msrb.mxu1 %v1527_v7 }
  0x76   :  { %1140 = vmatpush.bf16.msrb.mxu2 %v1591_v11  ;;  %v1959_v11 = vld [vmem:[%s2952_s1 + $0x434] sm:$0xf] }
  0x77   :  { %1154 = vmatpush.bf16.msrb.mxu3 %v1655_v15  ;;  %v1783_v15 = vor.u32 %v1959_v11, %v1780_v12 }
  0x78   :  { %1113 = vmatpush.bf16.msrb.mxu0 %v1455_v18  ;;  %v1957_v18 = vld [vmem:[%s2952_s1 + $0x424] sm:$0xf] }
  0x79   :  { %1127 = vmatpush.bf16.msrb.mxu1 %v1519_v21  ;;  %v1775_v21 = vor.u32 %v1957_v18, %v1772_v19 }
  0x7a   :  { %1141 = vmatpush.bf16.msrb.mxu2 %v1583_v24  ;;  %v1955_v24 = vld [vmem:[%s2952_s1 + $0x414] sm:$0xf] }
  0x7b   :  { %1155 = vmatpush.bf16.msrb.mxu3 %v1647_v28  ;;  %v1767_v28 = vor.u32 %v1955_v24, %v1764_v26 }
  0x7c   :  { %1114 = vmatpush.bf16.msrb.mxu0 %v1447_v31  ;;  %v1953_v31 = vld [vmem:[%s2952_s1 + $0x404] sm:$0xf] }
  0x7d   :  { %1128 = vmatpush.bf16.msrb.mxu1 %v1511_v35  ;;  %v1759_v34 = vor.u32 %v1953_v31, %v1756_v32 }
  0x7e   :  { %1142 = vmatpush.bf16.msrb.mxu2 %v1575_v41 }
  0x7f   :  { %1156 = vmatpush.bf16.msrb.mxu3 %v1639_v46 }
  0x80   :  { %1115 = vmatpush.bf16.msrb.mxu0 %v1439_v51 }
  0x81   :  { %1129 = vmatpush.bf16.msrb.mxu1 %v1503_v53 }
  0x82   :  { %1143 = vmatpush.bf16.msrb.mxu2 %v1567_v2 }
  0x83   :  { %1157 = vmatpush.bf16.msrb.mxu3 %v1631_v57  ;;  %1116 = vmatmul.bf16.vlgmr.msrb.gmra.mxu0 %v2288_v14  ;;  %v1945_v14 = vld [vmem:[%s2952_s1 + $0x3c4] sm:$0xf] }
  0x84   :  { %1164 = vmatpush.bf16.msra.mxu0 %v1751_v54  ;;  %1130 = vmatmul.bf16.vlgmr.msrb.gmra.mxu1 %v2460_v36  ;;  %v1961_v36 = vld [vmem:[%s2952_s1 + $0x444] sm:$0xf] }
  0x85   :  { %1178 = vmatpush.bf16.msra.mxu1 %v1815_v55  ;;  %1144 = vmatmul.bf16.vlgmr.msrb.gmra.mxu2 %v2479_v44  ;;  %v1788_v44 = vld [vmem:[%s2952_s1 + $0x448] sm:$0xf0] }
  0x86   :  { %1158 = vmatmul.bf16.vlgmr.msrb.gmra.mxu3 %v2471_v40  ;;  %v1727_v40 = vor.u32 %v1945_v14, %v1724_v6  ;;  %v1791_v7 = vor.u32 %v1961_v36, %v1788_v44 }
  0x88   :  { %1165 = vmatpush.bf16.msra.mxu0 %v1743_v61 }
  0x89   :  { %1179 = vmatpush.bf16.msra.mxu1 %v1807_v62 }
  0x8c   :  { %1166 = vmatpush.bf16.msra.mxu0 %v1735_v4 }
  0x8d   :  { %1180 = vmatpush.bf16.msra.mxu1 %v1799_v5 }
  0x90   :  { %1167 = vmatpush.bf16.msra.mxu0 %v1727_v40 }
  0x91   :  { %1181 = vmatpush.bf16.msra.mxu1 %v1791_v7 }
  0x94   :  { %1168 = vmatpush.bf16.msra.mxu0 %v1719_v13 }
  0x95   :  { %1182 = vmatpush.bf16.msra.mxu1 %v1783_v15 }
  0x98   :  { %1169 = vmatpush.bf16.msra.mxu0 %v1711_v20 }
  0x99   :  { %1183 = vmatpush.bf16.msra.mxu1 %v1775_v21 }
  0x9c   :  { %1170 = vmatpush.bf16.msra.mxu0 %v1703_v27 }
  0x9d   :  { %1184 = vmatpush.bf16.msra.mxu1 %v1767_v28 }
  0xa0   :  { %1171 = vmatpush.bf16.msra.mxu0 %v1695_v33  ;;  %v949_v37 = vpop.f32.mrf.mxu0 }
  0xa1   :  { %1185 = vmatpush.bf16.msra.mxu1 %v1759_v34  ;;  %v963_v35 = vpop.f32.mrf.mxu1 }
  0xa3   :  { %1172 = vmatmul.bf16.vlgmr.msra.gmra.mxu0 %v2487_v48  ;;  %v168_v48 = vld [vmem:[%s2954_s2] sm:$0x3] }
  0xa4   :  { %1186 = vmatmul.bf16.vlgmr.msra.gmra.mxu1 %v2679_v25  ;;  %v170_v2 = vperm.slane %v168_v48, 0  ;;  %v171_v60 = vperm.slane %v168_v48, 1 }
  0xa6   :  { %v950_v56 = vadd.f32 %v949_v37, %v170_v2 }
  0xa8   :  { %v977_v38 = vpop.f32.mrf.mxu2  ;;  %v951_v41 = vpop.f32.mrf.mxu0  ;;  %v964_v61 = vadd.f32 %v963_v35, %v950_v56 }
  0xa9   :  { %v965_v39 = vpop.f32.mrf.mxu1  ;;  %v991_v42 = vpop.f32.mrf.mxu3  ;;  %v952_v4 = vadd.f32 %v951_v41, %v170_v2 }
  0xaa   :  { %v978_v63 = vadd.f32 %v977_v38, %v964_v61 }
  0xab   :  { %v966_v44 = vadd.f32 %v965_v39, %v952_v4 }
  0xac   :  { %v992_v5 = vadd.f32 %v991_v42, %v978_v63 }
  0xb0   :  { %v979_v43 = vpop.f32.mrf.mxu2 }
  0xb1   :  { %v993_v46 = vpop.f32.mrf.mxu3  ;;  %v980_v11 = vadd.f32 %v979_v43, %v966_v44 }
  0xb3   :  { %v994_v19 = vadd.f32 %v993_v46, %v980_v11 }
  0xc0   :  { %v1005_v47 = vpop.f32.mrf.mxu0 }
  0xc1   :  { %v1019_v45 = vpop.f32.mrf.mxu1  ;;  %v1006_v40 = vadd.f32 %v1005_v47, %v992_v5 }
  0xc3   :  { %v1020_v12 = vadd.f32 %v1019_v45, %v1006_v40 }
  0xc8   :  { %v1033_v49 = vpop.f32.mrf.mxu2  ;;  %v1007_v51 = vpop.f32.mrf.mxu0 }
  0xc9   :  { %v1021_v50 = vpop.f32.mrf.mxu1  ;;  %v1047_v52 = vpop.f32.mrf.mxu3  ;;  %v1034_v20 = vadd.f32 %v1033_v49, %v1020_v12  ;;  %v1008_v23 = vadd.f32 %v1007_v51, %v994_v19 }
  0xcb   :  { %v1048_v26 = vadd.f32 %v1047_v52, %v1034_v20  ;;  %v1022_v30 = vadd.f32 %v1021_v50, %v1008_v23 }
  0xd0   :  { %v1035_v8 = vpop.f32.mrf.mxu2 }
  0xd1   :  { %v1049_v54 = vpop.f32.mrf.mxu3  ;;  %v1036_v35 = vadd.f32 %v1035_v8, %v1022_v30 }
  0xd3   :  { %v1050_v43 = vadd.f32 %v1049_v54, %v1036_v35 }
  0xe0   :  { %v1061_v25 = vpop.f32.mrf.mxu0 }
  0xe1   :  { %v1075_v53 = vpop.f32.mrf.mxu1  ;;  %v1062_v31 = vadd.f32 %v1061_v25, %v1048_v26 }
  0xe2   :  { %v1076_v62 = vadd.f32 %v1075_v53, %v171_v60 }
  0xe3   :  { %v1192_v41 = vmax.f32 %v1062_v31, 0.0 }
  0xe8   :  { %v1089_v55 = vpop.f32.mrf.mxu2  ;;  %v1063_v58 = vpop.f32.mrf.mxu0 }
  0xe9   :  { %v1077_v57 = vpop.f32.mrf.mxu1  ;;  %v1103_v59 = vpop.f32.mrf.mxu3  ;;  %v1090_v0 = vadd.f32 %v1089_v55, %v1076_v62  ;;  %v1064_v49 = vadd.f32 %v1063_v58, %v1050_v43 }
  0xea   :  { %v1078_v7 = vadd.f32 %v1077_v57, %v171_v60 }
  0xeb   :  { %v1104_v14 = vadd.f32 %v1103_v59, %v1090_v0  ;;  %v1194_v53 = vmax.f32 %v1064_v49, 0.0 }
  0xf0   :  { %v1091_v1 = vpop.f32.mrf.mxu2 }
  0xf1   :  { %v1105_v36 = vpop.f32.mrf.mxu3  ;;  %v1092_v13 = vadd.f32 %v1091_v1, %v1078_v7 }
  0xf3   :  { %v1106_v21 = vadd.f32 %v1105_v36, %v1092_v13 }
 0x100   :  { %v1117_v3 = vpop.f32.mrf.mxu0 }
 0x101   :  { %v1131_v6 = vpop.f32.mrf.mxu1  ;;  %v1118_v9 = vadd.f32 %v1117_v3, %v1104_v14 }
 0x103   :  { %v1132_v15 = vadd.f32 %v1131_v6, %v1118_v9 }
 0x108   :  { %v1145_v10 = vpop.f32.mrf.mxu2  ;;  %v1119_v16 = vpop.f32.mrf.mxu0 }
 0x109   :  { %v1133_v17 = vpop.f32.mrf.mxu1  ;;  %v1159_v18 = vpop.f32.mrf.mxu3  ;;  %v1146_v22 = vadd.f32 %v1145_v10, %v1132_v15  ;;  %v1120_v24 = vadd.f32 %v1119_v16, %v1106_v21 }
 0x10b   :  { %v1160_v27 = vadd.f32 %v1159_v18, %v1146_v22  ;;  %v1134_v32 = vadd.f32 %v1133_v17, %v1120_v24 }
 0x110   :  { %v1147_v28 = vpop.f32.mrf.mxu2 }
 0x111   :  { %v1148_v37 = vadd.f32 %v1147_v28, %v1134_v32  ;;  %v1161_v39 = vpop.f32.mrf.mxu3 }
 0x113   :  { %v1162_v45 = vadd.f32 %v1161_v39, %v1148_v37 }
 0x120   :  { %v1173_v29 = vpop.f32.mrf.mxu0 }
 0x121   :  { %v1174_v33 = vadd.f32 %v1173_v29, %v1160_v27  ;;  %v1187_v34 = vpop.f32.mrf.mxu1 }
 0x123   :  { %v1188_v38 = vadd.f32 %v1187_v34, %v1174_v33 }
 0x125   :  { %v1193_v42 = vmax.f32 %v1188_v38, 0.0 }
 0x127   :  { %v1196_v46 = vpack.c.bf16 %v1193_v42, %v1192_v41 }
 0x128   :  { %v1175_v47 = vpop.f32.mrf.mxu0 }
 0x129   :  { %1198 = vst [vmem:[%s2955_s3] sm:$0xff] %v1196_v46  ;;  %v1176_v50 = vadd.f32 %v1175_v47, %v1162_v45  ;;  %v1189_v51 = vpop.f32.mrf.mxu1 }
 0x12b   :  { %v1190_v52 = vadd.f32 %v1189_v51, %v1176_v50 }
 0x12d   :  { %v1195_v48 = vmax.f32 %v1190_v52, 0.0 }
 0x12f   :  { %v1197_v8 = vpack.c.bf16 %v1195_v48, %v1194_v53 }
 0x131   :  { %1199 = vst [vmem:[%s2955_s3 + $0x8] sm:$0xff] %v1197_v8 }

// kernel: autoencoder_forward.12
= control target key start
LH: loop header
LB: loop body
LE: loop exit
PB: predicated region body
PF: predicated region fallthrough
CT: control target
= control target key end

     0   :  { %s2765_s12 = smov 0   ;;  %s2767_s13 = smov 0   ;;  %s3443_s0 = inlined_call_operand.vmem [shape: bf16[16,1024], index: 0, kind: input, shape index: {}]   ;;  %s3444_s1 = inlined_call_operand.vmem [shape: bf16[1024,512], index: 1, kind: input, shape index: {}]   ;;  %s3445_s2 = inlined_call_operand.vmem [shape: f32[1,512], index: 2, kind: input, shape index: {}]   ;;  %s3446_s3 = inlined_call_operand.vmem [shape: bf16[16,512], index: 3, kind: output, shape index: {}]  }
   0x1   :  { %s2769_s14 = smov 0   ;;  %s2771_s15 = smov 0  }
   0x2   :  { %s2773_s16 = smov 0  }
   0x3 LB: > { %s22_s17 = sadd.s32 1, %s2739_s15  ;;  %s1966_s18 = sadd.s32 4294967295, %s2743_s16   ;;  %s2743_s16 = sphi %s2773_s16, %s13_s16   ;;  %s2739_s15 = sphi %s2771_s15, %s3451_s15   ;;  %s2735_s14 = sphi %s2769_s14, %s3450_s14   ;;  %s2731_s13 = sphi %s2767_s13, %s3449_s13   ;;  %s2727_s12 = sphi %s2765_s12, %s3448_s12  }
   0x4   : > { %p23_p0 = scmp.ge.s32.totalorder %s22_s17, 2  ;;  %p65_p1 = scmp.ne.s32.totalorder %s2731_s13, %s2727_s12 }
   0x5   : > { %p66_p2 = scmp.eq.s32.totalorder %s2743_s16, 0  ;;  %p123_p4 = scmp.eq.s32.totalorder %s1966_s18, 1 }
   0x6   : > { %s3453_s17 = smov (%p23_p0, %s22_s17), 0  ;;  %s58_s20 = sadd.s32 1, %s2731_s13 }
   0x7   : > { %p67_p3 = por %p66_p2, %p65_p1  ;;  %s55_s19 = ssub.s32 %s2739_s15, %s3453_s17 }
   0x8   : > { %p56_p5 = scmp.eq.s32.totalorder %s55_s19, 0  ;;  %p2800_p6 = por %p123_p4, %p65_p1 }
   0x9   : > { %p1970_p7 = scmp.ge.s32.totalorder %s2743_s16, 2 }
   0xa   : > { %s2805_s22 = scalar_select %p56_p5, %s2731_s13, %s58_s20  }
   0xb   : > { %155 = sbr.rel (%p1970_p7) target bundleno = 148 (0x94), region = 20 }
  0x10   : > { %158 = sbr.rel (!%p67_p3) target bundleno = 148 (0x94), region = 24  ;;  %s160_s23 = sand.u32 (%p67_p3), 1, %s2731_s13  }
  0x11   : > { %s2527_s24 = sshll.u32 (%p67_p3), %s2739_s15, 3  ;;  %s1971_s25 = sshll.u32 (%p67_p3), %s160_s23, 10 }
  0x12   : > { %s2813_s28 = scalar_lea.vmem (%p67_p3), %s3444_s1, %s2527_s24  ;;  %s2818_s29 = scalar_lea.vmem (%p67_p3), [#allocation2], %s1971_s25 }
  0x13   : > { %v448_v0 = vld [vmem:[%s2813_s28] sm:$0xff] (%p67_p3)  ;;  %v450_v1 = vld [vmem:[%s2813_s28 + $0x10] sm:$0xff] (%p67_p3) }
  0x14   : > { %v452_v2 = vld [vmem:[%s2813_s28 + $0x20] sm:$0xff] (%p67_p3)  ;;  %449 = vst [vmem:[%s2818_s29] sm:$0xff] (%p67_p3), %v448_v0  ;;  %v454_v3 = vld [vmem:[%s2813_s28 + $0x30] sm:$0xff] (%p67_p3) }
  0x15   : > { %451 = vst [vmem:[%s2818_s29 + $0x8] sm:$0xff] %v450_v1  ;;  %v456_v4 = vld [vmem:[%s2813_s28 + $0x40] sm:$0xff]  ;;  %v458_v5 = vld [vmem:[%s2813_s28 + $0x50] sm:$0xff] }
  0x16   : > { %453 = vst [vmem:[%s2818_s29 + $0x10] sm:$0xff] %v452_v2  ;;  %v460_v6 = vld [vmem:[%s2813_s28 + $0x60] sm:$0xff]  ;;  %v462_v7 = vld [vmem:[%s2813_s28 + $0x70] sm:$0xff] }
  0x17   : > { %455 = vst [vmem:[%s2818_s29 + $0x18] sm:$0xff] %v454_v3  ;;  %v464_v8 = vld [vmem:[%s2813_s28 + $0x80] sm:$0xff]  ;;  %v466_v9 = vld [vmem:[%s2813_s28 + $0x90] sm:$0xff] }
  0x18   : > { %457 = vst [vmem:[%s2818_s29 + $0x20] sm:$0xff] %v456_v4  ;;  %v468_v10 = vld [vmem:[%s2813_s28 + $0xa0] sm:$0xff]  ;;  %v470_v11 = vld [vmem:[%s2813_s28 + $0xb0] sm:$0xff] }
  0x19   : > { %459 = vst [vmem:[%s2818_s29 + $0x28] sm:$0xff] %v458_v5  ;;  %v472_v12 = vld [vmem:[%s2813_s28 + $0xc0] sm:$0xff]  ;;  %v474_v13 = vld [vmem:[%s2813_s28 + $0xd0] sm:$0xff] }
  0x1a   : > { %461 = vst [vmem:[%s2818_s29 + $0x30] sm:$0xff] %v460_v6  ;;  %v476_v14 = vld [vmem:[%s2813_s28 + $0xe0] sm:$0xff]  ;;  %v478_v15 = vld [vmem:[%s2813_s28 + $0xf0] sm:$0xff] }
  0x1b   : > { %463 = vst [vmem:[%s2818_s29 + $0x38] sm:$0xff] %v462_v7  ;;  %v480_v16 = vld [vmem:[%s2813_s28 + $0x100] sm:$0xff]  ;;  %v482_v17 = vld [vmem:[%s2813_s28 + $0x110] sm:$0xff] }
  0x1c   : > { %465 = vst [vmem:[%s2818_s29 + $0x40] sm:$0xff] %v464_v8  ;;  %v484_v18 = vld [vmem:[%s2813_s28 + $0x120] sm:$0xff]  ;;  %v486_v19 = vld [vmem:[%s2813_s28 + $0x130] sm:$0xff] }
  0x1d   : > { %467 = vst [vmem:[%s2818_s29 + $0x48] sm:$0xff] %v466_v9  ;;  %v488_v20 = vld [vmem:[%s2813_s28 + $0x140] sm:$0xff]  ;;  %v490_v21 = vld [vmem:[%s2813_s28 + $0x150] sm:$0xff] }
  0x1e   : > { %469 = vst [vmem:[%s2818_s29 + $0x50] sm:$0xff] %v468_v10  ;;  %v492_v22 = vld [vmem:[%s2813_s28 + $0x160] sm:$0xff]  ;;  %v494_v23 = vld [vmem:[%s2813_s28 + $0x170] sm:$0xff] }
  0x1f   : > { %471 = vst [vmem:[%s2818_s29 + $0x58] sm:$0xff] %v470_v11  ;;  %v496_v24 = vld [vmem:[%s2813_s28 + $0x180] sm:$0xff]  ;;  %v498_v25 = vld [vmem:[%s2813_s28 + $0x190] sm:$0xff] }
  0x20   : > { %473 = vst [vmem:[%s2818_s29 + $0x60] sm:$0xff] %v472_v12  ;;  %v500_v26 = vld [vmem:[%s2813_s28 + $0x1a0] sm:$0xff]  ;;  %v502_v27 = vld [vmem:[%s2813_s28 + $0x1b0] sm:$0xff] }
  0x21   : > { %475 = vst [vmem:[%s2818_s29 + $0x68] sm:$0xff] %v474_v13  ;;  %v504_v28 = vld [vmem:[%s2813_s28 + $0x1c0] sm:$0xff]  ;;  %v506_v29 = vld [vmem:[%s2813_s28 + $0x1d0] sm:$0xff] }
  0x22   : > { %477 = vst [vmem:[%s2818_s29 + $0x70] sm:$0xff] %v476_v14  ;;  %v508_v30 = vld [vmem:[%s2813_s28 + $0x1e0] sm:$0xff]  ;;  %v510_v31 = vld [vmem:[%s2813_s28 + $0x1f0] sm:$0xff] }
  0x23   : > { %479 = vst [vmem:[%s2818_s29 + $0x78] sm:$0xff] %v478_v15  ;;  %v512_v32 = vld [vmem:[%s2813_s28 + $0x200] sm:$0xff]  ;;  %v514_v33 = vld [vmem:[%s2813_s28 + $0x210] sm:$0xff] }
  0x24   : > { %481 = vst [vmem:[%s2818_s29 + $0x80] sm:$0xff] %v480_v16  ;;  %v516_v34 = vld [vmem:[%s2813_s28 + $0x220] sm:$0xff]  ;;  %v518_v35 = vld [vmem:[%s2813_s28 + $0x230] sm:$0xff] }
  0x25   : > { %483 = vst [vmem:[%s2818_s29 + $0x88] sm:$0xff] %v482_v17  ;;  %v520_v36 = vld [vmem:[%s2813_s28 + $0x240] sm:$0xff]  ;;  %v522_v37 = vld [vmem:[%s2813_s28 + $0x250] sm:$0xff] }
  0x26   : > { %485 = vst [vmem:[%s2818_s29 + $0x90] sm:$0xff] %v484_v18  ;;  %v524_v38 = vld [vmem:[%s2813_s28 + $0x260] sm:$0xff]  ;;  %v526_v39 = vld [vmem:[%s2813_s28 + $0x270] sm:$0xff] }
  0x27   : > { %487 = vst [vmem:[%s2818_s29 + $0x98] sm:$0xff] %v486_v19  ;;  %v528_v40 = vld [vmem:[%s2813_s28 + $0x280] sm:$0xff]  ;;  %v530_v41 = vld [vmem:[%s2813_s28 + $0x290] sm:$0xff] }
  0x28   : > { %489 = vst [vmem:[%s2818_s29 + $0xa0] sm:$0xff] %v488_v20  ;;  %v532_v42 = vld [vmem:[%s2813_s28 + $0x2a0] sm:$0xff]  ;;  %v534_v43 = vld [vmem:[%s2813_s28 + $0x2b0] sm:$0xff] }
  0x29   : > { %491 = vst [vmem:[%s2818_s29 + $0xa8] sm:$0xff] %v490_v21  ;;  %v536_v44 = vld [vmem:[%s2813_s28 + $0x2c0] sm:$0xff]  ;;  %v538_v45 = vld [vmem:[%s2813_s28 + $0x2d0] sm:$0xff] }
  0x2a   : > { %493 = vst [vmem:[%s2818_s29 + $0xb0] sm:$0xff] %v492_v22  ;;  %v540_v46 = vld [vmem:[%s2813_s28 + $0x2e0] sm:$0xff]  ;;  %v542_v47 = vld [vmem:[%s2813_s28 + $0x2f0] sm:$0xff] }
  0x2b   : > { %495 = vst [vmem:[%s2818_s29 + $0xb8] sm:$0xff] %v494_v23  ;;  %v544_v48 = vld [vmem:[%s2813_s28 + $0x300] sm:$0xff]  ;;  %v546_v49 = vld [vmem:[%s2813_s28 + $0x310] sm:$0xff] }
  0x2c   : > { %497 = vst [vmem:[%s2818_s29 + $0xc0] sm:$0xff] %v496_v24  ;;  %v548_v50 = vld [vmem:[%s2813_s28 + $0x320] sm:$0xff]  ;;  %v550_v51 = vld [vmem:[%s2813_s28 + $0x330] sm:$0xff] }
  0x2d   : > { %499 = vst [vmem:[%s2818_s29 + $0xc8] sm:$0xff] %v498_v25  ;;  %v552_v52 = vld [vmem:[%s2813_s28 + $0x340] sm:$0xff]  ;;  %v554_v53 = vld [vmem:[%s2813_s28 + $0x350] sm:$0xff] }
  0x2e   : > { %501 = vst [vmem:[%s2818_s29 + $0xd0] sm:$0xff] %v500_v26  ;;  %v556_v54 = vld [vmem:[%s2813_s28 + $0x360] sm:$0xff]  ;;  %v558_v55 = vld [vmem:[%s2813_s28 + $0x370] sm:$0xff] }
  0x2f   : > { %503 = vst [vmem:[%s2818_s29 + $0xd8] sm:$0xff] %v502_v27  ;;  %v560_v56 = vld [vmem:[%s2813_s28 + $0x380] sm:$0xff]  ;;  %v562_v57 = vld [vmem:[%s2813_s28 + $0x390] sm:$0xff] }
  0x30   : > { %505 = vst [vmem:[%s2818_s29 + $0xe0] sm:$0xff] %v504_v28  ;;  %v564_v58 = vld [vmem:[%s2813_s28 + $0x3a0] sm:$0xff]  ;;  %v566_v59 = vld [vmem:[%s2813_s28 + $0x3b0] sm:$0xff] }
  0x31   : > { %507 = vst [vmem:[%s2818_s29 + $0xe8] sm:$0xff] %v506_v29  ;;  %v568_v60 = vld [vmem:[%s2813_s28 + $0x3c0] sm:$0xff]  ;;  %v570_v61 = vld [vmem:[%s2813_s28 + $0x3d0] sm:$0xff] }
  0x32   : > { %509 = vst [vmem:[%s2818_s29 + $0xf0] sm:$0xff] %v508_v30  ;;  %v572_v62 = vld [vmem:[%s2813_s28 + $0x3e0] sm:$0xff]  ;;  %v574_v63 = vld [vmem:[%s2813_s28 + $0x3f0] sm:$0xff] }
  0x33   : > { %511 = vst [vmem:[%s2818_s29 + $0xf8] sm:$0xff] %v510_v31  ;;  %v576_v0 = vld [vmem:[%s2813_s28 + $0x400] sm:$0xff]  ;;  %v578_v1 = vld [vmem:[%s2813_s28 + $0x410] sm:$0xff] }
  0x34   : > { %513 = vst [vmem:[%s2818_s29 + $0x100] sm:$0xff] %v512_v32  ;;  %v580_v2 = vld [vmem:[%s2813_s28 + $0x420] sm:$0xff]  ;;  %v582_v3 = vld [vmem:[%s2813_s28 + $0x430] sm:$0xff] }
  0x35   : > { %515 = vst [vmem:[%s2818_s29 + $0x108] sm:$0xff] %v514_v33  ;;  %v584_v4 = vld [vmem:[%s2813_s28 + $0x440] sm:$0xff]  ;;  %v586_v5 = vld [vmem:[%s2813_s28 + $0x450] sm:$0xff] }
  0x36   : > { %517 = vst [vmem:[%s2818_s29 + $0x110] sm:$0xff] %v516_v34  ;;  %v588_v6 = vld [vmem:[%s2813_s28 + $0x460] sm:$0xff]  ;;  %v590_v7 = vld [vmem:[%s2813_s28 + $0x470] sm:$0xff] }
  0x37   : > { %519 = vst [vmem:[%s2818_s29 + $0x118] sm:$0xff] %v518_v35  ;;  %v592_v8 = vld [vmem:[%s2813_s28 + $0x480] sm:$0xff]  ;;  %v594_v9 = vld [vmem:[%s2813_s28 + $0x490] sm:$0xff] }
  0x38   : > { %521 = vst [vmem:[%s2818_s29 + $0x120] sm:$0xff] %v520_v36  ;;  %v596_v10 = vld [vmem:[%s2813_s28 + $0x4a0] sm:$0xff]  ;;  %v598_v11 = vld [vmem:[%s2813_s28 + $0x4b0] sm:$0xff] }
  0x39   : > { %523 = vst [vmem:[%s2818_s29 + $0x128] sm:$0xff] %v522_v37  ;;  %v600_v12 = vld [vmem:[%s2813_s28 + $0x4c0] sm:$0xff]  ;;  %v602_v13 = vld [vmem:[%s2813_s28 + $0x4d0] sm:$0xff] }
  0x3a   : > { %525 = vst [vmem:[%s2818_s29 + $0x130] sm:$0xff] %v524_v38  ;;  %v604_v14 = vld [vmem:[%s2813_s28 + $0x4e0] sm:$0xff]  ;;  %v606_v15 = vld [vmem:[%s2813_s28 + $0x4f0] sm:$0xff] }
  0x3b   : > { %527 = vst [vmem:[%s2818_s29 + $0x138] sm:$0xff] %v526_v39  ;;  %v608_v16 = vld [vmem:[%s2813_s28 + $0x500] sm:$0xff]  ;;  %v610_v17 = vld [vmem:[%s2813_s28 + $0x510] sm:$0xff] }
  0x3c   : > { %529 = vst [vmem:[%s2818_s29 + $0x140] sm:$0xff] %v528_v40  ;;  %v612_v18 = vld [vmem:[%s2813_s28 + $0x520] sm:$0xff]  ;;  %v614_v19 = vld [vmem:[%s2813_s28 + $0x530] sm:$0xff] }
  0x3d   : > { %531 = vst [vmem:[%s2818_s29 + $0x148] sm:$0xff] %v530_v41  ;;  %v616_v20 = vld [vmem:[%s2813_s28 + $0x540] sm:$0xff]  ;;  %v618_v21 = vld [vmem:[%s2813_s28 + $0x550] sm:$0xff] }
  0x3e   : > { %533 = vst [vmem:[%s2818_s29 + $0x150] sm:$0xff] %v532_v42  ;;  %v620_v22 = vld [vmem:[%s2813_s28 + $0x560] sm:$0xff]  ;;  %v622_v23 = vld [vmem:[%s2813_s28 + $0x570] sm:$0xff] }
  0x3f   : > { %535 = vst [vmem:[%s2818_s29 + $0x158] sm:$0xff] %v534_v43  ;;  %v624_v24 = vld [vmem:[%s2813_s28 + $0x580] sm:$0xff]  ;;  %v626_v25 = vld [vmem:[%s2813_s28 + $0x590] sm:$0xff] }
  0x40   : > { %537 = vst [vmem:[%s2818_s29 + $0x160] sm:$0xff] %v536_v44  ;;  %v628_v26 = vld [vmem:[%s2813_s28 + $0x5a0] sm:$0xff]  ;;  %v630_v27 = vld [vmem:[%s2813_s28 + $0x5b0] sm:$0xff] }
  0x41   : > { %539 = vst [vmem:[%s2818_s29 + $0x168] sm:$0xff] %v538_v45  ;;  %v632_v28 = vld [vmem:[%s2813_s28 + $0x5c0] sm:$0xff]  ;;  %v634_v29 = vld [vmem:[%s2813_s28 + $0x5d0] sm:$0xff] }
  0x42   : > { %541 = vst [vmem:[%s2818_s29 + $0x170] sm:$0xff] %v540_v46  ;;  %v636_v30 = vld [vmem:[%s2813_s28 + $0x5e0] sm:$0xff]  ;;  %v638_v31 = vld [vmem:[%s2813_s28 + $0x5f0] sm:$0xff] }
  0x43   : > { %543 = vst [vmem:[%s2818_s29 + $0x178] sm:$0xff] %v542_v47  ;;  %v640_v32 = vld [vmem:[%s2813_s28 + $0x600] sm:$0xff]  ;;  %v642_v33 = vld [vmem:[%s2813_s28 + $0x610] sm:$0xff] }
  0x44   : > { %545 = vst [vmem:[%s2818_s29 + $0x180] sm:$0xff] %v544_v48  ;;  %v644_v34 = vld [vmem:[%s2813_s28 + $0x620] sm:$0xff]  ;;  %v646_v35 = vld [vmem:[%s2813_s28 + $0x630] sm:$0xff] }
  0x45   : > { %547 = vst [vmem:[%s2818_s29 + $0x188] sm:$0xff] %v546_v49  ;;  %v648_v36 = vld [vmem:[%s2813_s28 + $0x640] sm:$0xff]  ;;  %v650_v37 = vld [vmem:[%s2813_s28 + $0x650] sm:$0xff] }
  0x46   : > { %549 = vst [vmem:[%s2818_s29 + $0x190] sm:$0xff] %v548_v50  ;;  %v652_v38 = vld [vmem:[%s2813_s28 + $0x660] sm:$0xff]  ;;  %v654_v39 = vld [vmem:[%s2813_s28 + $0x670] sm:$0xff] }
  0x47   : > { %551 = vst [vmem:[%s2818_s29 + $0x198] sm:$0xff] %v550_v51  ;;  %v656_v40 = vld [vmem:[%s2813_s28 + $0x680] sm:$0xff]  ;;  %v658_v41 = vld [vmem:[%s2813_s28 + $0x690] sm:$0xff] }
  0x48   : > { %553 = vst [vmem:[%s2818_s29 + $0x1a0] sm:$0xff] %v552_v52  ;;  %v660_v42 = vld [vmem:[%s2813_s28 + $0x6a0] sm:$0xff]  ;;  %v662_v43 = vld [vmem:[%s2813_s28 + $0x6b0] sm:$0xff] }
  0x49   : > { %555 = vst [vmem:[%s2818_s29 + $0x1a8] sm:$0xff] %v554_v53  ;;  %v664_v44 = vld [vmem:[%s2813_s28 + $0x6c0] sm:$0xff]  ;;  %v666_v45 = vld [vmem:[%s2813_s28 + $0x6d0] sm:$0xff] }
  0x4a   : > { %557 = vst [vmem:[%s2818_s29 + $0x1b0] sm:$0xff] %v556_v54  ;;  %v668_v46 = vld [vmem:[%s2813_s28 + $0x6e0] sm:$0xff]  ;;  %v670_v47 = vld [vmem:[%s2813_s28 + $0x6f0] sm:$0xff] }
  0x4b   : > { %559 = vst [vmem:[%s2818_s29 + $0x1b8] sm:$0xff] %v558_v55  ;;  %v672_v48 = vld [vmem:[%s2813_s28 + $0x700] sm:$0xff]  ;;  %v674_v49 = vld [vmem:[%s2813_s28 + $0x710] sm:$0xff] }
  0x4c   : > { %561 = vst [vmem:[%s2818_s29 + $0x1c0] sm:$0xff] %v560_v56  ;;  %v676_v50 = vld [vmem:[%s2813_s28 + $0x720] sm:$0xff]  ;;  %v678_v51 = vld [vmem:[%s2813_s28 + $0x730] sm:$0xff] }
  0x4d   : > { %563 = vst [vmem:[%s2818_s29 + $0x1c8] sm:$0xff] %v562_v57  ;;  %v680_v52 = vld [vmem:[%s2813_s28 + $0x740] sm:$0xff]  ;;  %v682_v53 = vld [vmem:[%s2813_s28 + $0x750] sm:$0xff] }
  0x4e   : > { %565 = vst [vmem:[%s2818_s29 + $0x1d0] sm:$0xff] %v564_v58  ;;  %v684_v54 = vld [vmem:[%s2813_s28 + $0x760] sm:$0xff]  ;;  %v686_v55 = vld [vmem:[%s2813_s28 + $0x770] sm:$0xff] }
  0x4f   : > { %567 = vst [vmem:[%s2818_s29 + $0x1d8] sm:$0xff] %v566_v59  ;;  %v688_v56 = vld [vmem:[%s2813_s28 + $0x780] sm:$0xff]  ;;  %v690_v57 = vld [vmem:[%s2813_s28 + $0x790] sm:$0xff] }
  0x50   : > { %569 = vst [vmem:[%s2818_s29 + $0x1e0] sm:$0xff] %v568_v60  ;;  %v692_v58 = vld [vmem:[%s2813_s28 + $0x7a0] sm:$0xff]  ;;  %v694_v59 = vld [vmem:[%s2813_s28 + $0x7b0] sm:$0xff] }
  0x51   : > { %571 = vst [vmem:[%s2818_s29 + $0x1e8] sm:$0xff] %v570_v61  ;;  %v696_v60 = vld [vmem:[%s2813_s28 + $0x7c0] sm:$0xff]  ;;  %v698_v61 = vld [vmem:[%s2813_s28 + $0x7d0] sm:$0xff] }
  0x52   : > { %573 = vst [vmem:[%s2818_s29 + $0x1f0] sm:$0xff] %v572_v62  ;;  %v700_v62 = vld [vmem:[%s2813_s28 + $0x7e0] sm:$0xff] }
  0x53   : > { %575 = vst [vmem:[%s2818_s29 + $0x1f8] sm:$0xff] %v574_v63  ;;  %v702_v63 = vld [vmem:[%s2813_s28 + $0x7f0] sm:$0xff] }
  0x54   : > { %577 = vst [vmem:[%s2818_s29 + $0x200] sm:$0xff] %v576_v0 }
  0x55   : > { %579 = vst [vmem:[%s2818_s29 + $0x208] sm:$0xff] %v578_v1 }
  0x56   : > { %581 = vst [vmem:[%s2818_s29 + $0x210] sm:$0xff] %v580_v2 }
  0x57   : > { %583 = vst [vmem:[%s2818_s29 + $0x218] sm:$0xff] %v582_v3 }
  0x58   : > { %585 = vst [vmem:[%s2818_s29 + $0x220] sm:$0xff] %v584_v4 }
  0x59   : > { %587 = vst [vmem:[%s2818_s29 + $0x228] sm:$0xff] %v586_v5 }
  0x5a   : > { %589 = vst [vmem:[%s2818_s29 + $0x230] sm:$0xff] %v588_v6 }
  0x5b   : > { %591 = vst [vmem:[%s2818_s29 + $0x238] sm:$0xff] %v590_v7 }
  0x5c   : > { %593 = vst [vmem:[%s2818_s29 + $0x240] sm:$0xff] %v592_v8 }
  0x5d   : > { %595 = vst [vmem:[%s2818_s29 + $0x248] sm:$0xff] %v594_v9 }
  0x5e   : > { %597 = vst [vmem:[%s2818_s29 + $0x250] sm:$0xff] %v596_v10 }
  0x5f   : > { %599 = vst [vmem:[%s2818_s29 + $0x258] sm:$0xff] %v598_v11 }
  0x60   : > { %601 = vst [vmem:[%s2818_s29 + $0x260] sm:$0xff] %v600_v12 }
  0x61   : > { %603 = vst [vmem:[%s2818_s29 + $0x268] sm:$0xff] %v602_v13 }
  0x62   : > { %605 = vst [vmem:[%s2818_s29 + $0x270] sm:$0xff] %v604_v14 }
  0x63   : > { %607 = vst [vmem:[%s2818_s29 + $0x278] sm:$0xff] %v606_v15 }
  0x64   : > { %609 = vst [vmem:[%s2818_s29 + $0x280] sm:$0xff] %v608_v16 }
  0x65   : > { %611 = vst [vmem:[%s2818_s29 + $0x288] sm:$0xff] %v610_v17 }
  0x66   : > { %613 = vst [vmem:[%s2818_s29 + $0x290] sm:$0xff] %v612_v18 }
  0x67   : > { %615 = vst [vmem:[%s2818_s29 + $0x298] sm:$0xff] %v614_v19 }
  0x68   : > { %617 = vst [vmem:[%s2818_s29 + $0x2a0] sm:$0xff] %v616_v20 }
  0x69   : > { %619 = vst [vmem:[%s2818_s29 + $0x2a8] sm:$0xff] %v618_v21 }
  0x6a   : > { %621 = vst [vmem:[%s2818_s29 + $0x2b0] sm:$0xff] %v620_v22 }
  0x6b   : > { %623 = vst [vmem:[%s2818_s29 + $0x2b8] sm:$0xff] %v622_v23 }
  0x6c   : > { %625 = vst [vmem:[%s2818_s29 + $0x2c0] sm:$0xff] %v624_v24 }
  0x6d   : > { %627 = vst [vmem:[%s2818_s29 + $0x2c8] sm:$0xff] %v626_v25 }
  0x6e   : > { %629 = vst [vmem:[%s2818_s29 + $0x2d0] sm:$0xff] %v628_v26 }
  0x6f   : > { %631 = vst [vmem:[%s2818_s29 + $0x2d8] sm:$0xff] %v630_v27 }
  0x70   : > { %633 = vst [vmem:[%s2818_s29 + $0x2e0] sm:$0xff] %v632_v28 }
  0x71   : > { %635 = vst [vmem:[%s2818_s29 + $0x2e8] sm:$0xff] %v634_v29 }
  0x72   : > { %637 = vst [vmem:[%s2818_s29 + $0x2f0] sm:$0xff] %v636_v30 }
  0x73   : > { %639 = vst [vmem:[%s2818_s29 + $0x2f8] sm:$0xff] %v638_v31 }
  0x74   : > { %641 = vst [vmem:[%s2818_s29 + $0x300] sm:$0xff] %v640_v32 }
  0x75   : > { %643 = vst [vmem:[%s2818_s29 + $0x308] sm:$0xff] %v642_v33 }
  0x76   : > { %645 = vst [vmem:[%s2818_s29 + $0x310] sm:$0xff] %v644_v34 }
  0x77   : > { %647 = vst [vmem:[%s2818_s29 + $0x318] sm:$0xff] %v646_v35 }
  0x78   : > { %649 = vst [vmem:[%s2818_s29 + $0x320] sm:$0xff] %v648_v36 }
  0x79   : > { %651 = vst [vmem:[%s2818_s29 + $0x328] sm:$0xff] %v650_v37 }
  0x7a   : > { %653 = vst [vmem:[%s2818_s29 + $0x330] sm:$0xff] %v652_v38 }
  0x7b   : > { %655 = vst [vmem:[%s2818_s29 + $0x338] sm:$0xff] %v654_v39 }
  0x7c   : > { %657 = vst [vmem:[%s2818_s29 + $0x340] sm:$0xff] %v656_v40 }
  0x7d   : > { %659 = vst [vmem:[%s2818_s29 + $0x348] sm:$0xff] %v658_v41 }
  0x7e   : > { %661 = vst [vmem:[%s2818_s29 + $0x350] sm:$0xff] %v660_v42 }
  0x7f   : > { %663 = vst [vmem:[%s2818_s29 + $0x358] sm:$0xff] %v662_v43 }
  0x80   : > { %665 = vst [vmem:[%s2818_s29 + $0x360] sm:$0xff] %v664_v44 }
  0x81   : > { %667 = vst [vmem:[%s2818_s29 + $0x368] sm:$0xff] %v666_v45 }
  0x82   : > { %669 = vst [vmem:[%s2818_s29 + $0x370] sm:$0xff] %v668_v46 }
  0x83   : > { %671 = vst [vmem:[%s2818_s29 + $0x378] sm:$0xff] %v670_v47 }
  0x84   : > { %673 = vst [vmem:[%s2818_s29 + $0x380] sm:$0xff] %v672_v48 }
  0x85   : > { %675 = vst [vmem:[%s2818_s29 + $0x388] sm:$0xff] %v674_v49 }
  0x86   : > { %677 = vst [vmem:[%s2818_s29 + $0x390] sm:$0xff] %v676_v50 }
  0x87   : > { %679 = vst [vmem:[%s2818_s29 + $0x398] sm:$0xff] %v678_v51 }
  0x88   : > { %681 = vst [vmem:[%s2818_s29 + $0x3a0] sm:$0xff] %v680_v52 }
  0x89   : > { %683 = vst [vmem:[%s2818_s29 + $0x3a8] sm:$0xff] %v682_v53 }
  0x8a   : > { %685 = vst [vmem:[%s2818_s29 + $0x3b0] sm:$0xff] %v684_v54 }
  0x8b   : > { %687 = vst [vmem:[%s2818_s29 + $0x3b8] sm:$0xff] %v686_v55 }
  0x8c   : > { %689 = vst [vmem:[%s2818_s29 + $0x3c0] sm:$0xff] %v688_v56 }
  0x8d   : > { %691 = vst [vmem:[%s2818_s29 + $0x3c8] sm:$0xff] %v690_v57 }
  0x8e   : > { %693 = vst [vmem:[%s2818_s29 + $0x3d0] sm:$0xff] %v692_v58 }
  0x8f   : > { %695 = vst [vmem:[%s2818_s29 + $0x3d8] sm:$0xff] %v694_v59 }
  0x90   : > { %697 = vst [vmem:[%s2818_s29 + $0x3e0] sm:$0xff] %v696_v60 }
  0x91   : > { %699 = vst [vmem:[%s2818_s29 + $0x3e8] sm:$0xff] %v698_v61 }
  0x92   : > { %701 = vst [vmem:[%s2818_s29 + $0x3f0] sm:$0xff] %v700_v62 }
  0x93   : > { %703 = vst [vmem:[%s2818_s29 + $0x3f8] sm:$0xff] %v702_v63 }
  0x94 PF: > { %p1974_p8 = scmp.ge.s32.totalorder %s2743_s16, 1  ;;  %p716_p9 = scmp.lt.s32.totalorder %s2743_s16, 3 }
  0x96   : > { %p717_p10 = pnand %p1974_p8, %p716_p9 }
  0x97   : > { %s723_s30 = sand.u32 (!%p717_p10), 1, %s2727_s12  }
  0x98   : > { %720 = sbr.rel (%p717_p10) target bundleno = 446 (0x1be), region = 66  ;;  %s1975_s4 = sshll.u32 (!%p717_p10), %s723_s30, 10 }
  0x99   : > { %s3078_s5 = scalar_lea.vmem (!%p717_p10), [#allocation2], %s1975_s4  ;;  %s1976_s7 = sshll.u32 (!%p717_p10), %s723_s30, 4 }
  0x9a   : > { %s754_s8 = scalar_lea.vmem (!%p717_p10), [#allocation3], %s1976_s7 }
  0x9d   : > { %v2068_v0 = vld [vmem:[%s3078_s5 + $0x70] sm:$0xf]  ;;  %v2551_v1 = vld [vmem:[%s3078_s5 + $0x74] sm:$0xf0]  ;;  %v2060_v11 = vld [vmem:[%s3078_s5 + $0x60] sm:$0xf] }
  0x9e   : > { %v2132_v2 = vld [vmem:[%s3078_s5 + $0xf0] sm:$0xf]  ;;  %v2069_v3 = vor.u32 %v2551_v1, %v2068_v0  ;;  %v2567_v4 = vld [vmem:[%s3078_s5 + $0xf4] sm:$0xf0]  ;;  %v2549_v13 = vld [vmem:[%s3078_s5 + $0x64] sm:$0xf0] }
  0x9f   : > { %v2196_v5 = vld [vmem:[%s3078_s5 + $0x170] sm:$0xf]  ;;  %v2583_v6 = vld [vmem:[%s3078_s5 + $0x174] sm:$0xf0]  ;;  %v2133_v7 = vor.u32 %v2567_v4, %v2132_v2  ;;  %v2124_v14 = vld [vmem:[%s3078_s5 + $0xe0] sm:$0xf]  ;;  %v2061_v16 = vor.u32 %v2549_v13, %v2060_v11 }
  0xa0   : > { %v2197_v8 = vor.u32 %v2583_v6, %v2196_v5  ;;  %v2260_v9 = vld [vmem:[%s3078_s5 + $0x1f0] sm:$0xf]  ;;  %v2599_v10 = vld [vmem:[%s3078_s5 + $0x1f4] sm:$0xf0]  ;;  %1592 = vmatpush.bf16.msra.mxu0 %v2069_v3  ;;  %v2565_v15 = vld [vmem:[%s3078_s5 + $0xe4] sm:$0xf0] }
  0xa1   : > { %v2261_v12 = vor.u32 %v2599_v10, %v2260_v9  ;;  %1606 = vmatpush.bf16.msra.mxu1 %v2133_v7  ;;  %v2125_v17 = vor.u32 %v2565_v15, %v2124_v14  ;;  %v2188_v18 = vld [vmem:[%s3078_s5 + $0x160] sm:$0xf]  ;;  %v2581_v19 = vld [vmem:[%s3078_s5 + $0x164] sm:$0xf0]  ;;  %v2052_v23 = vld [vmem:[%s3078_s5 + $0x50] sm:$0xf] }
  0xa2   : > { %1620 = vmatpush.bf16.msra.mxu2 %v2197_v8  ;;  %v2252_v20 = vld [vmem:[%s3078_s5 + $0x1e0] sm:$0xf]  ;;  %v2189_v21 = vor.u32 %v2581_v19, %v2188_v18  ;;  %v2597_v22 = vld [vmem:[%s3078_s5 + $0x1e4] sm:$0xf0]  ;;  %v2547_v24 = vld [vmem:[%s3078_s5 + $0x54] sm:$0xf0] }
  0xa3   : > { %1634 = vmatpush.bf16.msra.mxu3 %v2261_v12  ;;  %v2253_v25 = vor.u32 %v2597_v22, %v2252_v20  ;;  %v2116_v26 = vld [vmem:[%s3078_s5 + $0xd0] sm:$0xf]  ;;  %v2563_v27 = vld [vmem:[%s3078_s5 + $0xd4] sm:$0xf0]  ;;  %v2053_v29 = vor.u32 %v2547_v24, %v2052_v23  ;;  %v2044_v35 = vld [vmem:[%s3078_s5 + $0x40] sm:$0xf] }
  0xa4   : > { %v2180_v28 = vld [vmem:[%s3078_s5 + $0x150] sm:$0xf]  ;;  %1593 = vmatpush.bf16.msra.mxu0 %v2061_v16  ;;  %v2579_v30 = vld [vmem:[%s3078_s5 + $0x154] sm:$0xf0]  ;;  %v2117_v33 = vor.u32 %v2563_v27, %v2116_v26  ;;  %v2545_v36 = vld [vmem:[%s3078_s5 + $0x44] sm:$0xf0] }
  0xa5   : > { %v2244_v31 = vld [vmem:[%s3078_s5 + $0x1d0] sm:$0xf]  ;;  %v2595_v32 = vld [vmem:[%s3078_s5 + $0x1d4] sm:$0xf0]  ;;  %1607 = vmatpush.bf16.msra.mxu1 %v2125_v17  ;;  %v2181_v34 = vor.u32 %v2579_v30, %v2180_v28  ;;  %v2108_v37 = vld [vmem:[%s3078_s5 + $0xc0] sm:$0xf]  ;;  %v2045_v44 = vor.u32 %v2545_v36, %v2044_v35 }
  0xa6   : > { %1621 = vmatpush.bf16.msra.mxu2 %v2189_v21  ;;  %v2245_v38 = vor.u32 %v2595_v32, %v2244_v31  ;;  %v2561_v39 = vld [vmem:[%s3078_s5 + $0xc4] sm:$0xf0]  ;;  %v2172_v40 = vld [vmem:[%s3078_s5 + $0x140] sm:$0xf]  ;;  %v2036_v47 = vld [vmem:[%s3078_s5 + $0x30] sm:$0xf] }
  0xa7   : > { %1635 = vmatpush.bf16.msra.mxu3 %v2253_v25  ;;  %v2577_v41 = vld [vmem:[%s3078_s5 + $0x144] sm:$0xf0]  ;;  %v2236_v42 = vld [vmem:[%s3078_s5 + $0x1c0] sm:$0xf]  ;;  %v2109_v45 = vor.u32 %v2561_v39, %v2108_v37  ;;  %v2543_v48 = vld [vmem:[%s3078_s5 + $0x34] sm:$0xf0] }
  0xa8   : > { %v2593_v43 = vld [vmem:[%s3078_s5 + $0x1c4] sm:$0xf0]  ;;  %1594 = vmatpush.bf16.msra.mxu0 %v2053_v29  ;;  %v2173_v46 = vor.u32 %v2577_v41, %v2172_v40  ;;  %v2100_v49 = vld [vmem:[%s3078_s5 + $0xb0] sm:$0xf]  ;;  %v2559_v51 = vld [vmem:[%s3078_s5 + $0xb4] sm:$0xf0]  ;;  %v2037_v56 = vor.u32 %v2543_v48, %v2036_v47 }
  0xa9   : > { %1608 = vmatpush.bf16.msra.mxu1 %v2117_v33  ;;  %v2237_v50 = vor.u32 %v2593_v43, %v2236_v42  ;;  %v2164_v52 = vld [vmem:[%s3078_s5 + $0x130] sm:$0xf]  ;;  %v2575_v53 = vld [vmem:[%s3078_s5 + $0x134] sm:$0xf0]  ;;  %v2101_v57 = vor.u32 %v2559_v51, %v2100_v49  ;;  %v2028_v59 = vld [vmem:[%s3078_s5 + $0x20] sm:$0xf] }
  0xaa   : > { %1622 = vmatpush.bf16.msra.mxu2 %v2181_v34  ;;  %v2228_v54 = vld [vmem:[%s3078_s5 + $0x1b0] sm:$0xf]  ;;  %v2591_v55 = vld [vmem:[%s3078_s5 + $0x1b4] sm:$0xf0]  ;;  %v2165_v58 = vor.u32 %v2575_v53, %v2164_v52  ;;  %v2541_v60 = vld [vmem:[%s3078_s5 + $0x24] sm:$0xf0] }
  0xab   : > { %1636 = vmatpush.bf16.msra.mxu3 %v2245_v38  ;;  %v2092_v61 = vld [vmem:[%s3078_s5 + $0xa0] sm:$0xf]  ;;  %v2229_v62 = vor.u32 %v2591_v55, %v2228_v54  ;;  %v2557_v63 = vld [vmem:[%s3078_s5 + $0xa4] sm:$0xf0]  ;;  %v2029_v4 = vor.u32 %v2541_v60, %v2028_v59  ;;  %v2020_v7 = vld [vmem:[%s3078_s5 + $0x10] sm:$0xf] }
  0xac   : > { %1595 = vmatpush.bf16.msra.mxu0 %v2045_v44  ;;  %v2156_v0 = vld [vmem:[%s3078_s5 + $0x120] sm:$0xf]  ;;  %v2573_v1 = vld [vmem:[%s3078_s5 + $0x124] sm:$0xf0]  ;;  %v2093_v5 = vor.u32 %v2557_v63, %v2092_v61  ;;  %v2539_v8 = vld [vmem:[%s3078_s5 + $0x14] sm:$0xf0] }
  0xad   : > { %1609 = vmatpush.bf16.msra.mxu1 %v2109_v45  ;;  %v2220_v2 = vld [vmem:[%s3078_s5 + $0x1a0] sm:$0xf]  ;;  %v2589_v3 = vld [vmem:[%s3078_s5 + $0x1a4] sm:$0xf0]  ;;  %v2157_v6 = vor.u32 %v2573_v1, %v2156_v0  ;;  %v2084_v9 = vld [vmem:[%s3078_s5 + $0x90] sm:$0xf]  ;;  %v2021_v16 = vor.u32 %v2539_v8, %v2020_v7 }
  0xae   : > { %1623 = vmatpush.bf16.msra.mxu2 %v2173_v46  ;;  %v2221_v10 = vor.u32 %v2589_v3, %v2220_v2  ;;  %v2555_v11 = vld [vmem:[%s3078_s5 + $0x94] sm:$0xf0]  ;;  %v2148_v12 = vld [vmem:[%s3078_s5 + $0x110] sm:$0xf]  ;;  %v2012_v17 = vld [vmem:[%s3078_s5] sm:$0xf] }
  0xaf   : > { %1637 = vmatpush.bf16.msra.mxu3 %v2237_v50  ;;  %v2571_v13 = vld [vmem:[%s3078_s5 + $0x114] sm:$0xf0]  ;;  %v2212_v14 = vld [vmem:[%s3078_s5 + $0x190] sm:$0xf]  ;;  %v2537_v18 = vld [vmem:[%s3078_s5 + $0x4] sm:$0xf0]  ;;  %v2085_v19 = vor.u32 %v2555_v11, %v2084_v9 }
  0xb0   : > { %1596 = vmatpush.bf16.msra.mxu0 %v2037_v56  ;;  %v2587_v15 = vld [vmem:[%s3078_s5 + $0x194] sm:$0xf0]  ;;  %v2149_v20 = vor.u32 %v2571_v13, %v2148_v12  ;;  %v2076_v21 = vld [vmem:[%s3078_s5 + $0x80] sm:$0xf]  ;;  %v2553_v22 = vld [vmem:[%s3078_s5 + $0x84] sm:$0xf0]  ;;  %v2013_v31 = vor.u32 %v2537_v18, %v2012_v17 }
  0xb1   : > { %1610 = vmatpush.bf16.msra.mxu1 %v2101_v57  ;;  %v2140_v23 = vld [vmem:[%s3078_s5 + $0x100] sm:$0xf]  ;;  %v2213_v24 = vor.u32 %v2587_v15, %v2212_v14  ;;  %v2569_v25 = vld [vmem:[%s3078_s5 + $0x104] sm:$0xf0]  ;;  %v2324_v28 = vld [vmem:[%s3078_s5 + $0x270] sm:$0xf]  ;;  %v2077_v35 = vor.u32 %v2553_v22, %v2076_v21 }
  0xb2   : > { %1624 = vmatpush.bf16.msra.mxu2 %v2165_v58  ;;  %v2204_v26 = vld [vmem:[%s3078_s5 + $0x180] sm:$0xf]  ;;  %v2585_v27 = vld [vmem:[%s3078_s5 + $0x184] sm:$0xf0]  ;;  %v2615_v29 = vld [vmem:[%s3078_s5 + $0x274] sm:$0xf0]  ;;  %v2141_v36 = vor.u32 %v2569_v25, %v2140_v23 }
  0xb3   : > { %1638 = vmatpush.bf16.msra.mxu3 %v2229_v62  ;;  %v2388_v30 = vld [vmem:[%s3078_s5 + $0x2f0] sm:$0xf]  ;;  %v2631_v32 = vld [vmem:[%s3078_s5 + $0x2f4] sm:$0xf0]  ;;  %v2205_v39 = vor.u32 %v2585_v27, %v2204_v26  ;;  %v2325_v40 = vor.u32 %v2615_v29, %v2324_v28  ;;  %v2316_v41 = vld [vmem:[%s3078_s5 + $0x260] sm:$0xf] }
  0xb4   : > { %1597 = vmatpush.bf16.msra.mxu0 %v2029_v4  ;;  %v2452_v33 = vld [vmem:[%s3078_s5 + $0x370] sm:$0xf]  ;;  %v2647_v34 = vld [vmem:[%s3078_s5 + $0x374] sm:$0xf0]  ;;  %v2613_v42 = vld [vmem:[%s3078_s5 + $0x264] sm:$0xf0]  ;;  %v2389_v43 = vor.u32 %v2631_v32, %v2388_v30 }
  0xb5   : > { %1611 = vmatpush.bf16.msra.mxu1 %v2093_v5  ;;  %v2516_v37 = vld [vmem:[%s3078_s5 + $0x3f0] sm:$0xf]  ;;  %v2663_v38 = vld [vmem:[%s3078_s5 + $0x3f4] sm:$0xf0]  ;;  %v2453_v44 = vor.u32 %v2647_v34, %v2452_v33  ;;  %v2380_v45 = vld [vmem:[%s3078_s5 + $0x2e0] sm:$0xf]  ;;  %v2317_v55 = vor.u32 %v2613_v42, %v2316_v41 }
  0xb6   : > { %1625 = vmatpush.bf16.msra.mxu2 %v2157_v6  ;;  %v2629_v46 = vld [vmem:[%s3078_s5 + $0x2e4] sm:$0xf0]  ;;  %v2444_v47 = vld [vmem:[%s3078_s5 + $0x360] sm:$0xf]  ;;  %v2517_v48 = vor.u32 %v2663_v38, %v2516_v37  ;;  %v2308_v56 = vld [vmem:[%s3078_s5 + $0x250] sm:$0xf] }
  0xb7   : > { %1639 = vmatpush.bf16.msra.mxu3 %v2221_v10  ;;  %v2645_v49 = vld [vmem:[%s3078_s5 + $0x364] sm:$0xf0]  ;;  %v2508_v50 = vld [vmem:[%s3078_s5 + $0x3e0] sm:$0xf]  ;;  %v2611_v57 = vld [vmem:[%s3078_s5 + $0x254] sm:$0xf0]  ;;  %v2381_v60 = vor.u32 %v2629_v46, %v2380_v45 }
  0xb8   : > { %1598 = vmatpush.bf16.msra.mxu0 %v2021_v16  ;;  %v2661_v51 = vld [vmem:[%s3078_s5 + $0x3e4] sm:$0xf0]  ;;  %v1980_v52 = vld [vmem:[%s3443_s0] sm:$0xf]  ;;  %v2445_v61 = vor.u32 %v2645_v49, %v2444_v47  ;;  %v2372_v62 = vld [vmem:[%s3078_s5 + $0x2d0] sm:$0xf]  ;;  %v2309_v9 = vor.u32 %v2611_v57, %v2308_v56 }
  0xb9   : > { %1612 = vmatpush.bf16.msra.mxu1 %v2085_v19  ;;  %v2532_v53 = vld [vmem:[%s3443_s0 + $0x1c] sm:$0xf0]  ;;  %v1988_v54 = vld [vmem:[%s3443_s0 + $0x8] sm:$0xf]  ;;  %v2627_v63 = vld [vmem:[%s3078_s5 + $0x2d4] sm:$0xf0]  ;;  %v2509_v2 = vor.u32 %v2661_v51, %v2508_v50 }
  0xba   : > { %1626 = vmatpush.bf16.msra.mxu2 %v2149_v20  ;;  %v3171_v58 = vor.u32 %v2532_v53, %v1980_v52  ;;  %v2533_v59 = vld [vmem:[%s3443_s0 + $0x24] sm:$0xf0]  ;;  %v2436_v0 = vld [vmem:[%s3078_s5 + $0x350] sm:$0xf]  ;;  %v2643_v3 = vld [vmem:[%s3078_s5 + $0x354] sm:$0xf0]  ;;  %v2373_v12 = vor.u32 %v2627_v63, %v2372_v62 }
  0xbb   : > { %1640 = vmatpush.bf16.msra.mxu3 %v2213_v24  ;;  %v3179_v1 = vor.u32 %v2533_v59, %v1988_v54  ;;  %v2500_v4 = vld [vmem:[%s3078_s5 + $0x3d0] sm:$0xf]  ;;  %v2659_v5 = vld [vmem:[%s3078_s5 + $0x3d4] sm:$0xf0]  ;;  %v2528_v6 = vld [vmem:[%s3443_s0 + $0x4] sm:$0xf]  ;;  %v2437_v13 = vor.u32 %v2643_v3, %v2436_v0 }
  0xbc   : > { %1599 = vmatpush.bf16.msra.mxu0 %v2013_v31  ;;  %v1982_v7 = vld [vmem:[%s3443_s0 + $0x20] sm:$0xf0]  ;;  %v2529_v8 = vld [vmem:[%s3443_s0 + $0xc] sm:$0xf]  ;;  %v2300_v14 = vld [vmem:[%s3078_s5 + $0x240] sm:$0xf]  ;;  %v2501_v18 = vor.u32 %v2659_v5, %v2500_v4 }
  0xbd   : > { %1613 = vmatpush.bf16.msra.mxu1 %v2077_v35  ;;  %v3195_v10 = vor.u32 %v2528_v6, %v1982_v7  ;;  %v1990_v11 = vld [vmem:[%s3443_s0 + $0x28] sm:$0xf0]  ;;  %v2609_v15 = vld [vmem:[%s3078_s5 + $0x244] sm:$0xf0]  ;;  %v2364_v16 = vld [vmem:[%s3078_s5 + $0x2c0] sm:$0xf] }
  0xbe   : > { %1627 = vmatpush.bf16.msra.mxu2 %v2141_v36  ;;  %v3203_v17 = vor.u32 %v2529_v8, %v1990_v11  ;;  %v2625_v19 = vld [vmem:[%s3078_s5 + $0x2c4] sm:$0xf0]  ;;  %v2428_v20 = vld [vmem:[%s3078_s5 + $0x340] sm:$0xf]  ;;  %v2301_v24 = vor.u32 %v2609_v15, %v2300_v14  ;;  %v2292_v27 = vld [vmem:[%s3078_s5 + $0x230] sm:$0xf] }
  0xbf   : > { %1641 = vmatpush.bf16.msra.mxu3 %v2205_v39  ;;  %1600 = vmatmul.bf16.vlgmr.msra.gmra.mxu0 %v3171_v58  ;;  %v2641_v21 = vld [vmem:[%s3078_s5 + $0x344] sm:$0xf0]  ;;  %v2492_v22 = vld [vmem:[%s3078_s5 + $0x3c0] sm:$0xf]  ;;  %v2365_v25 = vor.u32 %v2625_v19, %v2364_v16  ;;  %v2607_v28 = vld [vmem:[%s3078_s5 + $0x234] sm:$0xf0] }
  0xc0   : > { %1648 = vmatpush.bf16.msrb.mxu0 %v2325_v40  ;;  %1614 = vmatmul.bf16.vlgmr.msra.gmra.mxu1 %v3195_v10  ;;  %v2657_v23 = vld [vmem:[%s3078_s5 + $0x3c4] sm:$0xf0]  ;;  %v2429_v26 = vor.u32 %v2641_v21, %v2428_v20  ;;  %v2356_v29 = vld [vmem:[%s3078_s5 + $0x2b0] sm:$0xf]  ;;  %v2623_v31 = vld [vmem:[%s3078_s5 + $0x2b4] sm:$0xf0]  ;;  %v2293_v36 = vor.u32 %v2607_v28, %v2292_v27 }
  0xc1   : > { %1662 = vmatpush.bf16.msrb.mxu1 %v2389_v43  ;;  %1628 = vmatmul.bf16.vlgmr.msra.gmra.mxu2 %v3179_v1  ;;  %v2493_v30 = vor.u32 %v2657_v23, %v2492_v22  ;;  %v2420_v32 = vld [vmem:[%s3078_s5 + $0x330] sm:$0xf]  ;;  %v2639_v33 = vld [vmem:[%s3078_s5 + $0x334] sm:$0xf0]  ;;  %v2357_v37 = vor.u32 %v2623_v31, %v2356_v29  ;;  %v2284_v39 = vld [vmem:[%s3078_s5 + $0x220] sm:$0xf] }
  0xc2   : > { %1676 = vmatpush.bf16.msrb.mxu2 %v2453_v44  ;;  %1642 = vmatmul.bf16.vlgmr.msra.gmra.mxu3 %v3203_v17  ;;  %v2484_v34 = vld [vmem:[%s3078_s5 + $0x3b0] sm:$0xf]  ;;  %v2655_v35 = vld [vmem:[%s3078_s5 + $0x3b4] sm:$0xf0]  ;;  %v2421_v38 = vor.u32 %v2639_v33, %v2420_v32  ;;  %v2605_v40 = vld [vmem:[%s3078_s5 + $0x224] sm:$0xf0] }
  0xc3   : > { %1690 = vmatpush.bf16.msrb.mxu3 %v2517_v48  ;;  %v2348_v41 = vld [vmem:[%s3078_s5 + $0x2a0] sm:$0xf]  ;;  %v2485_v42 = vor.u32 %v2655_v35, %v2484_v34  ;;  %v2621_v43 = vld [vmem:[%s3078_s5 + $0x2a4] sm:$0xf0]  ;;  %v2285_v48 = vor.u32 %v2605_v40, %v2284_v39  ;;  %v2276_v49 = vld [vmem:[%s3078_s5 + $0x210] sm:$0xf] }
  0xc4   : > { %1649 = vmatpush.bf16.msrb.mxu0 %v2317_v55  ;;  %v2412_v44 = vld [vmem:[%s3078_s5 + $0x320] sm:$0xf]  ;;  %v2637_v45 = vld [vmem:[%s3078_s5 + $0x324] sm:$0xf0]  ;;  %v2349_v50 = vor.u32 %v2621_v43, %v2348_v41  ;;  %v2603_v52 = vld [vmem:[%s3078_s5 + $0x214] sm:$0xf0] }
  0xc5   : > { %1663 = vmatpush.bf16.msrb.mxu1 %v2381_v60  ;;  %v2476_v46 = vld [vmem:[%s3078_s5 + $0x3a0] sm:$0xf]  ;;  %v2653_v47 = vld [vmem:[%s3078_s5 + $0x3a4] sm:$0xf0]  ;;  %v2413_v51 = vor.u32 %v2637_v45, %v2412_v44  ;;  %v2340_v53 = vld [vmem:[%s3078_s5 + $0x290] sm:$0xf]  ;;  %v2277_v63 = vor.u32 %v2603_v52, %v2276_v49 }
  0xc6   : > { %1677 = vmatpush.bf16.msrb.mxu2 %v2445_v61  ;;  %v2619_v54 = vld [vmem:[%s3078_s5 + $0x294] sm:$0xf0]  ;;  %v2477_v55 = vor.u32 %v2653_v47, %v2476_v46  ;;  %v2404_v56 = vld [vmem:[%s3078_s5 + $0x310] sm:$0xf]  ;;  %v2268_v61 = vld [vmem:[%s3078_s5 + $0x200] sm:$0xf] }
  0xc7   : > { %1691 = vmatpush.bf16.msrb.mxu3 %v2509_v2  ;;  %v2635_v57 = vld [vmem:[%s3078_s5 + $0x314] sm:$0xf0]  ;;  %v2468_v59 = vld [vmem:[%s3078_s5 + $0x390] sm:$0xf]  ;;  %v2601_v62 = vld [vmem:[%s3078_s5 + $0x204] sm:$0xf0]  ;;  %v2341_v5 = vor.u32 %v2619_v54, %v2340_v53 }
  0xc8   : > { %1650 = vmatpush.bf16.msrb.mxu0 %v2309_v9  ;;  %v2651_v60 = vld [vmem:[%s3078_s5 + $0x394] sm:$0xf0]  ;;  %v2332_v0 = vld [vmem:[%s3078_s5 + $0x280] sm:$0xf]  ;;  %v2617_v2 = vld [vmem:[%s3078_s5 + $0x284] sm:$0xf0]  ;;  %v2405_v6 = vor.u32 %v2635_v57, %v2404_v56  ;;  %v2269_v19 = vor.u32 %v2601_v62, %v2268_v61 }
  0xc9   : > { %1664 = vmatpush.bf16.msrb.mxu1 %v2373_v12  ;;  %v2396_v3 = vld [vmem:[%s3078_s5 + $0x300] sm:$0xf]  ;;  %v2633_v4 = vld [vmem:[%s3078_s5 + $0x304] sm:$0xf0]  ;;  %v2550_v9 = vld [vmem:[%s3078_s5 + $0x74] sm:$0xf]  ;;  %v2469_v11 = vor.u32 %v2651_v60, %v2468_v59  ;;  %v2333_v23 = vor.u32 %v2617_v2, %v2332_v0 }
  0xca   : > { %1678 = vmatpush.bf16.msrb.mxu2 %v2437_v13  ;;  %v2460_v7 = vld [vmem:[%s3078_s5 + $0x380] sm:$0xf]  ;;  %v2649_v8 = vld [vmem:[%s3078_s5 + $0x384] sm:$0xf0]  ;;  %v2070_v12 = vld [vmem:[%s3078_s5 + $0x78] sm:$0xf0] }
  0xcb   : > { %1692 = vmatpush.bf16.msrb.mxu3 %v2501_v18  ;;  %v2566_v13 = vld [vmem:[%s3078_s5 + $0xf4] sm:$0xf]  ;;  %v2134_v14 = vld [vmem:[%s3078_s5 + $0xf8] sm:$0xf0]  ;;  %v1996_v21 = vld [vmem:[%s3443_s0 + $0x10] sm:$0xf]  ;;  %v2461_v28 = vor.u32 %v2649_v8, %v2460_v7  ;;  %v2073_v29 = vor.u32 %v2550_v9, %v2070_v12 }
  0xcc   : > { %1651 = vmatpush.bf16.msrb.mxu0 %v2301_v24  ;;  %v2582_v15 = vld [vmem:[%s3078_s5 + $0x174] sm:$0xf]  ;;  %v2198_v16 = vld [vmem:[%s3078_s5 + $0x178] sm:$0xf0]  ;;  %v2534_v22 = vld [vmem:[%s3443_s0 + $0x2c] sm:$0xf0]  ;;  %v2397_v24 = vor.u32 %v2633_v4, %v2396_v3  ;;  %v2137_v33 = vor.u32 %v2566_v13, %v2134_v14 }
  0xcd   : > { %1665 = vmatpush.bf16.msrb.mxu1 %v2365_v25  ;;  %v2598_v18 = vld [vmem:[%s3078_s5 + $0x1f4] sm:$0xf]  ;;  %v2262_v20 = vld [vmem:[%s3078_s5 + $0x1f8] sm:$0xf0]  ;;  %v2004_v25 = vld [vmem:[%s3443_s0 + $0x18] sm:$0xf]  ;;  %v2201_v34 = vor.u32 %v2582_v15, %v2198_v16  ;;  %v3279_v39 = vor.u32 %v2534_v22, %v1996_v21 }
  0xce   : > { %1679 = vmatpush.bf16.msrb.mxu2 %v2429_v26  ;;  %v2535_v26 = vld [vmem:[%s3443_s0 + $0x34] sm:$0xf0]  ;;  %v2530_v27 = vld [vmem:[%s3443_s0 + $0x14] sm:$0xf]  ;;  %v2531_v31 = vld [vmem:[%s3443_s0 + $0x1c] sm:$0xf] }
  0xcf   : > { %1693 = vmatpush.bf16.msrb.mxu3 %v2493_v30  ;;  %v1998_v30 = vld [vmem:[%s3443_s0 + $0x30] sm:$0xf0]  ;;  %v2006_v32 = vld [vmem:[%s3443_s0 + $0x38] sm:$0xf0]  ;;  %v2548_v35 = vld [vmem:[%s3078_s5 + $0x64] sm:$0xf]  ;;  %v3284_v43 = vor.u32 %v2535_v26, %v2004_v25 }
  0xd0   : > { %1652 = vmatpush.bf16.msrb.mxu0 %v2293_v36  ;;  %v2062_v36 = vld [vmem:[%s3078_s5 + $0x68] sm:$0xf0]  ;;  %v2580_v41 = vld [vmem:[%s3078_s5 + $0x164] sm:$0xf]  ;;  %v3286_v44 = vor.u32 %v2530_v27, %v1998_v30  ;;  %v3290_v47 = vor.u32 %v2531_v31, %v2006_v32  ;;  %v2054_v52 = vld [vmem:[%s3078_s5 + $0x58] sm:$0xf0] }
  0xd1   : > { %1666 = vmatpush.bf16.msrb.mxu1 %v2357_v37  ;;  %v2564_v37 = vld [vmem:[%s3078_s5 + $0xe4] sm:$0xf]  ;;  %v2126_v40 = vld [vmem:[%s3078_s5 + $0xe8] sm:$0xf0]  ;;  %v2562_v53 = vld [vmem:[%s3078_s5 + $0xd4] sm:$0xf] }
  0xd2   : > { %1680 = vmatpush.bf16.msrb.mxu2 %v2421_v38  ;;  %v2265_v38 = vor.u32 %v2598_v18, %v2262_v20  ;;  %v2596_v45 = vld [vmem:[%s3078_s5 + $0x1e4] sm:$0xf]  ;;  %v2254_v46 = vld [vmem:[%s3078_s5 + $0x1e8] sm:$0xf0]  ;;  %v2129_v49 = vor.u32 %v2564_v37, %v2126_v40  ;;  %v2578_v56 = vld [vmem:[%s3078_s5 + $0x154] sm:$0xf] }
  0xd3   : > { %1694 = vmatpush.bf16.msrb.mxu3 %v2485_v42  ;;  %v2190_v42 = vld [vmem:[%s3078_s5 + $0x168] sm:$0xf0]  ;;  %v2257_v54 = vor.u32 %v2596_v45, %v2254_v46  ;;  %v2182_v57 = vld [vmem:[%s3078_s5 + $0x158] sm:$0xf0]  ;;  %v2594_v59 = vld [vmem:[%s3078_s5 + $0x1d4] sm:$0xf] }
  0xd4   : > { %1653 = vmatpush.bf16.msrb.mxu0 %v2285_v48  ;;  %v2065_v48 = vor.u32 %v2548_v35, %v2062_v36  ;;  %v2246_v60 = vld [vmem:[%s3078_s5 + $0x1d8] sm:$0xf0]  ;;  %v2544_v0 = vld [vmem:[%s3078_s5 + $0x44] sm:$0xf]  ;;  %v2046_v2 = vld [vmem:[%s3078_s5 + $0x48] sm:$0xf0] }
  0xd5   : > { %1667 = vmatpush.bf16.msrb.mxu1 %v2349_v50  ;;  %v2193_v50 = vor.u32 %v2580_v41, %v2190_v42  ;;  %v2560_v3 = vld [vmem:[%s3078_s5 + $0xc4] sm:$0xf]  ;;  %v2249_v4 = vor.u32 %v2594_v59, %v2246_v60  ;;  %v2174_v7 = vld [vmem:[%s3078_s5 + $0x148] sm:$0xf0]  ;;  %v2542_v14 = vld [vmem:[%s3078_s5 + $0x34] sm:$0xf] }
  0xd6   : > { %1681 = vmatpush.bf16.msrb.mxu2 %v2413_v51  ;;  %v2546_v51 = vld [vmem:[%s3078_s5 + $0x54] sm:$0xf]  ;;  %v2592_v8 = vld [vmem:[%s3078_s5 + $0x1c4] sm:$0xf]  ;;  %v2238_v9 = vld [vmem:[%s3078_s5 + $0x1c8] sm:$0xf0] }
  0xd7   : > { %1695 = vmatpush.bf16.msrb.mxu3 %v2477_v55  ;;  %v2118_v55 = vld [vmem:[%s3078_s5 + $0xd8] sm:$0xf0]  ;;  %v2057_v61 = vor.u32 %v2546_v51, %v2054_v52  ;;  %v2558_v16 = vld [vmem:[%s3078_s5 + $0xb4] sm:$0xf]  ;;  %v2241_v18 = vor.u32 %v2592_v8, %v2238_v9  ;;  %v2540_v27 = vld [vmem:[%s3078_s5 + $0x24] sm:$0xf] }
  0xd8   : > { %1654 = vmatpush.bf16.msrb.mxu0 %v2277_v63  ;;  %v2121_v62 = vor.u32 %v2562_v53, %v2118_v55  ;;  %v2185_v63 = vor.u32 %v2578_v56, %v2182_v57  ;;  %v2038_v15 = vld [vmem:[%s3078_s5 + $0x38] sm:$0xf0]  ;;  %v2574_v20 = vld [vmem:[%s3078_s5 + $0x134] sm:$0xf]  ;;  %v2094_v31 = vld [vmem:[%s3078_s5 + $0xa8] sm:$0xf0] }
  0xd9   : > { %1668 = vmatpush.bf16.msrb.mxu1 %v2341_v5  ;;  %v2110_v5 = vld [vmem:[%s3078_s5 + $0xc8] sm:$0xf0]  ;;  %v2166_v21 = vld [vmem:[%s3078_s5 + $0x138] sm:$0xf0]  ;;  %v2590_v22 = vld [vmem:[%s3078_s5 + $0x1b4] sm:$0xf] }
  0xda   : > { %1682 = vmatpush.bf16.msrb.mxu2 %v2405_v6  ;;  %v2576_v6 = vld [vmem:[%s3078_s5 + $0x144] sm:$0xf]  ;;  %v2113_v12 = vor.u32 %v2560_v3, %v2110_v5  ;;  %v2169_v26 = vor.u32 %v2574_v20, %v2166_v21  ;;  %v2222_v35 = vld [vmem:[%s3078_s5 + $0x1a8] sm:$0xf0]  ;;  %v2538_v40 = vld [vmem:[%s3078_s5 + $0x14] sm:$0xf] }
  0xdb   : > { %1696 = vmatpush.bf16.msrb.mxu3 %v2469_v11  ;;  %v2049_v11 = vor.u32 %v2544_v0, %v2046_v2  ;;  %v2177_v13 = vor.u32 %v2576_v6, %v2174_v7  ;;  %v2572_v32 = vld [vmem:[%s3078_s5 + $0x124] sm:$0xf]  ;;  %v2022_v41 = vld [vmem:[%s3078_s5 + $0x18] sm:$0xf0]  ;;  %v2554_v42 = vld [vmem:[%s3078_s5 + $0x94] sm:$0xf] }
  0xdc   : > { %1655 = vmatpush.bf16.msrb.mxu0 %v2269_v19  ;;  %v2102_v19 = vld [vmem:[%s3078_s5 + $0xb8] sm:$0xf0]  ;;  %v2025_v52 = vor.u32 %v2538_v40, %v2022_v41  ;;  %v2536_v53 = vld [vmem:[%s3078_s5 + $0x4] sm:$0xf]  ;;  %v2078_v59 = vld [vmem:[%s3078_s5 + $0x88] sm:$0xf0] }
  0xdd   : > { %1669 = vmatpush.bf16.msrb.mxu1 %v2333_v23  ;;  %v2230_v23 = vld [vmem:[%s3078_s5 + $0x1b8] sm:$0xf0]  ;;  %v2105_v25 = vor.u32 %v2558_v16, %v2102_v19  ;;  %v2552_v57 = vld [vmem:[%s3078_s5 + $0x84] sm:$0xf]  ;;  %v2206_v0 = vld [vmem:[%s3078_s5 + $0x188] sm:$0xf0] }
  0xde   : > { %1683 = vmatpush.bf16.msrb.mxu2 %v2397_v24  ;;  %v2041_v24 = vor.u32 %v2542_v14, %v2038_v15  ;;  %v2233_v30 = vor.u32 %v2590_v22, %v2230_v23  ;;  %v2086_v46 = vld [vmem:[%s3078_s5 + $0x98] sm:$0xf0]  ;;  %v2568_v60 = vld [vmem:[%s3078_s5 + $0x104] sm:$0xf]  ;;  %v2614_v2 = vld [vmem:[%s3078_s5 + $0x274] sm:$0xf]  ;;  %v2081_v9 = vor.u32 %v2552_v57, %v2078_v59 }
  0xdf   : > { %1697 = vmatpush.bf16.msrb.mxu3 %v2461_v28  ;;  %1656 = vmatmul.bf16.vlgmr.msrb.gmra.mxu0 %v3279_v39  ;;  %v2030_v28 = vld [vmem:[%s3078_s5 + $0x28] sm:$0xf0]  ;;  %v2214_v51 = vld [vmem:[%s3078_s5 + $0x198] sm:$0xf0]  ;;  %v2089_v55 = vor.u32 %v2554_v42, %v2086_v46  ;;  %v2646_v7 = vld [vmem:[%s3078_s5 + $0x374] sm:$0xf] }
  0xe0   : > { %1704 = vmatpush.bf16.msra.mxu0 %v2073_v29  ;;  %1670 = vmatmul.bf16.vlgmr.msrb.gmra.mxu1 %v3286_v44  ;;  %v2556_v29 = vld [vmem:[%s3078_s5 + $0xa4] sm:$0xf]  ;;  %v2033_v36 = vor.u32 %v2540_v27, %v2030_v28  ;;  %v2326_v3 = vld [vmem:[%s3078_s5 + $0x278] sm:$0xf0]  ;;  %v2318_v20 = vld [vmem:[%s3078_s5 + $0x268] sm:$0xf0] }
  0xe1   : > { %1718 = vmatpush.bf16.msra.mxu1 %v2137_v33  ;;  %1684 = vmatmul.bf16.vlgmr.msrb.gmra.mxu2 %v3284_v43  ;;  %v2158_v33 = vld [vmem:[%s3078_s5 + $0x128] sm:$0xf0]  ;;  %v2097_v37 = vor.u32 %v2556_v29, %v2094_v31  ;;  %v2390_v6 = vld [vmem:[%s3078_s5 + $0x2f8] sm:$0xf0]  ;;  %v2329_v15 = vor.u32 %v2614_v2, %v2326_v3  ;;  %v2612_v19 = vld [vmem:[%s3078_s5 + $0x264] sm:$0xf] }
  0xe2   : > { %1732 = vmatpush.bf16.msra.mxu2 %v2201_v34  ;;  %1698 = vmatmul.bf16.vlgmr.msrb.gmra.mxu3 %v3290_v47  ;;  %v2588_v34 = vld [vmem:[%s3078_s5 + $0x1a4] sm:$0xf]  ;;  %v2454_v8 = vld [vmem:[%s3078_s5 + $0x378] sm:$0xf0]  ;;  %v2382_v23 = vld [vmem:[%s3078_s5 + $0x2e8] sm:$0xf0]  ;;  %v2321_v28 = vor.u32 %v2612_v19, %v2318_v20 }
  0xe3   : > { %1746 = vmatpush.bf16.msra.mxu3 %v2265_v38  ;;  %v2161_v38 = vor.u32 %v2572_v32, %v2158_v33  ;;  %v2225_v45 = vor.u32 %v2588_v34, %v2222_v35  ;;  %v2628_v21 = vld [vmem:[%s3078_s5 + $0x2e4] sm:$0xf]  ;;  %v2510_v27 = vld [vmem:[%s3078_s5 + $0x3e8] sm:$0xf0]  ;;  %v2610_v31 = vld [vmem:[%s3078_s5 + $0x254] sm:$0xf] }
  0xe4   : > { %1705 = vmatpush.bf16.msra.mxu0 %v2065_v48  ;;  %v2570_v48 = vld [vmem:[%s3078_s5 + $0x114] sm:$0xf]  ;;  %v2385_v29 = vor.u32 %v2628_v21, %v2382_v23  ;;  %v2310_v32 = vld [vmem:[%s3078_s5 + $0x258] sm:$0xf0]  ;;  %v2302_v46 = vld [vmem:[%s3078_s5 + $0x248] sm:$0xf0] }
  0xe5   : > { %1719 = vmatpush.bf16.msra.mxu1 %v2129_v49  ;;  %v2150_v49 = vld [vmem:[%s3078_s5 + $0x118] sm:$0xf0]  ;;  %v2626_v33 = vld [vmem:[%s3078_s5 + $0x2d4] sm:$0xf]  ;;  %v2313_v41 = vor.u32 %v2610_v31, %v2310_v32  ;;  %v2600_v31 = vld [vmem:[%s3078_s5 + $0x204] sm:$0xf] }
  0xe6   : > { %1733 = vmatpush.bf16.msra.mxu2 %v2193_v50  ;;  %v2586_v50 = vld [vmem:[%s3078_s5 + $0x194] sm:$0xf]  ;;  %v2153_v56 = vor.u32 %v2570_v48, %v2150_v49  ;;  %v2374_v35 = vld [vmem:[%s3078_s5 + $0x2d8] sm:$0xf0]  ;;  %v2624_v48 = vld [vmem:[%s3078_s5 + $0x2c4] sm:$0xf] }
  0xe7   : > { %1747 = vmatpush.bf16.msra.mxu3 %v2257_v54  ;;  %v2014_v54 = vld [vmem:[%s3078_s5 + $0x8] sm:$0xf0]  ;;  %v2502_v40 = vld [vmem:[%s3078_s5 + $0x3d8] sm:$0xf0]  ;;  %v2622_v57 = vld [vmem:[%s3078_s5 + $0x2b4] sm:$0xf] }
  0xe8   : > { %1706 = vmatpush.bf16.msra.mxu0 %v2057_v61  ;;  %v2217_v61 = vor.u32 %v2586_v50, %v2214_v51  ;;  %v2017_v5 = vor.u32 %v2536_v53, %v2014_v54  ;;  %v2366_v49 = vld [vmem:[%s3078_s5 + $0x2c8] sm:$0xf0]  ;;  %v2656_v51 = vld [vmem:[%s3078_s5 + $0x3c4] sm:$0xf]  ;;  %v2602_v19 = vld [vmem:[%s3078_s5 + $0x214] sm:$0xf] }
  0xe9   : > { %1720 = vmatpush.bf16.msra.mxu1 %v2121_v62  ;;  %v2142_v62 = vld [vmem:[%s3078_s5 + $0x108] sm:$0xf0]  ;;  %v2369_v53 = vor.u32 %v2624_v48, %v2366_v49  ;;  %v2278_v20 = vld [vmem:[%s3078_s5 + $0x218] sm:$0xf0]  ;;  %v2618_v21 = vld [vmem:[%s3078_s5 + $0x294] sm:$0xf] }
  0xea   : > { %1734 = vmatpush.bf16.msra.mxu2 %v2185_v63  ;;  %v2584_v63 = vld [vmem:[%s3078_s5 + $0x184] sm:$0xf]  ;;  %v2430_v50 = vld [vmem:[%s3078_s5 + $0x348] sm:$0xf0]  ;;  %v2342_v23 = vld [vmem:[%s3078_s5 + $0x298] sm:$0xf0] }
  0xeb   : > { %1748 = vmatpush.bf16.msra.mxu3 %v2249_v4  ;;  %v2630_v4 = vld [vmem:[%s3078_s5 + $0x2f4] sm:$0xf]  ;;  %v2209_v14 = vor.u32 %v2584_v63, %v2206_v0  ;;  %v2486_v0 = vld [vmem:[%s3078_s5 + $0x3b8] sm:$0xf0]  ;;  %v2270_v32 = vld [vmem:[%s3078_s5 + $0x208] sm:$0xf0] }
  0xec   : > { %1707 = vmatpush.bf16.msra.mxu0 %v2049_v11  ;;  %v2145_v11 = vor.u32 %v2568_v60, %v2142_v62  ;;  %v2393_v16 = vor.u32 %v2630_v4, %v2390_v6  ;;  %v2358_v60 = vld [vmem:[%s3078_s5 + $0x2b8] sm:$0xf0]  ;;  %v2654_v63 = vld [vmem:[%s3078_s5 + $0x3b4] sm:$0xf]  ;;  %v2286_v6 = vld [vmem:[%s3078_s5 + $0x228] sm:$0xf0] }
  0xed   : > { %1721 = vmatpush.bf16.msra.mxu1 %v2113_v12  ;;  %v2662_v12 = vld [vmem:[%s3078_s5 + $0x3f4] sm:$0xf]  ;;  %v2422_v62 = vld [vmem:[%s3078_s5 + $0x338] sm:$0xf0]  ;;  %v2361_v3 = vor.u32 %v2622_v57, %v2358_v60  ;;  %s2664_s12 = sshll.u32 (%p2800_p6), %s2735_s14, 3 }
  0xee   : > { %1735 = vmatpush.bf16.msra.mxu2 %v2177_v13  ;;  %v2518_v13 = vld [vmem:[%s3078_s5 + $0x3f8] sm:$0xf0]  ;;  %s1836_s10 = scalar_lea.vmem (%p2800_p6), %s3446_s3, %s2664_s12 }
  0xef   : > { %1749 = vmatpush.bf16.msra.mxu3 %v2241_v18  ;;  %v2457_v18 = vor.u32 %v2646_v7, %v2454_v8  ;;  %v2521_v22 = vor.u32 %v2662_v12, %v2518_v13  ;;  %v2620_v7 = vld [vmem:[%s3078_s5 + $0x2a4] sm:$0xf]  ;;  %v2489_v8 = vor.u32 %v2654_v63, %v2486_v0  ;;  %v2414_v12 = vld [vmem:[%s3078_s5 + $0x328] sm:$0xf0] }
  0xf0   : > { %1708 = vmatpush.bf16.msra.mxu0 %v2041_v24  ;;  %v2644_v24 = vld [vmem:[%s3078_s5 + $0x364] sm:$0xf] }
  0xf1   : > { %1722 = vmatpush.bf16.msra.mxu1 %v2105_v25  ;;  %v2446_v25 = vld [vmem:[%s3078_s5 + $0x368] sm:$0xf0]  ;;  %v2652_v13 = vld [vmem:[%s3078_s5 + $0x3a4] sm:$0xf] }
  0xf2   : > { %1736 = vmatpush.bf16.msra.mxu2 %v2169_v26  ;;  %v2660_v26 = vld [vmem:[%s3078_s5 + $0x3e4] sm:$0xf] }
  0xf3   : > { %1750 = vmatpush.bf16.msra.mxu3 %v2233_v30  ;;  %v2449_v30 = vor.u32 %v2644_v24, %v2446_v25  ;;  %v2513_v34 = vor.u32 %v2660_v26, %v2510_v27  ;;  %v2634_v24 = vld [vmem:[%s3078_s5 + $0x314] sm:$0xf]  ;;  %v2406_v25 = vld [vmem:[%s3078_s5 + $0x318] sm:$0xf0] }
  0xf4   : > { %1709 = vmatpush.bf16.msra.mxu0 %v2033_v36  ;;  %v2642_v36 = vld [vmem:[%s3078_s5 + $0x354] sm:$0xf]  ;;  %v2470_v27 = vld [vmem:[%s3078_s5 + $0x398] sm:$0xf0] }
  0xf5   : > { %1723 = vmatpush.bf16.msra.mxu1 %v2097_v37  ;;  %v2438_v37 = vld [vmem:[%s3078_s5 + $0x358] sm:$0xf0]  ;;  %v2650_v26 = vld [vmem:[%s3078_s5 + $0x394] sm:$0xf] }
  0xf6   : > { %1737 = vmatpush.bf16.msra.mxu2 %v2161_v38  ;;  %v2658_v38 = vld [vmem:[%s3078_s5 + $0x3d4] sm:$0xf]  ;;  %v2441_v42 = vor.u32 %v2642_v36, %v2438_v37  ;;  %v2632_v36 = vld [vmem:[%s3078_s5 + $0x304] sm:$0xf]  ;;  %v2398_v37 = vld [vmem:[%s3078_s5 + $0x308] sm:$0xf0] }
  0xf7   : > { %1751 = vmatpush.bf16.msra.mxu3 %v2225_v45  ;;  %v2608_v45 = vld [vmem:[%s3078_s5 + $0x244] sm:$0xf] }
  0xf8   : > { %1710 = vmatpush.bf16.msra.mxu0 %v2025_v52  ;;  %v2305_v52 = vor.u32 %v2608_v45, %v2302_v46 }
  0xf9   : > { %1724 = vmatpush.bf16.msra.mxu1 %v2089_v55  ;;  %v2606_v55 = vld [vmem:[%s3078_s5 + $0x234] sm:$0xf] }
  0xfa   : > { %1738 = vmatpush.bf16.msra.mxu2 %v2153_v56  ;;  %v2294_v56 = vld [vmem:[%s3078_s5 + $0x238] sm:$0xf0] }
  0xfb   : > { %1752 = vmatpush.bf16.msra.mxu3 %v2217_v61  ;;  %v2638_v61 = vld [vmem:[%s3078_s5 + $0x334] sm:$0xf]  ;;  %v2297_v2 = vor.u32 %v2606_v55, %v2294_v56 }
  0xfc   : > { %1711 = vmatpush.bf16.msra.mxu0 %v2017_v5  ;;  %v2425_v4 = vor.u32 %v2638_v61, %v2422_v62  ;;  %v2604_v5 = vld [vmem:[%s3078_s5 + $0x224] sm:$0xf] }
  0xfd   : > { %1725 = vmatpush.bf16.msra.mxu1 %v2081_v9  ;;  %v2350_v9 = vld [vmem:[%s3078_s5 + $0x2a8] sm:$0xf0] }
  0xfe   : > { %1739 = vmatpush.bf16.msra.mxu2 %v2145_v11  ;;  %v2636_v11 = vld [vmem:[%s3078_s5 + $0x324] sm:$0xf] }
  0xff   : > { %1753 = vmatpush.bf16.msra.mxu3 %v2209_v14  ;;  %1712 = vmatmul.bf16.vlgmr.msra.gmra.mxu0 %v3171_v58  ;;  %v2505_v58 = vor.u32 %v2658_v38, %v2502_v40  ;;  %v2478_v14 = vld [vmem:[%s3078_s5 + $0x3a8] sm:$0xf0]  ;;  %v2648_v38 = vld [vmem:[%s3078_s5 + $0x384] sm:$0xf] }
 0x100   : > { %1760 = vmatpush.bf16.msrb.mxu0 %v2329_v15  ;;  %1726 = vmatmul.bf16.vlgmr.msra.gmra.mxu1 %v3195_v10  ;;  %v2494_v10 = vld [vmem:[%s3078_s5 + $0x3c8] sm:$0xf0]  ;;  %v2289_v15 = vor.u32 %v2604_v5, %v2286_v6 }
 0x101   : > { %1774 = vmatpush.bf16.msrb.mxu1 %v2393_v16  ;;  %1740 = vmatmul.bf16.vlgmr.msra.gmra.mxu2 %v3179_v1  ;;  %v2377_v1 = vor.u32 %v2626_v33, %v2374_v35  ;;  %v2497_v59 = vor.u32 %v2656_v51, %v2494_v10  ;;  %v2353_v16 = vor.u32 %v2620_v7, %v2350_v9  ;;  %v2616_v33 = vld [vmem:[%s3078_s5 + $0x284] sm:$0xf]  ;;  %v2334_v35 = vld [vmem:[%s3078_s5 + $0x288] sm:$0xf0] }
 0x102   : > { %1788 = vmatpush.bf16.msrb.mxu2 %v2457_v18  ;;  %1754 = vmatmul.bf16.vlgmr.msra.gmra.mxu3 %v3203_v17  ;;  %v2640_v17 = vld [vmem:[%s3078_s5 + $0x344] sm:$0xf]  ;;  %v2417_v18 = vor.u32 %v2636_v11, %v2414_v12  ;;  %v2462_v40 = vld [vmem:[%s3078_s5 + $0x388] sm:$0xf0]  ;;  %s1977_s5 = sshll.u32 %s2735_s14, 1 }
 0x103   : > { %1802 = vmatpush.bf16.msrb.mxu3 %v2521_v22  ;;  %v2433_v54 = vor.u32 %v2640_v17, %v2430_v50  ;;  %v2481_v22 = vor.u32 %v2652_v13, %v2478_v14  ;;  %v2465_v45 = vor.u32 %v2648_v38, %v2462_v40  ;;  %p764_p11 = scmp.lt.s32.totalorder %s1977_s5, 3 }
 0x104   : > { %1761 = vmatpush.bf16.msrb.mxu0 %v2321_v28  ;;  %v2281_v28 = vor.u32 %v2602_v19, %v2278_v20 }
 0x105   : > { %1775 = vmatpush.bf16.msrb.mxu1 %v2385_v29  ;;  %v2345_v29 = vor.u32 %v2618_v21, %v2342_v23  ;;  %s3455_s5 = smov (!%p764_p11, %s1977_s5), 3 }
 0x106   : > { %1789 = vmatpush.bf16.msrb.mxu2 %v2449_v30  ;;  %v2409_v30 = vor.u32 %v2634_v24, %v2406_v25  ;;  %s766_s6 = scalar_lea.vmem %s3445_s2, %s3455_s5 }
 0x107   : > { %1803 = vmatpush.bf16.msrb.mxu3 %v2513_v34  ;;  %v2473_v34 = vor.u32 %v2650_v26, %v2470_v27 }
 0x108   : > { %1762 = vmatpush.bf16.msrb.mxu0 %v2313_v41  ;;  %v2273_v41 = vor.u32 %v2600_v31, %v2270_v32 }
 0x109   : > { %1776 = vmatpush.bf16.msrb.mxu1 %v2377_v1  ;;  %v2337_v1 = vor.u32 %v2616_v33, %v2334_v35 }
 0x10a   : > { %1790 = vmatpush.bf16.msrb.mxu2 %v2441_v42  ;;  %v2401_v42 = vor.u32 %v2632_v36, %v2398_v37 }
 0x10b   : > { %1804 = vmatpush.bf16.msrb.mxu3 %v2505_v58 }
 0x10c   : > { %1763 = vmatpush.bf16.msrb.mxu0 %v2305_v52 }
 0x10d   : > { %1777 = vmatpush.bf16.msrb.mxu1 %v2369_v53 }
 0x10e   : > { %1791 = vmatpush.bf16.msrb.mxu2 %v2433_v54 }
 0x10f   : > { %1805 = vmatpush.bf16.msrb.mxu3 %v2497_v59 }
 0x110   : > { %1764 = vmatpush.bf16.msrb.mxu0 %v2297_v2 }
 0x111   : > { %1778 = vmatpush.bf16.msrb.mxu1 %v2361_v3 }
 0x112   : > { %1792 = vmatpush.bf16.msrb.mxu2 %v2425_v4 }
 0x113   : > { %1806 = vmatpush.bf16.msrb.mxu3 %v2489_v8 }
 0x114   : > { %1765 = vmatpush.bf16.msrb.mxu0 %v2289_v15 }
 0x115   : > { %1779 = vmatpush.bf16.msrb.mxu1 %v2353_v16 }
 0x116   : > { %1793 = vmatpush.bf16.msrb.mxu2 %v2417_v18 }
 0x117   : > { %1807 = vmatpush.bf16.msrb.mxu3 %v2481_v22 }
 0x118   : > { %1766 = vmatpush.bf16.msrb.mxu0 %v2281_v28 }
 0x119   : > { %1780 = vmatpush.bf16.msrb.mxu1 %v2345_v29 }
 0x11a   : > { %1794 = vmatpush.bf16.msrb.mxu2 %v2409_v30 }
 0x11b   : > { %1808 = vmatpush.bf16.msrb.mxu3 %v2473_v34 }
 0x11c   : > { %1767 = vmatpush.bf16.msrb.mxu0 %v2273_v41 }
 0x11d   : > { %1781 = vmatpush.bf16.msrb.mxu1 %v2337_v1 }
 0x11e   : > { %1795 = vmatpush.bf16.msrb.mxu2 %v2401_v42 }
 0x11f   : > { %1809 = vmatpush.bf16.msrb.mxu3 %v2465_v45  ;;  %1768 = vmatmul.bf16.vlgmr.msrb.gmra.mxu0 %v3279_v39 }
 0x120   : > { %1782 = vmatmul.bf16.vlgmr.msrb.gmra.mxu1 %v3286_v44  ;;  %v906_v44 = vld [vmem:[%s766_s6] sm:$0x3] }
 0x121   : > { %1796 = vmatmul.bf16.vlgmr.msrb.gmra.mxu2 %v3284_v43  ;;  %v908_v54 = vperm.slane %v906_v44, 0  ;;  %v909_v62 = vperm.slane %v906_v44, 1 }
 0x122   : > { %1810 = vmatmul.bf16.vlgmr.msrb.gmra.mxu3 %v3290_v47 }
 0x13c   : > { %v1601_v46 = vpop.f32.mrf.mxu0 }
 0x13d   : > { %v1615_v48 = vpop.f32.mrf.mxu1  ;;  %v1602_v56 = vadd.f32 %v1601_v46, %v908_v54 }
 0x13f   : > { %v1616_v61 = vadd.f32 %v1615_v48, %v1602_v56 }
 0x144   : > { %v1629_v58 = vpop.f32.mrf.mxu2  ;;  %v1603_v17 = vpop.f32.mrf.mxu0 }
 0x145   : > { %v1643_v49 = vpop.f32.mrf.mxu3  ;;  %v1617_v50 = vpop.f32.mrf.mxu1  ;;  %v1630_v0 = vadd.f32 %v1629_v58, %v1616_v61  ;;  %v1604_v4 = vadd.f32 %v1603_v17, %v908_v54 }
 0x147   : > { %v1644_v6 = vadd.f32 %v1643_v49, %v1630_v0  ;;  %v1618_v9 = vadd.f32 %v1617_v50, %v1604_v4 }
 0x14c   : > { %v1631_v51 = vpop.f32.mrf.mxu2 }
 0x14d   : > { %v1645_v10 = vpop.f32.mrf.mxu3  ;;  %v1632_v15 = vadd.f32 %v1631_v51, %v1618_v9 }
 0x14f   : > { %v1646_v23 = vadd.f32 %v1645_v10, %v1632_v15 }
 0x15c   : > { %v1657_v52 = vpop.f32.mrf.mxu0 }
 0x15d   : > { %v1671_v53 = vpop.f32.mrf.mxu1  ;;  %v1658_v12 = vadd.f32 %v1657_v52, %v1644_v6 }
 0x15f   : > { %v1672_v18 = vadd.f32 %v1671_v53, %v1658_v12 }
 0x164   : > { %v1685_v39 = vpop.f32.mrf.mxu2  ;;  %v1659_v47 = vpop.f32.mrf.mxu0 }
 0x165   : > { %v1699_v43 = vpop.f32.mrf.mxu3  ;;  %v1673_v55 = vpop.f32.mrf.mxu1  ;;  %v1686_v26 = vadd.f32 %v1685_v39, %v1672_v18  ;;  %v1660_v28 = vadd.f32 %v1659_v47, %v1646_v23 }
 0x167   : > { %v1700_v31 = vadd.f32 %v1699_v43, %v1686_v26  ;;  %v1674_v36 = vadd.f32 %v1673_v55, %v1660_v28 }
 0x169   : > { %v1816_v40 = vmax.f32 %v1700_v31, 0.0 }
 0x16c   : > { %v1687_v57 = vpop.f32.mrf.mxu2 }
 0x16d   : > { %v1701_v59 = vpop.f32.mrf.mxu3  ;;  %v1688_v41 = vadd.f32 %v1687_v57, %v1674_v36 }
 0x16f   : > { %v1702_v58 = vadd.f32 %v1701_v59, %v1688_v41 }
 0x171   : > { %v1818_v51 = vmax.f32 %v1702_v58, 0.0 }
 0x17c   : > { %v1713_v60 = vpop.f32.mrf.mxu0 }
 0x17d   : > { %v1727_v63 = vpop.f32.mrf.mxu1  ;;  %v1714_v2 = vadd.f32 %v1713_v60, %v909_v62 }
 0x17f   : > { %v1728_v7 = vadd.f32 %v1727_v63, %v1714_v2 }
 0x184   : > { %v1741_v3 = vpop.f32.mrf.mxu2  ;;  %v1715_v8 = vpop.f32.mrf.mxu0 }
 0x185   : > { %v1755_v5 = vpop.f32.mrf.mxu3  ;;  %v1729_v11 = vpop.f32.mrf.mxu1  ;;  %v1742_v13 = vadd.f32 %v1741_v3, %v1728_v7  ;;  %v1716_v14 = vadd.f32 %v1715_v8, %v909_v62 }
 0x187   : > { %v1756_v19 = vadd.f32 %v1755_v5, %v1742_v13  ;;  %v1730_v20 = vadd.f32 %v1729_v11, %v1716_v14 }
 0x18c   : > { %v1743_v16 = vpop.f32.mrf.mxu2 }
 0x18d   : > { %v1757_v21 = vpop.f32.mrf.mxu3  ;;  %v1744_v27 = vadd.f32 %v1743_v16, %v1730_v20 }
 0x18f   : > { %v1758_v32 = vadd.f32 %v1757_v21, %v1744_v27 }
 0x19c   : > { %v1769_v22 = vpop.f32.mrf.mxu0 }
 0x19d   : > { %v1770_v24 = vadd.f32 %v1769_v22, %v1756_v19  ;;  %v1783_v25 = vpop.f32.mrf.mxu1 }
 0x19f   : > { %v1784_v29 = vadd.f32 %v1783_v25, %v1770_v24 }
 0x1a4   : > { %v1797_v30 = vpop.f32.mrf.mxu2  ;;  %v1771_v35 = vpop.f32.mrf.mxu0 }
 0x1a5   : > { %v1798_v33 = vadd.f32 %v1797_v30, %v1784_v29  ;;  %v1811_v34 = vpop.f32.mrf.mxu3  ;;  %v1772_v38 = vadd.f32 %v1771_v35, %v1758_v32  ;;  %v1785_v42 = vpop.f32.mrf.mxu1 }
 0x1a7   : > { %v1812_v37 = vadd.f32 %v1811_v34, %v1798_v33  ;;  %v1786_v46 = vadd.f32 %v1785_v42, %v1772_v38 }
 0x1a9   : > { %v1817_v1 = vmax.f32 %v1812_v37, 0.0 }
 0x1ab   : > { %v1820_v45 = vpack.c.bf16 %v1817_v1, %v1816_v40 }
 0x1ac   : > { %v1799_v48 = vpop.f32.mrf.mxu2 }
 0x1ad   : > { %1822 = vst [vmem:[%s754_s8] sm:$0xff] %v1820_v45  ;;  %v1800_v49 = vadd.f32 %v1799_v48, %v1786_v46  ;;  %v1813_v17 = vpop.f32.mrf.mxu3 }
 0x1af   : > { %v1814_v50 = vadd.f32 %v1813_v17, %v1800_v49 }
 0x1b1   : > { %v1819_v10 = vmax.f32 %v1814_v50, 0.0  ;;  %1830 = sbr.rel (!%p2800_p6) target bundleno = 446 (0x1be), region = 74 }
 0x1b3   : > { %v1821_v52 = vpack.c.bf16 %v1819_v10, %v1818_v51 }
 0x1b4   : > { %v1867_v53 = vld [vmem:[%s754_s8] sm:$0xff] (%p2800_p6) }
 0x1b5   : > { %1823 = vst [vmem:[%s754_s8 + $0x8] sm:$0xff] %v1821_v52 }
 0x1b6   : > { %1868 = vst [vmem:[%s1836_s10] sm:$0xff] %v1867_v53 }
 0x1bc   : > { %v1869_v39 = vld [vmem:[%s754_s8 + $0x8] sm:$0xff] }
 0x1bd   : > { %1870 = vst [vmem:[%s1836_s10 + $0x10] sm:$0xff] %v1869_v39 }
 0x1be PF: > { %s13_s16 = sadd.s32 1, %s2743_s16   ;;  %s3448_s12 = smov %s2731_s13 }
 0x1bf   : > { %p10_p12 = scmp.ge.s32.totalorder %s13_s16, 4   ;;  %s3449_s13 = smov %s2805_s22 }
 0x1c0   : > { %s3450_s14 = smov %s2739_s15  ;;  %s3451_s15 = smov %s3453_s17 }
 0x1c1   :  { %12 = sbr.rel (!%p10_p12) target bundleno = 3 (0x3), region = 149 }

// kernel: autoencoder_forward.14
= control target key start
LH: loop header
LB: loop body
LE: loop exit
PB: predicated region body
PF: predicated region fallthrough
CT: control target
= control target key end

     0   :  { %s453_s1 = inlined_call_operand.vmem [shape: bf16[256,128], index: 1, kind: input, shape index: {}]   ;;  %s454_s2 = inlined_call_operand.vmem [shape: f32[1,128], index: 2, kind: input, shape index: {}]   ;;  %s455_s0 = inlined_call_operand.vmem [shape: bf16[32,256], index: 0, kind: input, shape index: {}]   ;;  %s456_s3 = inlined_call_operand.vmem [shape: bf16[32,128], index: 3, kind: output, shape index: {}]  }
   0x1   :  { %v315_v0 = vld [vmem:[%s453_s1 + $0x38] sm:$0xff]  ;;  %v314_v2 = vld [vmem:[%s453_s1 + $0x30] sm:$0xff]  ;;  %v313_v4 = vld [vmem:[%s453_s1 + $0x28] sm:$0xff] }
   0x2   :  { %v323_v1 = vld [vmem:[%s453_s1 + $0x78] sm:$0xff]  ;;  %170 = vmatpush.bf16.msra.mxu0 %v315_v0  ;;  %335 = vmatpush.bf16.msra.mxu2 %v315_v0  ;;  %v322_v3 = vld [vmem:[%s453_s1 + $0x70] sm:$0xff]  ;;  %v321_v5 = vld [vmem:[%s453_s1 + $0x68] sm:$0xff] }
   0x3   :  { %189 = vmatpush.bf16.msra.mxu1 %v323_v1  ;;  %343 = vmatpush.bf16.msra.mxu3 %v323_v1  ;;  %v312_v6 = vld [vmem:[%s453_s1 + $0x20] sm:$0xff]  ;;  %v311_v8 = vld [vmem:[%s453_s1 + $0x18] sm:$0xff]  ;;  %v310_v10 = vld [vmem:[%s453_s1 + $0x10] sm:$0xff] }
   0x4   :  { %v320_v7 = vld [vmem:[%s453_s1 + $0x60] sm:$0xff]  ;;  %v319_v9 = vld [vmem:[%s453_s1 + $0x58] sm:$0xff]  ;;  %v318_v11 = vld [vmem:[%s453_s1 + $0x50] sm:$0xff] }
   0x5   :  { %v309_v12 = vld [vmem:[%s453_s1 + $0x8] sm:$0xff]  ;;  %v308_v14 = vld [vmem:[%s453_s1] sm:$0xff]  ;;  %v234_v18 = vld [vmem:[%s455_s0 + $0x10] sm:$0xf] }
   0x6   :  { %171 = vmatpush.bf16.msra.mxu0 %v314_v2  ;;  %336 = vmatpush.bf16.msra.mxu2 %v314_v2  ;;  %v317_v13 = vld [vmem:[%s453_s1 + $0x48] sm:$0xff]  ;;  %v316_v15 = vld [vmem:[%s453_s1 + $0x40] sm:$0xff]  ;;  %v307_v19 = vld [vmem:[%s455_s0 + $0x14] sm:$0xf0] }
   0x7   :  { %190 = vmatpush.bf16.msra.mxu1 %v322_v3  ;;  %344 = vmatpush.bf16.msra.mxu3 %v322_v3  ;;  %v226_v16 = vld [vmem:[%s455_s0] sm:$0xf]  ;;  %v305_v17 = vld [vmem:[%s455_s0 + $0x4] sm:$0xf0]  ;;  %v304_v20 = vld [vmem:[%s455_s0 + $0x4] sm:$0xf]  ;;  %v235_v25 = vor.u32 %v307_v19, %v234_v18 }
   0x8   :  { %v228_v21 = vld [vmem:[%s455_s0 + $0x8] sm:$0xf0]  ;;  %v306_v22 = vld [vmem:[%s455_s0 + $0x14] sm:$0xf]  ;;  %v236_v23 = vld [vmem:[%s455_s0 + $0x18] sm:$0xf0]  ;;  %v227_v24 = vor.u32 %v305_v17, %v226_v16 }
   0x9   :  { %v231_v26 = vor.u32 %v304_v20, %v228_v21  ;;  %v239_v27 = vor.u32 %v306_v22, %v236_v23  ;;  %v351_v29 = vld [vmem:[%s454_s2] ss:$0 sm:$0xff] }
   0xa   :  { %172 = vmatpush.bf16.msra.mxu0 %v313_v4  ;;  %337 = vmatpush.bf16.msra.mxu2 %v313_v4 }
   0xb   :  { %191 = vmatpush.bf16.msra.mxu1 %v321_v5  ;;  %345 = vmatpush.bf16.msra.mxu3 %v321_v5 }
   0xe   :  { %173 = vmatpush.bf16.msra.mxu0 %v312_v6  ;;  %338 = vmatpush.bf16.msra.mxu2 %v312_v6 }
   0xf   :  { %192 = vmatpush.bf16.msra.mxu1 %v320_v7  ;;  %346 = vmatpush.bf16.msra.mxu3 %v320_v7 }
  0x12   :  { %174 = vmatpush.bf16.msra.mxu0 %v311_v8  ;;  %339 = vmatpush.bf16.msra.mxu2 %v311_v8 }
  0x13   :  { %193 = vmatpush.bf16.msra.mxu1 %v319_v9  ;;  %347 = vmatpush.bf16.msra.mxu3 %v319_v9 }
  0x16   :  { %175 = vmatpush.bf16.msra.mxu0 %v310_v10  ;;  %340 = vmatpush.bf16.msra.mxu2 %v310_v10 }
  0x17   :  { %194 = vmatpush.bf16.msra.mxu1 %v318_v11  ;;  %348 = vmatpush.bf16.msra.mxu3 %v318_v11 }
  0x1a   :  { %176 = vmatpush.bf16.msra.mxu0 %v309_v12  ;;  %341 = vmatpush.bf16.msra.mxu2 %v309_v12 }
  0x1b   :  { %195 = vmatpush.bf16.msra.mxu1 %v317_v13  ;;  %349 = vmatpush.bf16.msra.mxu3 %v317_v13 }
  0x1e   :  { %177 = vmatpush.bf16.msra.mxu0 %v308_v14  ;;  %342 = vmatpush.bf16.msra.mxu2 %v308_v14 }
  0x1f   :  { %196 = vmatpush.bf16.msra.mxu1 %v316_v15  ;;  %350 = vmatpush.bf16.msra.mxu3 %v316_v15 }
  0x21   :  { %178 = vmatmul.bf16.vlgmr.msra.gmra.mxu0 %v227_v24  ;;  %183 = vmatmul.bf16.vlgmr.msra.gmra.mxu2 %v235_v25 }
  0x22   :  { %197 = vmatmul.bf16.vlgmr.msra.gmra.mxu1 %v231_v26  ;;  %202 = vmatmul.bf16.vlgmr.msra.gmra.mxu3 %v239_v27 }
  0x9e   :  { %v179_v28 = vpop.f32.mrf.mxu0 }
  0x9f   :  { %v198_v30 = vpop.f32.mrf.mxu1  ;;  %v180_v31 = vadd.f32 %v351_v29, %v179_v28 }
  0xa1   :  { %v199_v35 = vadd.f32 %v198_v30, %v180_v31 }
  0xa3   :  { %v208_v40 = vmax.f32 %v199_v35, 0.0 }
  0xa4   :  { %v184_v32 = vpop.f32.mrf.mxu2 }
  0xa5   :  { %v203_v33 = vpop.f32.mrf.mxu3  ;;  %v185_v38 = vadd.f32 %v351_v29, %v184_v32 }
  0xa6   :  { %v181_v34 = vpop.f32.mrf.mxu0 }
  0xa7   :  { %v182_v36 = vadd.f32 %v351_v29, %v181_v34  ;;  %v200_v37 = vpop.f32.mrf.mxu1  ;;  %v204_v43 = vadd.f32 %v203_v33, %v185_v38 }
  0xa9   :  { %v201_v39 = vadd.f32 %v200_v37, %v182_v36  ;;  %v210_v48 = vmax.f32 %v204_v43, 0.0 }
  0xab   :  { %v209_v41 = vmax.f32 %v201_v39, 0.0 }
  0xac   :  { %v186_v42 = vpop.f32.mrf.mxu2 }
  0xad   :  { %v327_v44 = vpack.c.bf16 %v209_v41, %v208_v40  ;;  %v187_v45 = vadd.f32 %v351_v29, %v186_v42  ;;  %v205_v46 = vpop.f32.mrf.mxu3 }
  0xaf   :  { %328 = vst [vmem:[%s456_s3] sm:$0xff] %v327_v44   ;;  %v206_v47 = vadd.f32 %v205_v46, %v187_v45 }
  0xb1   :  { %v211_v49 = vmax.f32 %v206_v47, 0.0 }
  0xb3   :  { %v332_v50 = vpack.c.bf16 %v211_v49, %v210_v48 }
  0xb5   :  { %334 = vst [vmem:[%s456_s3 + $0x8] sm:$0xff] %v332_v50  }

// kernel: autoencoder_forward.15
= control target key start
LH: loop header
LB: loop body
LE: loop exit
PB: predicated region body
PF: predicated region fallthrough
CT: control target
= control target key end

     0   :  { %s1035_s1 = inlined_call_operand.vmem [shape: bf16[128,128], index: 1, kind: input, shape index: {}]   ;;  %s1036_s2 = inlined_call_operand.vmem [shape: f32[1,128], index: 2, kind: input, shape index: {}]   ;;  %s1037_s0 = inlined_call_operand.vmem [shape: bf16[128,128], index: 0, kind: input, shape index: {}]   ;;  %s1038_s3 = inlined_call_operand.vmem [shape: f32[128,128], index: 3, kind: output, shape index: {}]  }
   0x1   :  { %v614_v0 = vld [vmem:[%s1035_s1 + $0x38] sm:$0xff]  ;;  %v613_v1 = vld [vmem:[%s1035_s1 + $0x30] sm:$0xff]  ;;  %v612_v2 = vld [vmem:[%s1035_s1 + $0x28] sm:$0xff] }
   0x2   :  { %146 = vmatpush.bf16.msra.mxu0 %v614_v0  ;;  %615 = vmatpush.bf16.msra.mxu1 %v614_v0  ;;  %v611_v3 = vld [vmem:[%s1035_s1 + $0x20] sm:$0xff]  ;;  %v610_v4 = vld [vmem:[%s1035_s1 + $0x18] sm:$0xff]  ;;  %v609_v5 = vld [vmem:[%s1035_s1 + $0x10] sm:$0xff] }
   0x3   :  { %616 = vmatpush.bf16.msra.mxu2 %v614_v0  ;;  %617 = vmatpush.bf16.msra.mxu3 %v614_v0  ;;  %v608_v6 = vld [vmem:[%s1035_s1 + $0x8] sm:$0xff]  ;;  %v607_v7 = vld [vmem:[%s1035_s1] sm:$0xff]  ;;  %v601_v9 = vld [vmem:[%s1037_s0 + $0x10] sm:$0xff] }
   0x4   :  { %v599_v8 = vld [vmem:[%s1037_s0] sm:$0xff]  ;;  %v605_v11 = vld [vmem:[%s1037_s0 + $0x30] sm:$0xff]  ;;  %v600_v12 = vld [vmem:[%s1037_s0 + $0x8] sm:$0xff] }
   0x5   :  { %v603_v10 = vld [vmem:[%s1037_s0 + $0x20] sm:$0xff]  ;;  %v602_v13 = vld [vmem:[%s1037_s0 + $0x18] sm:$0xff]  ;;  %v604_v14 = vld [vmem:[%s1037_s0 + $0x28] sm:$0xff] }
   0x6   :  { %147 = vmatpush.bf16.msra.mxu0 %v613_v1  ;;  %618 = vmatpush.bf16.msra.mxu1 %v613_v1  ;;  %v606_v15 = vld [vmem:[%s1037_s0 + $0x38] sm:$0xff]  ;;  %v775_v16 = vld [vmem:[%s1036_s2] ss:$0 sm:$0xff] }
   0x7   :  { %619 = vmatpush.bf16.msra.mxu2 %v613_v1  ;;  %620 = vmatpush.bf16.msra.mxu3 %v613_v1 }
   0xa   :  { %148 = vmatpush.bf16.msra.mxu0 %v612_v2  ;;  %621 = vmatpush.bf16.msra.mxu1 %v612_v2 }
   0xb   :  { %622 = vmatpush.bf16.msra.mxu2 %v612_v2  ;;  %623 = vmatpush.bf16.msra.mxu3 %v612_v2 }
   0xe   :  { %149 = vmatpush.bf16.msra.mxu0 %v611_v3  ;;  %624 = vmatpush.bf16.msra.mxu1 %v611_v3 }
   0xf   :  { %625 = vmatpush.bf16.msra.mxu2 %v611_v3  ;;  %626 = vmatpush.bf16.msra.mxu3 %v611_v3 }
  0x12   :  { %150 = vmatpush.bf16.msra.mxu0 %v610_v4  ;;  %627 = vmatpush.bf16.msra.mxu1 %v610_v4 }
  0x13   :  { %628 = vmatpush.bf16.msra.mxu2 %v610_v4  ;;  %629 = vmatpush.bf16.msra.mxu3 %v610_v4 }
  0x16   :  { %151 = vmatpush.bf16.msra.mxu0 %v609_v5  ;;  %630 = vmatpush.bf16.msra.mxu1 %v609_v5 }
  0x17   :  { %631 = vmatpush.bf16.msra.mxu2 %v609_v5  ;;  %632 = vmatpush.bf16.msra.mxu3 %v609_v5 }
  0x1a   :  { %152 = vmatpush.bf16.msra.mxu0 %v608_v6  ;;  %633 = vmatpush.bf16.msra.mxu1 %v608_v6 }
  0x1b   :  { %634 = vmatpush.bf16.msra.mxu2 %v608_v6  ;;  %635 = vmatpush.bf16.msra.mxu3 %v608_v6 }
  0x1e   :  { %153 = vmatpush.bf16.msra.mxu0 %v607_v7  ;;  %636 = vmatpush.bf16.msra.mxu1 %v607_v7 }
  0x1f   :  { %637 = vmatpush.bf16.msra.mxu2 %v607_v7  ;;  %638 = vmatpush.bf16.msra.mxu3 %v607_v7 }
  0x21   :  { %154 = vmatmul.bf16.vlgmr.msra.gmra.mxu0 %v599_v8  ;;  %164 = vmatmul.bf16.vlgmr.msra.gmra.mxu1 %v601_v9 }
  0x22   :  { %174 = vmatmul.bf16.vlgmr.msra.gmra.mxu2 %v603_v10  ;;  %184 = vmatmul.bf16.vlgmr.msra.gmra.mxu3 %v605_v11 }
  0x31   :  { %159 = vmatmul.bf16.gmra.mxu0 %v600_v12  ;;  %169 = vmatmul.bf16.gmra.mxu1 %v602_v13 }
  0x32   :  { %179 = vmatmul.bf16.gmra.mxu2 %v604_v14  ;;  %189 = vmatmul.bf16.gmra.mxu3 %v606_v15 }
  0x9e   :  { %v155_v17 = vpop.f32.mrf.mxu0  ;;  %v165_v18 = vpop.f32.mrf.mxu1 }
  0x9f   :  { %v156_v19 = vadd.f32 %v775_v16, %v155_v17  ;;  %v166_v20 = vadd.f32 %v775_v16, %v165_v18 }
  0xa1   :  { %v583_v21 = vmul.f32 -1.442695, %v156_v19  ;;  %v587_v22 = vmul.f32 -1.442695, %v166_v20 }
  0xa3   :  { %640 = vpow2.f32 %v583_v21 }
  0xa4   :  { %642 = vpow2.f32 %v587_v22 }
  0xa5   :  { %v175_v23 = vpop.f32.mrf.mxu2  ;;  %v185_v24 = vpop.f32.mrf.mxu3 }
  0xa6   :  { %v176_v25 = vadd.f32 %v775_v16, %v175_v23  ;;  %v186_v26 = vadd.f32 %v775_v16, %v185_v24  ;;  %v157_v27 = vpop.f32.mrf.mxu0  ;;  %v167_v28 = vpop.f32.mrf.mxu1 }
  0xa7   :  { %v158_v29 = vadd.f32 %v775_v16, %v157_v27  ;;  %v168_v30 = vadd.f32 %v775_v16, %v167_v28 }
  0xa8   :  { %v591_v31 = vmul.f32 -1.442695, %v176_v25  ;;  %v595_v32 = vmul.f32 -1.442695, %v186_v26 }
  0xa9   :  { %v641_v33 = vpop.eup %640  ;;  %v584_v36 = vmul.f32 -1.442695, %v158_v29  ;;  %v588_v38 = vmul.f32 -1.442695, %v168_v30 }
  0xaa   :  { %v643_v34 = vpop.eup %642  ;;  %v783_v35 = vadd.f32 1.0, %v641_v33  ;;  %644 = vpow2.f32 %v591_v31 }
  0xab   :  { %v785_v37 = vadd.f32 1.0, %v643_v34  ;;  %646 = vpow2.f32 %v595_v32 }
  0xac   :  { %648 = vrcp.f32 %v783_v35  ;;  %v268_v42 = vand.u32 2147483647, %v783_v35  ;;  %v270_v43 = vand.u32 2147483648, %v783_v35  ;;  %vm264_vm0 = vweird.f32 %v783_v35 }
  0xad   :  { %650 = vrcp.f32 %v785_v37  ;;  %v177_v39 = vpop.f32.mrf.mxu2  ;;  %v187_v40 = vpop.f32.mrf.mxu3  ;;  %v328_v46 = vand.u32 2147483647, %v785_v37  ;;  %v330_v50 = vand.u32 2147483648, %v785_v37  ;;  %vm324_vm1 = vweird.f32 %v785_v37 }
  0xae   :  { %652 = vpow2.f32 %v584_v36  ;;  %v178_v41 = vadd.f32 %v775_v16, %v177_v39  ;;  %v160_v44 = vpop.f32.mrf.mxu0  ;;  %v188_v48 = vadd.f32 %v775_v16, %v187_v40  ;;  %v170_v55 = vpop.f32.mrf.mxu1  ;;  %vm803_vm2 = vcmp.eq.f32.partialorder %v268_v42, 8.507059e+37 }
  0xaf   :  { %654 = vpow2.f32 %v588_v38  ;;  %v161_v54 = vadd.f32 %v775_v16, %v160_v44  ;;  %v271_v59 = vor.u32 1.1754944e-38, %v270_v43  ;;  %vm809_vm3 = vcmp.eq.f32.partialorder %v328_v46, 8.507059e+37 }
  0xb0   :  { %v645_v45 = vpop.eup %644  ;;  %v592_v47 = vmul.f32 -1.442695, %v178_v41  ;;  %v596_v63 = vmul.f32 -1.442695, %v188_v48  ;;  %v331_v2 = vor.u32 1.1754944e-38, %v330_v50  ;;  %v171_v3 = vadd.f32 %v775_v16, %v170_v55 }
  0xb1   :  { %v647_v49 = vpop.eup %646  ;;  %v795_v51 = vadd.f32 1.0, %v645_v45  ;;  %v585_v6 = vmul.f32 -1.442695, %v161_v54 }
  0xb2   :  { %v649_v52 = vpop.eup %648  ;;  %v799_v53 = vadd.f32 1.0, %v647_v49  ;;  %v824_v17 = vmul.f32 -1.442695, %v171_v3 }
  0xb3   :  { %v651_v56 = vpop.eup %650  ;;  %v260_v57 = vmul.f32 %v649_v52, %v783_v35  ;;  %656 = vrcp.f32 %v795_v51  ;;  %vm265_vm4 = vweird.f32 %v649_v52  ;;  %v388_v5 = vand.u32 2147483647, %v795_v51 }
  0xb4   :  { %v653_v60 = vpop.eup %652  ;;  %v320_v61 = vmul.f32 %v651_v56, %v785_v37  ;;  %658 = vpow2.f32 %v592_v47  ;;  %v390_v8 = vand.u32 2147483648, %v795_v51  ;;  %vm325_vm5 = vweird.f32 %v651_v56  ;;  %vm266_vm6 = vmor %vm264_vm0, %vm265_vm4 }
  0xb5   :  { %v655_v0 = vpop.eup %654  ;;  %v261_v1 = vsub.f32 1.0, %v260_v57  ;;  %660 = vrcp.f32 %v799_v53  ;;  %v817_v9 = vadd.f32 1.0, %v653_v60  ;;  %v448_v12 = vand.u32 2147483647, %v799_v53  ;;  %v180_v21 = vpop.f32.mrf.mxu2  ;;  %vm326_vm9 = vmor %vm324_vm1, %vm325_vm5 }
  0xb6   :  { %v321_v4 = vsub.f32 1.0, %v320_v61  ;;  %v819_v10 = vadd.f32 1.0, %v655_v0  ;;  %662 = vpow2.f32 %v596_v63  ;;  %v450_v15 = vand.u32 2147483648, %v799_v53  ;;  %v190_v48 = vpop.f32.mrf.mxu3  ;;  %v162_v3 = vpop.f32.mrf.mxu0 }
  0xb7   :  { %v262_v7 = vmul.f32 %v649_v52, %v261_v1  ;;  %664 = vrcp.f32 %v817_v9  ;;  %vm384_vm7 = vweird.f32 %v795_v51  ;;  %vm444_vm8 = vweird.f32 %v799_v53 }
  0xb8   :  { %v322_v11 = vmul.f32 %v651_v56, %v321_v4  ;;  %vm835_vm10 = vcmp.eq.f32.partialorder %v388_v5, 8.507059e+37  ;;  %v391_v25 = vor.u32 1.1754944e-38, %v390_v8  ;;  %666 = vrcp.f32 %v819_v10 }
  0xb9   :  { %v657_v13 = vpop.eup %656  ;;  %v263_v14 = vadd.f32 %v649_v52, %v262_v7  ;;  %vm843_vm11 = vcmp.eq.f32.partialorder %v448_v12, 8.507059e+37  ;;  %v451_v32 = vor.u32 1.1754944e-38, %v450_v15  ;;  %v283_v33 = vand.u32 2147483647, %v817_v9 }
  0xba   :  { %v659_v18 = vpop.eup %658  ;;  %v323_v19 = vadd.f32 %v651_v56, %v322_v11  ;;  %v380_v20 = vmul.f32 %v657_v13, %v795_v51  ;;  %v181_v34 = vadd.f32 %v775_v16, %v180_v21  ;;  %vm385_vm12 = vweird.f32 %v657_v13  ;;  %v172_v21 = vpop.f32.mrf.mxu1 }
  0xbb   :  { %v661_v22 = vpop.eup %660  ;;  %v267_v23 = vsel %vm266_vm6, %v649_v52, %v263_v14  ;;  %v857_v38 = vadd.f32 1.0, %v659_v18  ;;  %vm279_vm14 = vweird.f32 %v817_v9  ;;  %v285_v40 = vand.u32 2147483648, %v817_v9  ;;  %vm386_vm15 = vmor %vm384_vm7, %vm385_vm12 }
  0xbc   :  { %v272_v26 = vsel %vm803_vm2, %v271_v59, %v267_v23  ;;  %v327_v27 = vsel %vm326_vm9, %v651_v56, %v323_v19  ;;  %v381_v28 = vsub.f32 1.0, %v380_v20  ;;  %v440_v29 = vmul.f32 %v661_v22, %v799_v53  ;;  %v663_v35 = vpop.eup %662 }
  0xbd   :  { %499 = vst [vmem:[%s1038_s3] sm:$0xff] %v272_v26  ;;  %v332_v31 = vsel %vm809_vm3, %v331_v2, %v327_v27  ;;  %v665_v39 = vpop.eup %664  ;;  %vm445_vm13 = vweird.f32 %v661_v22  ;;  %668 = vpow2.f32 %v585_v6  ;;  %v862_v44 = vadd.f32 1.0, %v663_v35 }
  0xbe   :  { %503 = vst [vmem:[%s1038_s3 + $0x20] sm:$0xff] %v332_v31  ;;  %v382_v36 = vmul.f32 %v657_v13, %v381_v28  ;;  %v441_v37 = vsub.f32 1.0, %v440_v29  ;;  %v275_v43 = vmul.f32 %v665_v39, %v817_v9  ;;  %v667_v45 = vpop.eup %666  ;;  %vm866_vm0 = vcmp.eq.f32.partialorder %v283_v33, 8.507059e+37  ;;  %vm446_vm2 = vmor %vm444_vm8, %vm445_vm13 }
  0xbf   :  { %vm339_vm1 = vweird.f32 %v819_v10  ;;  %v343_v47 = vand.u32 2147483647, %v819_v10  ;;  %670 = vrcp.f32 %v857_v38  ;;  %v335_v54 = vmul.f32 %v667_v45, %v819_v10 }
  0xc0   :  { %v383_v41 = vadd.f32 %v657_v13, %v382_v36  ;;  %v442_v42 = vmul.f32 %v661_v22, %v441_v37  ;;  %v276_v52 = vsub.f32 1.0, %v275_v43  ;;  %vm280_vm3 = vweird.f32 %v665_v39 }
  0xc1   :  { %v345_v55 = vand.u32 2147483648, %v819_v10  ;;  %v403_v56 = vand.u32 2147483647, %v857_v38  ;;  %v336_v59 = vsub.f32 1.0, %v335_v54  ;;  %672 = vrcp.f32 %v862_v44  ;;  %vm281_vm6 = vmor %vm279_vm14, %vm280_vm3 }
  0xc2   :  { %v387_v49 = vsel %vm386_vm15, %v657_v13, %v383_v41  ;;  %v443_v50 = vadd.f32 %v661_v22, %v442_v42  ;;  %v277_v58 = vmul.f32 %v665_v39, %v276_v52  ;;  %v286_v53 = vor.u32 1.1754944e-38, %v285_v40 }
  0xc3   :  { %v392_v51 = vsel %vm835_vm10, %v391_v25, %v387_v49  ;;  %v669_v60 = vpop.eup %668  ;;  %vm887_vm4 = vcmp.eq.f32.partialorder %v343_v47, 8.507059e+37  ;;  %v405_v63 = vand.u32 2147483648, %v857_v38  ;;  %v337_v1 = vmul.f32 %v667_v45, %v336_v59  ;;  %v192_v25 = vpop.f32.mrf.mxu3 }
  0xc4   :  { %507 = vst [vmem:[%s1038_s3 + $0x40] sm:$0xff] %v392_v51  ;;  %v447_v57 = vsel %vm446_vm2, %v661_v22, %v443_v50  ;;  %v278_v0 = vadd.f32 %v665_v39, %v277_v58  ;;  %vm340_vm5 = vweird.f32 %v667_v45  ;;  %v895_v2 = vadd.f32 1.0, %v669_v60  ;;  %v182_v22 = vpop.f32.mrf.mxu2 }
  0xc5   :  { %v452_v61 = vsel %vm843_vm11, %v451_v32, %v447_v57  ;;  %v671_v4 = vpop.eup %670  ;;  %v346_v5 = vor.u32 1.1754944e-38, %v345_v55  ;;  %vm399_vm7 = vweird.f32 %v857_v38  ;;  %674 = vpow2.f32 %v824_v17  ;;  %vm341_vm9 = vmor %vm339_vm1, %vm340_vm5 }
  0xc6   :  { %511 = vst [vmem:[%s1038_s3 + $0x60] sm:$0xff] %v452_v61  ;;  %v593_v6 = vmul.f32 -1.442695, %v181_v34  ;;  %v282_v7 = vsel %vm281_vm6, %v665_v39, %v278_v0  ;;  %v338_v8 = vadd.f32 %v667_v45, %v337_v1  ;;  %v395_v11 = vmul.f32 %v671_v4, %v857_v38 }
  0xc7   :  { %vm903_vm8 = vcmp.eq.f32.partialorder %v403_v56, 8.507059e+37  ;;  %v191_v13 = vadd.f32 %v775_v16, %v190_v48  ;;  %v287_v9 = vsel %vm866_vm0, %v286_v53, %v282_v7  ;;  %v406_v14 = vor.u32 1.1754944e-38, %v405_v63  ;;  %v673_v17 = vpop.eup %672 }
  0xc8   :  { %676 = vrcp.f32 %v895_v2  ;;  %v163_v15 = vadd.f32 %v775_v16, %v162_v3  ;;  %500 = vst [vmem:[%s1038_s3 + $0x8] sm:$0xff] %v287_v9  ;;  %v342_v18 = vsel %vm341_vm9, %v667_v45, %v338_v8  ;;  %v396_v19 = vsub.f32 1.0, %v395_v11 }
  0xc9   :  { %vm459_vm10 = vweird.f32 %v862_v44  ;;  %v463_v20 = vand.u32 2147483647, %v862_v44  ;;  %v347_v10 = vsel %vm887_vm4, %v346_v5, %v342_v18  ;;  %v455_v23 = vmul.f32 %v673_v17, %v862_v44 }
  0xca   :  { %v465_v24 = vand.u32 2147483648, %v862_v44  ;;  %678 = vpow2.f32 %v593_v6  ;;  %504 = vst [vmem:[%s1038_s3 + $0x28] sm:$0xff] %v347_v10  ;;  %v397_v26 = vmul.f32 %v671_v4, %v396_v19  ;;  %vm400_vm11 = vweird.f32 %v671_v4 }
  0xcb   :  { %vm460_vm12 = vweird.f32 %v673_v17  ;;  %v597_v27 = vmul.f32 -1.442695, %v191_v13  ;;  %v675_v28 = vpop.eup %674  ;;  %v456_v29 = vsub.f32 1.0, %v455_v23  ;;  %v586_v30 = vmul.f32 -1.442695, %v163_v15  ;;  %vm401_vm13 = vmor %vm399_vm7, %vm400_vm11 }
  0xcc   :  { %v173_v31 = vadd.f32 %v775_v16, %v172_v21  ;;  %v183_v32 = vadd.f32 %v775_v16, %v182_v22  ;;  %v398_v33 = vadd.f32 %v671_v4, %v397_v26  ;;  %v929_v34 = vadd.f32 1.0, %v675_v28  ;;  %vm461_vm0 = vmor %vm459_vm10, %vm460_vm12 }
  0xcd   :  { %680 = vpow2.f32 %v597_v27  ;;  %v193_v35 = vadd.f32 %v775_v16, %v192_v25  ;;  %v457_v37 = vmul.f32 %v673_v17, %v456_v29  ;;  %vm934_vm14 = vcmp.eq.f32.partialorder %v463_v20, 8.507059e+37 }
  0xce   :  { %v677_v36 = vpop.eup %676  ;;  %682 = vpow2.f32 %v586_v30  ;;  %v590_v39 = vmul.f32 -1.442695, %v173_v31  ;;  %v594_v40 = vmul.f32 -1.442695, %v183_v32  ;;  %v402_v41 = vsel %vm401_vm13, %v671_v4, %v398_v33 }
  0xcf   :  { %v290_v43 = vmul.f32 %v677_v36, %v895_v2  ;;  %684 = vrcp.f32 %v929_v34  ;;  %v407_v16 = vsel %vm903_vm8, %v406_v14, %v402_v41  ;;  %v458_v46 = vadd.f32 %v673_v17, %v457_v37 }
  0xd0   :  { %v679_v45 = vpop.eup %678  ;;  %v466_v38 = vor.u32 1.1754944e-38, %v465_v24  ;;  %vm294_vm15 = vweird.f32 %v895_v2  ;;  %508 = vst [vmem:[%s1038_s3 + $0x48] sm:$0xff] %v407_v16  ;;  %v298_v48 = vand.u32 2147483647, %v895_v2  ;;  %686 = vpow2.f32 %v590_v39 }
  0xd1   :  { %v291_v47 = vsub.f32 1.0, %v290_v43  ;;  %v950_v49 = vadd.f32 1.0, %v679_v45  ;;  %v462_v50 = vsel %vm461_vm0, %v673_v17, %v458_v46  ;;  %v300_v52 = vand.u32 2147483648, %v895_v2 }
  0xd2   :  { %688 = vpow2.f32 %v594_v40  ;;  %v598_v54 = vmul.f32 -1.442695, %v193_v35  ;;  %v467_v55 = vsel %vm934_vm14, %v466_v38, %v462_v50  ;;  %vm295_vm1 = vweird.f32 %v677_v36 }
  0xd3   :  { %v681_v51 = vpop.eup %680  ;;  %v292_v56 = vmul.f32 %v677_v36, %v291_v47  ;;  %690 = vrcp.f32 %v950_v49  ;;  %512 = vst [vmem:[%s1038_s3 + $0x68] sm:$0xff] %v467_v55  ;;  %vm296_vm2 = vmor %vm294_vm15, %vm295_vm1  ;;  %v301_v61 = vor.u32 1.1754944e-38, %v300_v52  ;;  %vm299_vm3 = vcmp.eq.f32.partialorder %v298_v48, 8.507059e+37 }
  0xd4   :  { %v683_v44 = vpop.eup %682  ;;  %v959_v57 = vadd.f32 1.0, %v681_v51  ;;  %692 = vpow2.f32 %v598_v54  ;;  %v358_v4 = vand.u32 2147483647, %v929_v34  ;;  %v360_v2 = vand.u32 2147483648, %v929_v34 }
  0xd5   :  { %v685_v58 = vpop.eup %684  ;;  %v293_v59 = vadd.f32 %v677_v36, %v292_v56  ;;  %v961_v60 = vadd.f32 1.0, %v683_v44  ;;  %vm354_vm4 = vweird.f32 %v929_v34  ;;  %v418_v11 = vand.u32 2147483647, %v950_v49 }
  0xd6   :  { %v350_v53 = vmul.f32 %v685_v58, %v929_v34  ;;  %v687_v62 = vpop.eup %686  ;;  %694 = vrcp.f32 %v959_v57  ;;  %vm355_vm5 = vweird.f32 %v685_v58  ;;  %vm359_vm6 = vcmp.eq.f32.partialorder %v358_v4, 8.507059e+37 }
  0xd7   :  { %v297_v63 = vsel %vm296_vm2, %v677_v36, %v293_v59  ;;  %696 = vrcp.f32 %v961_v60  ;;  %v976_v12 = vadd.f32 1.0, %v687_v62  ;;  %vm356_vm7 = vmor %vm354_vm4, %vm355_vm5  ;;  %v361_v17 = vor.u32 1.1754944e-38, %v360_v2 }
  0xd8   :  { %v689_v0 = vpop.eup %688  ;;  %v302_v1 = vsel %vm299_vm3, %v301_v61, %v297_v63  ;;  %v351_v3 = vsub.f32 1.0, %v350_v53  ;;  %v420_v18 = vand.u32 2147483648, %v950_v49  ;;  %vm414_vm9 = vweird.f32 %v950_v49 }
  0xd9   :  { %v691_v5 = vpop.eup %690  ;;  %501 = vst [vmem:[%s1038_s3 + $0x10] sm:$0xff] %v302_v1  ;;  %v978_v14 = vadd.f32 1.0, %v689_v0  ;;  %698 = vrcp.f32 %v976_v12  ;;  %vm986_vm10 = vcmp.eq.f32.partialorder %v418_v11, 8.507059e+37  ;;  %v478_v28 = vand.u32 2147483647, %v959_v57 }
  0xda   :  { %v352_v6 = vmul.f32 %v685_v58, %v351_v3  ;;  %v410_v7 = vmul.f32 %v691_v5, %v950_v49  ;;  %v693_v8 = vpop.eup %692  ;;  %vm415_vm8 = vweird.f32 %v691_v5  ;;  %v421_v29 = vor.u32 1.1754944e-38, %v420_v18 }
  0xdb   :  { %v983_v10 = vadd.f32 1.0, %v693_v8  ;;  %700 = vrcp.f32 %v978_v14  ;;  %vm416_vm11 = vmor %vm414_vm9, %vm415_vm8  ;;  %v480_v30 = vand.u32 2147483648, %v959_v57  ;;  %v315_v32 = vand.u32 2147483648, %v961_v60 }
  0xdc   :  { %v353_v13 = vadd.f32 %v685_v58, %v352_v6  ;;  %v411_v9 = vsub.f32 1.0, %v410_v7  ;;  %v695_v15 = vpop.eup %694  ;;  %v313_v39 = vand.u32 2147483647, %v961_v60  ;;  %vm474_vm14 = vweird.f32 %v959_v57 }
  0xdd   :  { %v697_v19 = vpop.eup %696  ;;  %v470_v22 = vmul.f32 %v695_v15, %v959_v57  ;;  %vm475_vm12 = vweird.f32 %v695_v15  ;;  %702 = vrcp.f32 %v983_v10  ;;  %vm479_vm15 = vcmp.eq.f32.partialorder %v478_v28, 8.507059e+37 }
  0xde   :  { %v357_v20 = vsel %vm356_vm7, %v685_v58, %v353_v13  ;;  %v412_v21 = vmul.f32 %v691_v5, %v411_v9  ;;  %v305_v25 = vmul.f32 %v697_v19, %v961_v60  ;;  %vm310_vm13 = vweird.f32 %v697_v19  ;;  %vm476_vm0 = vmor %vm474_vm14, %vm475_vm12 }
  0xdf   :  { %v362_v23 = vsel %vm359_vm6, %v361_v17, %v357_v20  ;;  %v471_v27 = vsub.f32 1.0, %v470_v22  ;;  %v699_v35 = vpop.eup %698  ;;  %v481_v42 = vor.u32 1.1754944e-38, %v480_v30  ;;  %vm309_vm1 = vweird.f32 %v961_v60 }
  0xe0   :  { %505 = vst [vmem:[%s1038_s3 + $0x30] sm:$0xff] %v362_v23  ;;  %v413_v26 = vadd.f32 %v691_v5, %v412_v21  ;;  %v306_v31 = vsub.f32 1.0, %v305_v25  ;;  %v365_v41 = vmul.f32 %v699_v35, %v976_v12  ;;  %v316_v45 = vor.u32 1.1754944e-38, %v315_v32  ;;  %vm311_vm2 = vmor %vm309_vm1, %vm310_vm13 }
  0xe1   :  { %v472_v34 = vmul.f32 %v695_v15, %v471_v27  ;;  %v701_v16 = vpop.eup %700  ;;  %v373_v47 = vand.u32 2147483647, %v976_v12  ;;  %v375_v48 = vand.u32 2147483648, %v976_v12  ;;  %vm314_vm3 = vcmp.eq.f32.partialorder %v313_v39, 8.507059e+37 }
  0xe2   :  { %v417_v33 = vsel %vm416_vm11, %v691_v5, %v413_v26  ;;  %v307_v37 = vmul.f32 %v697_v19, %v306_v31  ;;  %v366_v38 = vsub.f32 1.0, %v365_v41  ;;  %v425_v52 = vmul.f32 %v701_v16, %v978_v14 }
  0xe3   :  { %v422_v36 = vsel %vm986_vm10, %v421_v29, %v417_v33  ;;  %v473_v40 = vadd.f32 %v695_v15, %v472_v34  ;;  %v703_v54 = vpop.eup %702  ;;  %vm370_vm4 = vweird.f32 %v699_v35  ;;  %vm369_vm5 = vweird.f32 %v976_v12 }
  0xe4   :  { %509 = vst [vmem:[%s1038_s3 + $0x50] sm:$0xff] %v422_v36  ;;  %v308_v43 = vadd.f32 %v697_v19, %v307_v37  ;;  %v367_v55 = vmul.f32 %v699_v35, %v366_v38  ;;  %v426_v56 = vsub.f32 1.0, %v425_v52  ;;  %v485_v44 = vmul.f32 %v703_v54, %v983_v10  ;;  %vm371_vm7 = vmor %vm369_vm5, %vm370_vm4 }
  0xe5   :  { %v477_v46 = vsel %vm476_vm0, %v695_v15, %v473_v40  ;;  %vm374_vm6 = vcmp.eq.f32.partialorder %v373_v47, 8.507059e+37  ;;  %v376_v58 = vor.u32 1.1754944e-38, %v375_v48  ;;  %v435_v59 = vand.u32 2147483648, %v978_v14 }
  0xe6   :  { %v482_v49 = vsel %vm479_vm15, %v481_v42, %v477_v46  ;;  %v312_v50 = vsel %vm311_vm2, %v697_v19, %v308_v43  ;;  %v368_v57 = vadd.f32 %v699_v35, %v367_v55  ;;  %v427_v60 = vmul.f32 %v701_v16, %v426_v56 }
  0xe7   :  { %513 = vst [vmem:[%s1038_s3 + $0x70] sm:$0xff] %v482_v49  ;;  %v317_v51 = vsel %vm314_vm3, %v316_v45, %v312_v50  ;;  %vm430_vm8 = vweird.f32 %v701_v16  ;;  %v433_v61 = vand.u32 2147483647, %v978_v14  ;;  %v486_v53 = vsub.f32 1.0, %v485_v44 }
  0xe8   :  { %502 = vst [vmem:[%s1038_s3 + $0x18] sm:$0xff] %v317_v51  ;;  %v372_v62 = vsel %vm371_vm7, %v699_v35, %v368_v57  ;;  %vm429_vm9 = vweird.f32 %v978_v14  ;;  %v493_v63 = vand.u32 2147483647, %v983_v10  ;;  %v495_v0 = vand.u32 2147483648, %v983_v10 }
  0xe9   :  { %v377_v1 = vsel %vm374_vm6, %v376_v58, %v372_v62  ;;  %v428_v3 = vadd.f32 %v701_v16, %v427_v60  ;;  %v487_v4 = vmul.f32 %v703_v54, %v486_v53  ;;  %vm490_vm10 = vweird.f32 %v703_v54  ;;  %vm431_vm11 = vmor %vm429_vm9, %vm430_vm8 }
  0xea   :  { %506 = vst [vmem:[%s1038_s3 + $0x38] sm:$0xff] %v377_v1  ;;  %v436_v5 = vor.u32 1.1754944e-38, %v435_v59  ;;  %vm434_vm12 = vcmp.eq.f32.partialorder %v433_v61, 8.507059e+37  ;;  %vm489_vm13 = vweird.f32 %v983_v10  ;;  %v496_v8 = vor.u32 1.1754944e-38, %v495_v0 }
  0xeb   :  { %v432_v2 = vsel %vm431_vm11, %v701_v16, %v428_v3  ;;  %v488_v6 = vadd.f32 %v703_v54, %v487_v4  ;;  %vm491_vm14 = vmor %vm489_vm13, %vm490_vm10  ;;  %vm494_vm15 = vcmp.eq.f32.partialorder %v493_v63, 8.507059e+37 }
  0xec   :  { %v437_v7 = vsel %vm434_vm12, %v436_v5, %v432_v2 }
  0xed   :  { %510 = vst [vmem:[%s1038_s3 + $0x58] sm:$0xff] %v437_v7  ;;  %v492_v11 = vsel %vm491_vm14, %v703_v54, %v488_v6 }
  0xee   :  { %v497_v12 = vsel %vm494_vm15, %v496_v8, %v492_v11 }
  0xef   :  { %514 = vst [vmem:[%s1038_s3 + $0x78] sm:$0xff] %v497_v12 }

</bundles_post_ra>
